<compile_context>
chip_gen: v6e
topology: v6e:2x2x1
jax: 0.10.0
libtpu: 0.0.40
codegen_flags: <defaults>
</compile_context>

<pallas_src>
import numpy as np
import jax
import jax.numpy as jnp
from jax.experimental import pallas as pl
from jax.experimental.pallas import tpu as pltpu


# Static architecture constants (would come from cfg.backbone in the original).
C_IN = 4        # input channels
C_MID = 32      # backbone width == out_features channels
C_IN_PAD = 8    # stem contraction channels padded 4 -> 8
CP = 128        # lane-dense channel padding used through the whole pipeline
LB_GUARD = 8    # always-zero guard rows above/below the line-buffer content


def _lb_rows(H, W):
    return (H + 2) * W + 2 * LB_GUARD


# ---------------------------------------------------------------------------
# Fused kernel: stem conv+BN+ReLU -> conv+BN+ReLU -> conv+BN (+skip) + ReLU
# ---------------------------------------------------------------------------
def _make_fused_backbone_kernel(H, W):
    HW = H * W
    OFF = LB_GUARD                 # first content row of the line buffer
    LB = _lb_rows(H, W)
    TOP_Z = OFF + W                # rows [0, TOP_Z)  are always zero
    BOT_Z = OFF + W + HW           # rows [BOT_Z, LB) are always zero

    def kernel(xstem_ref, ws_ref, b0_ref, w1_ref, b1_ref, w2_ref, b2_ref,
               o_ref, lb_ref, skip_ref):
        # ----- halo/guard maintenance: clear ONLY the always-zero rows ------
        lb_ref[pl.ds(0, TOP_Z), :] = jnp.zeros((TOP_Z, CP), jnp.float32)
        lb_ref[pl.ds(BOT_Z, LB - BOT_Z), :] = jnp.zeros((LB - BOT_Z, CP),
                                                        jnp.float32)

        # Column masks for the dx=0 / dx=2 taps (computed once, reused).
        col = jax.lax.broadcasted_iota(jnp.int32, (HW, CP), 0) % W
        kill_w_first = col == 0            # left SAME-pad column
        kill_w_last = col == (W - 1)       # right SAME-pad column

        def conv3x3(w_ref, b_ref):
            # 9 accumulated MXU dots.  Every LHS is a direct streaming load
            # from the W-strided line buffer (at worst offset by one row);
            # no windowed-slice relayout copies are materialized.
            acc = jnp.zeros((HW, CP), jnp.float32)
            for dy in range(3):
                for dx in range(3):
                    lhs = lb_ref[pl.ds(OFF - 1 + dy * W + dx, HW), :]
                    if dx == 0:
                        lhs = jnp.where(kill_w_first, 0.0, lhs)
                    elif dx == 2:
                        lhs = jnp.where(kill_w_last, 0.0, lhs)
                    acc = acc + jnp.dot(lhs.astype(jnp.bfloat16),
                                        w_ref[dy * 3 + dx],
                                        preferred_element_type=jnp.float32)
            return acc + b_ref[...]

        # ----- stem: conv3x3 + BN + ReLU ------------------------------------
        # The three dx taps were pre-packed on the lane axis on the host, so
        # the stem is just 3 dense, fully aligned bf16 dots.
        acc0 = jnp.zeros((HW, CP), jnp.float32)
        for dy in range(3):
            acc0 = acc0 + jnp.dot(xstem_ref[pl.ds(dy * W, HW), :], ws_ref[dy],
                                  preferred_element_type=jnp.float32)
        y0 = jnp.maximum(acc0 + b0_ref[...], 0.0)
        skip_ref[...] = y0             # residual kept in a flat f32 scratch

        # ----- residual block conv1: conv3x3 + BN + ReLU --------------------
        lb_ref[pl.ds(OFF + W, HW), :] = y0   # single aligned staging store
        y1 = jnp.maximum(conv3x3(w1_ref, b1_ref), 0.0)

        # ----- residual block conv2: conv3x3 + BN, + skip, ReLU -------------
        lb_ref[pl.ds(OFF + W, HW), :] = y1
        y2 = conv3x3(w2_ref, b2_ref) + skip_ref[...]
        o_ref[...] = jnp.maximum(y2, 0.0)    # lane-dense (HW, 128) slab

    return kernel


def _run_fused_backbone(x_stem, params, H, W):
    N, HPW, K_STEM = x_stem.shape
    HW = H * W
    kernel = _make_fused_backbone_kernel(H, W)
    return pl.pallas_call(
        kernel,
        out_shape=jax.ShapeDtypeStruct((N, HW, CP), jnp.float32),
        grid_spec=pltpu.PrefetchScalarGridSpec(
            num_scalar_prefetch=0,
            # One image per grid step: with N=2 both megacore TensorCores stay
            # fed.  For larger N a B_TILE>1 batch block would amortize the
            # per-step overhead further.
            grid=(N,),
            in_specs=[
                pl.BlockSpec((None, HPW, K_STEM), lambda n: (n, 0, 0)),
                # Weights / biases are grid-invariant (constant index_map) so
                # they are fetched once and stay resident.  (pl.Buffered(1) or
                # a manual single copy would shave their second pipeline
                # buffer if VMEM ever got tight at larger configs.)
                pl.BlockSpec((3, K_STEM, CP), lambda n: (0, 0, 0)),
                pl.BlockSpec((1, CP), lambda n: (0, 0)),
                pl.BlockSpec((9, CP, CP), lambda n: (0, 0, 0)),
                pl.BlockSpec((1, CP), lambda n: (0, 0)),
                pl.BlockSpec((9, CP, CP), lambda n: (0, 0, 0)),
                pl.BlockSpec((1, CP), lambda n: (0, 0)),
            ],
            out_specs=pl.BlockSpec((None, HW, CP), lambda n: (n, 0, 0)),
            scratch_shapes=[
                pltpu.VMEM((_lb_rows(H, W), CP), jnp.float32),  # line buffer
                pltpu.VMEM((HW, CP), jnp.float32),              # residual skip
            ],
        ),
        compiler_params=pltpu.CompilerParams(
            dimension_semantics=("parallel",),
            vmem_limit_bytes=32 * 1024 * 1024,
        ),
    )(x_stem, params["stem_w"], params["stem_b"],
      params["w1"], params["b1"], params["w2"], params["b2"])


# ---------------------------------------------------------------------------
# Deterministic parameter construction (conv weight + inference-mode BN fold),
# packed / padded / bf16-cast for the kernel.
# ---------------------------------------------------------------------------
def _make_conv_bn(key, cin, cout, eps=1e-5):
    kw, kg, kb, km, kv = jax.random.split(key, 5)
    w = jax.random.normal(kw, (cout, cin, 3, 3), jnp.float32) / np.sqrt(cin * 9)
    gamma = jax.random.uniform(kg, (cout,), jnp.float32, 0.5, 1.5)
    beta = 0.1 * jax.random.normal(kb, (cout,), jnp.float32)
    mean = 0.1 * jax.random.normal(km, (cout,), jnp.float32)
    var = jax.random.uniform(kv, (cout,), jnp.float32, 0.5, 1.5)
    scale = gamma / jnp.sqrt(var + eps)
    w_fold = w * scale[:, None, None, None]          # (Cout, Cin, 3, 3)
    b_fold = beta - mean * scale                     # (Cout,)
    return w_fold, b_fold


def _pad_bias(b):
    return jnp.pad(b, (0, CP - b.shape[0])).reshape(1, CP)


def _pack_taps(w_fold, cin_pad):
    # (Cout, Cin, 3, 3) -> (9, cin_pad, CP) bf16, tap index = dy*3 + dx
    cout, cin = w_fold.shape[:2]
    wt = jnp.transpose(w_fold, (2, 3, 1, 0))                       # dy,dx,ci,co
    wt = jnp.pad(wt, ((0, 0), (0, 0), (0, cin_pad - cin), (0, CP - cout)))
    return wt.reshape(9, cin_pad, CP).astype(jnp.bfloat16)


def _pack_stem(w_fold):
    # (Cout, Cin, 3, 3) -> (3, 3*C_IN_PAD, CP) bf16:
    #   w_stem[dy, dx*C_IN_PAD + c, co] == w_fold[co, c, dy, dx]
    cout, cin = w_fold.shape[:2]
    wt = jnp.transpose(w_fold, (2, 3, 1, 0))                       # dy,dx,c,co
    wt = jnp.pad(wt, ((0, 0), (0, 0), (0, C_IN_PAD - cin), (0, CP - cout)))
    return wt.reshape(3, 3 * C_IN_PAD, CP).astype(jnp.bfloat16)


def init_backbone_params(key):
    k0, k1, k2 = jax.random.split(key, 3)
    w0, b0 = _make_conv_bn(k0, C_IN, C_MID)
    w1, b1 = _make_conv_bn(k1, C_MID, C_MID)
    w2, b2 = _make_conv_bn(k2, C_MID, C_MID)
    return {
        "stem_w": _pack_stem(w0), "stem_b": _pad_bias(b0),
        "w1": _pack_taps(w1, CP), "b1": _pad_bias(b1),
        "w2": _pack_taps(w2, CP), "b2": _pad_bias(b2),
        # unfolded f32 copies, used only by the pure-JAX reference
        "ref": {"w0": w0, "b0": b0, "w1": w1, "b1": b1, "w2": w2, "b2": b2},
    }


# ---------------------------------------------------------------------------
# BackBone.forward == net.forward_features(x)   (NCHW in, NCHW feature map out)
# ---------------------------------------------------------------------------
def backbone_forward_features(x_nchw, params):
    N, C, H, W = x_nchw.shape                  # static Python ints under jit
    x = jnp.transpose(x_nchw, (0, 2, 3, 1)).astype(jnp.float32)     # NHWC
    # One-time SAME spatial pad + channel pad (static pad widths).
    xp = jnp.pad(x, ((0, 0), (1, 1), (1, 1), (0, C_IN_PAD - C)))
    # Pre-pack the three dx-shifted stem taps along the lane axis:
    #   x_stem[n, i*W + w, dx*C_IN_PAD + c] == xp[n, i, w + dx, c]
    x_stem = jnp.concatenate([xp[:, :, dx:dx + W, :] for dx in range(3)],
                             axis=-1)
    x_stem = x_stem.reshape(N, (H + 2) * W, 3 * C_IN_PAD).astype(jnp.bfloat16)
    out = _run_fused_backbone(x_stem, params, H, W)       # (N, H*W, 128) f32
    feat = out.reshape(N, H, W, CP)[..., :C_MID]          # drop channel pad
    return jnp.transpose(feat, (0, 3, 1, 2))              # NHWC -> NCHW


backbone_forward_features_jit = jax.jit(backbone_forward_features)


# ---------------------------------------------------------------------------
# Pure-JAX reference (for correctness check)
# ---------------------------------------------------------------------------
def _ref_forward(x_nchw, params):
    r = params["ref"]

    def conv(x, w, b, residual=None):
        y = jax.lax.conv_general_dilated(
            x, jnp.transpose(w, (2, 3, 1, 0)), (1, 1), "SAME",
            dimension_numbers=("NHWC", "HWIO", "NHWC"))
        y = y + b
        if residual is not None:
            y = y + residual
        return jnp.maximum(y, 0.0)

    x = jnp.transpose(x_nchw, (0, 2, 3, 1)).astype(jnp.float32)
    x = conv(x, r["w0"], r["b0"])
    skip = x
    x = conv(x, r["w1"], r["b1"])
    x = conv(x, r["w2"], r["b2"], residual=skip)
    return jnp.transpose(x, (0, 3, 1, 2))


if __name__ == "__main__":
    key = jax.random.PRNGKey(0)
    k_x, k_p = jax.random.split(key)

    N, H, W = 2, 16, 16
    x = jax.random.normal(k_x, (N, C_IN, H, W), jnp.float32)
    params = init_backbone_params(k_p)

    out = jax.block_until_ready(backbone_forward_features_jit(x, params))
    ref = jax.block_until_ready(_ref_forward(x, params))

    assert out.shape == (N, C_MID, H, W), out.shape
    # bf16 MXU operands -> loosened tolerance vs the f32 reference.
    np.testing.assert_allclose(np.asarray(out), np.asarray(ref),
                               rtol=3e-2, atol=3e-2)
    print("KERNEL_OK")
</pallas_src>

<mosaic_0001>
module attributes {stable_mosaic.version = 11 : i64} {
  func.func @kernel(%arg0: i32, %arg1: memref<1x288x24xbf16, #tpu.memory_space<vmem>>, %arg2: memref<3x24x128xbf16, #tpu.memory_space<vmem>>, %arg3: memref<1x128xf32, #tpu.memory_space<vmem>>, %arg4: memref<9x128x128xbf16, #tpu.memory_space<vmem>>, %arg5: memref<1x128xf32, #tpu.memory_space<vmem>>, %arg6: memref<9x128x128xbf16, #tpu.memory_space<vmem>>, %arg7: memref<1x128xf32, #tpu.memory_space<vmem>>, %arg8: memref<1x256x128xf32, #tpu.memory_space<vmem>>, %arg9: memref<304x128xf32, #tpu.memory_space<vmem>>, %arg10: memref<256x128xf32, #tpu.memory_space<vmem>>) attributes {dimension_semantics = [#tpu.dimension_semantics<parallel>], iteration_bounds = array<i64: 2>, scalar_prefetch = 0 : i64, scratch_operands = 2 : i64, tpu.core_type = #tpu.core_type<tc>, window_params = [{transform_indices = @transform_0, window_bounds = array<i64: 1, 288, 24>}, {pipeline_mode = #tpu.pipeline_mode<synchronous>, transform_indices = @transform_1, window_bounds = array<i64: 3, 24, 128>}, {pipeline_mode = #tpu.pipeline_mode<synchronous>, transform_indices = @transform_2, window_bounds = array<i64: 1, 128>}, {pipeline_mode = #tpu.pipeline_mode<synchronous>, transform_indices = @transform_3, window_bounds = array<i64: 9, 128, 128>}, {pipeline_mode = #tpu.pipeline_mode<synchronous>, transform_indices = @transform_4, window_bounds = array<i64: 1, 128>}, {pipeline_mode = #tpu.pipeline_mode<synchronous>, transform_indices = @transform_5, window_bounds = array<i64: 9, 128, 128>}, {pipeline_mode = #tpu.pipeline_mode<synchronous>, transform_indices = @transform_6, window_bounds = array<i64: 1, 128>}, {transform_indices = @transform_7, window_bounds = array<i64: 1, 256, 128>}]} {
    %cst = arith.constant 0.000000e+00 : f32
    %0 = vector.broadcast %cst : f32 to vector<24x128xf32>
    %c0 = arith.constant 0 : index
    %c0_0 = arith.constant 0 : index
    %1 = vector.load %arg9[%c0, %c0_0] : memref<304x128xf32, #tpu.memory_space<vmem>>, vector<24x128xf32>
    tpu.vector_store %arg9[%c0, %c0_0], %0 {strides = array<i32>} : memref<304x128xf32, #tpu.memory_space<vmem>>, vector<24x128xf32>,
    %cst_1 = arith.constant 0.000000e+00 : f32
    %2 = vector.broadcast %cst_1 : f32 to vector<24x128xf32>
    %c280 = arith.constant 280 : index
    %c0_2 = arith.constant 0 : index
    %3 = vector.load %arg9[%c280, %c0_2] : memref<304x128xf32, #tpu.memory_space<vmem>>, vector<24x128xf32>
    tpu.vector_store %arg9[%c280, %c0_2], %2 {strides = array<i32>} : memref<304x128xf32, #tpu.memory_space<vmem>>, vector<24x128xf32>,
    %4 = tpu.iota {dimensions = array<i32: 0>} : vector<256x128xi32>
    %c16_i32 = arith.constant 16 : i32
    %c0_i32 = arith.constant 0 : i32
    %5 = arith.cmpi eq, %c16_i32, %c0_i32 : i32
    %c1_i32 = arith.constant 1 : i32
    %6 = arith.select %5, %c1_i32, %c16_i32 : i32
    %7 = vector.broadcast %6 : i32 to vector<256x128xi32>
    %8 = arith.remsi %4, %7 : vector<256x128xi32>
    %c0_i32_3 = arith.constant 0 : i32
    %9 = vector.broadcast %c0_i32_3 : i32 to vector<256x128xi32>
    %10 = arith.cmpi ne, %8, %9 : vector<256x128xi32>
    %c0_i32_4 = arith.constant 0 : i32
    %11 = vector.broadcast %c0_i32_4 : i32 to vector<256x128xi32>
    %12 = arith.cmpi slt, %8, %11 : vector<256x128xi32>
    %c0_i32_5 = arith.constant 0 : i32
    %13 = arith.cmpi slt, %6, %c0_i32_5 : i32
    %14 = vector.broadcast %13 : i1 to vector<256x128xi1>
    %15 = vector.broadcast %14 : vector<256x128xi1> to vector<256x128xi1>
    %16 = arith.xori %12, %15 : vector<256x128xi1>
    %17 = arith.andi %16, %10 : vector<256x128xi1>
    %18 = vector.broadcast %6 : i32 to vector<256x128xi32>
    %19 = arith.addi %8, %18 : vector<256x128xi32>
    %20 = arith.select %17, %19, %8 : vector<256x128xi1>, vector<256x128xi32>
    %c0_i32_6 = arith.constant 0 : i32
    %21 = vector.broadcast %c0_i32_6 : i32 to vector<256x128xi32>
    %22 = arith.cmpi eq, %20, %21 : vector<256x128xi32>
    %c15_i32 = arith.constant 15 : i32
    %23 = vector.broadcast %c15_i32 : i32 to vector<256x128xi32>
    %24 = arith.cmpi eq, %20, %23 : vector<256x128xi32>
    %cst_7 = arith.constant 0.000000e+00 : f32
    %25 = vector.broadcast %cst_7 : f32 to vector<256x128xf32>
    %c0_8 = arith.constant 0 : index
    %c0_9 = arith.constant 0 : index
    %c0_10 = arith.constant 0 : index
    %26 = vector.load %arg1[%c0_8, %c0_9, %c0_10] : memref<1x288x24xbf16, #tpu.memory_space<vmem>>, vector<1x256x24xbf16>
    %27 = vector.shape_cast %26 : vector<1x256x24xbf16> to vector<256x24xbf16>
    %c0_11 = arith.constant 0 : index
    %c0_12 = arith.constant 0 : index
    %c0_13 = arith.constant 0 : index
    %28 = vector.load %arg2[%c0_11, %c0_12, %c0_13] : memref<3x24x128xbf16, #tpu.memory_space<vmem>>, vector<1x24x128xbf16>
    %29 = vector.shape_cast %28 : vector<1x24x128xbf16> to vector<24x128xbf16>
    %cst_14 = arith.constant dense<0.000000e+00> : vector<256x128xf32>
    %30 = tpu.matmul %27, %29, %cst_14 {dimension_numbers = #tpu.dot_dimension_numbers<[1], [0], [0], [1], [0, 0, 1, 1], [], []>} : vector<256x24xbf16>, vector<24x128xbf16>, vector<256x128xf32> -> vector<256x128xf32>
    %31 = arith.addf %25, %30 : vector<256x128xf32>
    %c0_15 = arith.constant 0 : index
    %c16 = arith.constant 16 : index
    %c0_16 = arith.constant 0 : index
    %32 = vector.load %arg1[%c0_15, %c16, %c0_16] : memref<1x288x24xbf16, #tpu.memory_space<vmem>>, vector<1x256x24xbf16>
    %33 = vector.shape_cast %32 : vector<1x256x24xbf16> to vector<256x24xbf16>
    %c1 = arith.constant 1 : index
    %c0_17 = arith.constant 0 : index
    %c0_18 = arith.constant 0 : index
    %34 = vector.load %arg2[%c1, %c0_17, %c0_18] : memref<3x24x128xbf16, #tpu.memory_space<vmem>>, vector<1x24x128xbf16>
    %35 = vector.shape_cast %34 : vector<1x24x128xbf16> to vector<24x128xbf16>
    %cst_19 = arith.constant dense<0.000000e+00> : vector<256x128xf32>
    %36 = tpu.matmul %33, %35, %cst_19 {dimension_numbers = #tpu.dot_dimension_numbers<[1], [0], [0], [1], [0, 0, 1, 1], [], []>} : vector<256x24xbf16>, vector<24x128xbf16>, vector<256x128xf32> -> vector<256x128xf32>
    %37 = arith.addf %31, %36 : vector<256x128xf32>
    %c0_20 = arith.constant 0 : index
    %c32 = arith.constant 32 : index
    %c0_21 = arith.constant 0 : index
    %38 = vector.load %arg1[%c0_20, %c32, %c0_21] : memref<1x288x24xbf16, #tpu.memory_space<vmem>>, vector<1x256x24xbf16>
    %39 = vector.shape_cast %38 : vector<1x256x24xbf16> to vector<256x24xbf16>
    %c2 = arith.constant 2 : index
    %c0_22 = arith.constant 0 : index
    %c0_23 = arith.constant 0 : index
    %40 = vector.load %arg2[%c2, %c0_22, %c0_23] : memref<3x24x128xbf16, #tpu.memory_space<vmem>>, vector<1x24x128xbf16>
    %41 = vector.shape_cast %40 : vector<1x24x128xbf16> to vector<24x128xbf16>
    %cst_24 = arith.constant dense<0.000000e+00> : vector<256x128xf32>
    %42 = tpu.matmul %39, %41, %cst_24 {dimension_numbers = #tpu.dot_dimension_numbers<[1], [0], [0], [1], [0, 0, 1, 1], [], []>} : vector<256x24xbf16>, vector<24x128xbf16>, vector<256x128xf32> -> vector<256x128xf32>
    %43 = arith.addf %37, %42 : vector<256x128xf32>
    %c0_25 = arith.constant 0 : index
    %c0_26 = arith.constant 0 : index
    %44 = vector.load %arg3[%c0_25, %c0_26] : memref<1x128xf32, #tpu.memory_space<vmem>>, vector<1x128xf32>
    %45 = vector.broadcast %44 : vector<1x128xf32> to vector<256x128xf32>
    %46 = arith.addf %43, %45 : vector<256x128xf32>
    %cst_27 = arith.constant 0.000000e+00 : f32
    %47 = vector.broadcast %cst_27 : f32 to vector<256x128xf32>
    %48 = arith.maximumf %46, %47 : vector<256x128xf32>
    %c0_28 = arith.constant 0 : index
    %c0_29 = arith.constant 0 : index
    %49 = vector.load %arg10[%c0_28, %c0_29] : memref<256x128xf32, #tpu.memory_space<vmem>>, vector<256x128xf32>
    tpu.vector_store %arg10[%c0_28, %c0_29], %48 {strides = array<i32>} : memref<256x128xf32, #tpu.memory_space<vmem>>, vector<256x128xf32>,
    %c24 = arith.constant 24 : index
    %c0_30 = arith.constant 0 : index
    %50 = vector.load %arg9[%c24, %c0_30] : memref<304x128xf32, #tpu.memory_space<vmem>>, vector<256x128xf32>
    tpu.vector_store %arg9[%c24, %c0_30], %48 {strides = array<i32>} : memref<304x128xf32, #tpu.memory_space<vmem>>, vector<256x128xf32>,
    %cst_31 = arith.constant 0.000000e+00 : f32
    %51 = vector.broadcast %cst_31 : f32 to vector<256x128xf32>
    %c7 = arith.constant 7 : index
    %c0_32 = arith.constant 0 : index
    %52 = vector.load %arg9[%c7, %c0_32] : memref<304x128xf32, #tpu.memory_space<vmem>>, vector<256x128xf32>
    %cst_33 = arith.constant 0.000000e+00 : f32
    %53 = vector.broadcast %cst_33 : f32 to vector<256x128xf32>
    %54 = arith.select %22, %53, %52 : vector<256x128xi1>, vector<256x128xf32>
    %55 = arith.truncf %54 : vector<256x128xf32> to vector<256x128xbf16>
    %c0_34 = arith.constant 0 : index
    %c0_35 = arith.constant 0 : index
    %c0_36 = arith.constant 0 : index
    %56 = vector.load %arg4[%c0_34, %c0_35, %c0_36] : memref<9x128x128xbf16, #tpu.memory_space<vmem>>, vector<1x128x128xbf16>
    %57 = vector.shape_cast %56 : vector<1x128x128xbf16> to vector<128x128xbf16>
    %cst_37 = arith.constant dense<0.000000e+00> : vector<256x128xf32>
    %58 = tpu.matmul %55, %57, %cst_37 {dimension_numbers = #tpu.dot_dimension_numbers<[1], [0], [0], [1], [0, 0, 1, 1], [], []>} : vector<256x128xbf16>, vector<128x128xbf16>, vector<256x128xf32> -> vector<256x128xf32>
    %59 = arith.addf %51, %58 : vector<256x128xf32>
    %c8 = arith.constant 8 : index
    %c0_38 = arith.constant 0 : index
    %60 = vector.load %arg9[%c8, %c0_38] : memref<304x128xf32, #tpu.memory_space<vmem>>, vector<256x128xf32>
    %61 = arith.truncf %60 : vector<256x128xf32> to vector<256x128xbf16>
    %c1_39 = arith.constant 1 : index
    %c0_40 = arith.constant 0 : index
    %c0_41 = arith.constant 0 : index
    %62 = vector.load %arg4[%c1_39, %c0_40, %c0_41] : memref<9x128x128xbf16, #tpu.memory_space<vmem>>, vector<1x128x128xbf16>
    %63 = vector.shape_cast %62 : vector<1x128x128xbf16> to vector<128x128xbf16>
    %cst_42 = arith.constant dense<0.000000e+00> : vector<256x128xf32>
    %64 = tpu.matmul %61, %63, %cst_42 {dimension_numbers = #tpu.dot_dimension_numbers<[1], [0], [0], [1], [0, 0, 1, 1], [], []>} : vector<256x128xbf16>, vector<128x128xbf16>, vector<256x128xf32> -> vector<256x128xf32>
    %65 = arith.addf %59, %64 : vector<256x128xf32>
    %c9 = arith.constant 9 : index
    %c0_43 = arith.constant 0 : index
    %66 = vector.load %arg9[%c9, %c0_43] : memref<304x128xf32, #tpu.memory_space<vmem>>, vector<256x128xf32>
    %cst_44 = arith.constant 0.000000e+00 : f32
    %67 = vector.broadcast %cst_44 : f32 to vector<256x128xf32>
    %68 = arith.select %24, %67, %66 : vector<256x128xi1>, vector<256x128xf32>
    %69 = arith.truncf %68 : vector<256x128xf32> to vector<256x128xbf16>
    %c2_45 = arith.constant 2 : index
    %c0_46 = arith.constant 0 : index
    %c0_47 = arith.constant 0 : index
    %70 = vector.load %arg4[%c2_45, %c0_46, %c0_47] : memref<9x128x128xbf16, #tpu.memory_space<vmem>>, vector<1x128x128xbf16>
    %71 = vector.shape_cast %70 : vector<1x128x128xbf16> to vector<128x128xbf16>
    %cst_48 = arith.constant dense<0.000000e+00> : vector<256x128xf32>
    %72 = tpu.matmul %69, %71, %cst_48 {dimension_numbers = #tpu.dot_dimension_numbers<[1], [0], [0], [1], [0, 0, 1, 1], [], []>} : vector<256x128xbf16>, vector<128x128xbf16>, vector<256x128xf32> -> vector<256x128xf32>
    %73 = arith.addf %65, %72 : vector<256x128xf32>
    %c23 = arith.constant 23 : index
    %c0_49 = arith.constant 0 : index
    %74 = vector.load %arg9[%c23, %c0_49] : memref<304x128xf32, #tpu.memory_space<vmem>>, vector<256x128xf32>
    %cst_50 = arith.constant 0.000000e+00 : f32
    %75 = vector.broadcast %cst_50 : f32 to vector<256x128xf32>
    %76 = arith.select %22, %75, %74 : vector<256x128xi1>, vector<256x128xf32>
    %77 = arith.truncf %76 : vector<256x128xf32> to vector<256x128xbf16>
    %c3 = arith.constant 3 : index
    %c0_51 = arith.constant 0 : index
    %c0_52 = arith.constant 0 : index
    %78 = vector.load %arg4[%c3, %c0_51, %c0_52] : memref<9x128x128xbf16, #tpu.memory_space<vmem>>, vector<1x128x128xbf16>
    %79 = vector.shape_cast %78 : vector<1x128x128xbf16> to vector<128x128xbf16>
    %cst_53 = arith.constant dense<0.000000e+00> : vector<256x128xf32>
    %80 = tpu.matmul %77, %79, %cst_53 {dimension_numbers = #tpu.dot_dimension_numbers<[1], [0], [0], [1], [0, 0, 1, 1], [], []>} : vector<256x128xbf16>, vector<128x128xbf16>, vector<256x128xf32> -> vector<256x128xf32>
    %81 = arith.addf %73, %80 : vector<256x128xf32>
    %c24_54 = arith.constant 24 : index
    %c0_55 = arith.constant 0 : index
    %82 = vector.load %arg9[%c24_54, %c0_55] : memref<304x128xf32, #tpu.memory_space<vmem>>, vector<256x128xf32>
    %83 = arith.truncf %82 : vector<256x128xf32> to vector<256x128xbf16>
    %c4 = arith.constant 4 : index
    %c0_56 = arith.constant 0 : index
    %c0_57 = arith.constant 0 : index
    %84 = vector.load %arg4[%c4, %c0_56, %c0_57] : memref<9x128x128xbf16, #tpu.memory_space<vmem>>, vector<1x128x128xbf16>
    %85 = vector.shape_cast %84 : vector<1x128x128xbf16> to vector<128x128xbf16>
    %cst_58 = arith.constant dense<0.000000e+00> : vector<256x128xf32>
    %86 = tpu.matmul %83, %85, %cst_58 {dimension_numbers = #tpu.dot_dimension_numbers<[1], [0], [0], [1], [0, 0, 1, 1], [], []>} : vector<256x128xbf16>, vector<128x128xbf16>, vector<256x128xf32> -> vector<256x128xf32>
    %87 = arith.addf %81, %86 : vector<256x128xf32>
    %c25 = arith.constant 25 : index
    %c0_59 = arith.constant 0 : index
    %88 = vector.load %arg9[%c25, %c0_59] : memref<304x128xf32, #tpu.memory_space<vmem>>, vector<256x128xf32>
    %cst_60 = arith.constant 0.000000e+00 : f32
    %89 = vector.broadcast %cst_60 : f32 to vector<256x128xf32>
    %90 = arith.select %24, %89, %88 : vector<256x128xi1>, vector<256x128xf32>
    %91 = arith.truncf %90 : vector<256x128xf32> to vector<256x128xbf16>
    %c5 = arith.constant 5 : index
    %c0_61 = arith.constant 0 : index
    %c0_62 = arith.constant 0 : index
    %92 = vector.load %arg4[%c5, %c0_61, %c0_62] : memref<9x128x128xbf16, #tpu.memory_space<vmem>>, vector<1x128x128xbf16>
    %93 = vector.shape_cast %92 : vector<1x128x128xbf16> to vector<128x128xbf16>
    %cst_63 = arith.constant dense<0.000000e+00> : vector<256x128xf32>
    %94 = tpu.matmul %91, %93, %cst_63 {dimension_numbers = #tpu.dot_dimension_numbers<[1], [0], [0], [1], [0, 0, 1, 1], [], []>} : vector<256x128xbf16>, vector<128x128xbf16>, vector<256x128xf32> -> vector<256x128xf32>
    %95 = arith.addf %87, %94 : vector<256x128xf32>
    %c39 = arith.constant 39 : index
    %c0_64 = arith.constant 0 : index
    %96 = vector.load %arg9[%c39, %c0_64] : memref<304x128xf32, #tpu.memory_space<vmem>>, vector<256x128xf32>
    %cst_65 = arith.constant 0.000000e+00 : f32
    %97 = vector.broadcast %cst_65 : f32 to vector<256x128xf32>
    %98 = arith.select %22, %97, %96 : vector<256x128xi1>, vector<256x128xf32>
    %99 = arith.truncf %98 : vector<256x128xf32> to vector<256x128xbf16>
    %c6 = arith.constant 6 : index
    %c0_66 = arith.constant 0 : index
    %c0_67 = arith.constant 0 : index
    %100 = vector.load %arg4[%c6, %c0_66, %c0_67] : memref<9x128x128xbf16, #tpu.memory_space<vmem>>, vector<1x128x128xbf16>
    %101 = vector.shape_cast %100 : vector<1x128x128xbf16> to vector<128x128xbf16>
    %cst_68 = arith.constant dense<0.000000e+00> : vector<256x128xf32>
    %102 = tpu.matmul %99, %101, %cst_68 {dimension_numbers = #tpu.dot_dimension_numbers<[1], [0], [0], [1], [0, 0, 1, 1], [], []>} : vector<256x128xbf16>, vector<128x128xbf16>, vector<256x128xf32> -> vector<256x128xf32>
    %103 = arith.addf %95, %102 : vector<256x128xf32>
    %c40 = arith.constant 40 : index
    %c0_69 = arith.constant 0 : index
    %104 = vector.load %arg9[%c40, %c0_69] : memref<304x128xf32, #tpu.memory_space<vmem>>, vector<256x128xf32>
    %105 = arith.truncf %104 : vector<256x128xf32> to vector<256x128xbf16>
    %c7_70 = arith.constant 7 : index
    %c0_71 = arith.constant 0 : index
    %c0_72 = arith.constant 0 : index
    %106 = vector.load %arg4[%c7_70, %c0_71, %c0_72] : memref<9x128x128xbf16, #tpu.memory_space<vmem>>, vector<1x128x128xbf16>
    %107 = vector.shape_cast %106 : vector<1x128x128xbf16> to vector<128x128xbf16>
    %cst_73 = arith.constant dense<0.000000e+00> : vector<256x128xf32>
    %108 = tpu.matmul %105, %107, %cst_73 {dimension_numbers = #tpu.dot_dimension_numbers<[1], [0], [0], [1], [0, 0, 1, 1], [], []>} : vector<256x128xbf16>, vector<128x128xbf16>, vector<256x128xf32> -> vector<256x128xf32>
    %109 = arith.addf %103, %108 : vector<256x128xf32>
    %c41 = arith.constant 41 : index
    %c0_74 = arith.constant 0 : index
    %110 = vector.load %arg9[%c41, %c0_74] : memref<304x128xf32, #tpu.memory_space<vmem>>, vector<256x128xf32>
    %cst_75 = arith.constant 0.000000e+00 : f32
    %111 = vector.broadcast %cst_75 : f32 to vector<256x128xf32>
    %112 = arith.select %24, %111, %110 : vector<256x128xi1>, vector<256x128xf32>
    %113 = arith.truncf %112 : vector<256x128xf32> to vector<256x128xbf16>
    %c8_76 = arith.constant 8 : index
    %c0_77 = arith.constant 0 : index
    %c0_78 = arith.constant 0 : index
    %114 = vector.load %arg4[%c8_76, %c0_77, %c0_78] : memref<9x128x128xbf16, #tpu.memory_space<vmem>>, vector<1x128x128xbf16>
    %115 = vector.shape_cast %114 : vector<1x128x128xbf16> to vector<128x128xbf16>
    %cst_79 = arith.constant dense<0.000000e+00> : vector<256x128xf32>
    %116 = tpu.matmul %113, %115, %cst_79 {dimension_numbers = #tpu.dot_dimension_numbers<[1], [0], [0], [1], [0, 0, 1, 1], [], []>} : vector<256x128xbf16>, vector<128x128xbf16>, vector<256x128xf32> -> vector<256x128xf32>
    %117 = arith.addf %109, %116 : vector<256x128xf32>
    %c0_80 = arith.constant 0 : index
    %c0_81 = arith.constant 0 : index
    %118 = vector.load %arg5[%c0_80, %c0_81] : memref<1x128xf32, #tpu.memory_space<vmem>>, vector<1x128xf32>
    %119 = vector.broadcast %118 : vector<1x128xf32> to vector<256x128xf32>
    %120 = arith.addf %117, %119 : vector<256x128xf32>
    %cst_82 = arith.constant 0.000000e+00 : f32
    %121 = vector.broadcast %cst_82 : f32 to vector<256x128xf32>
    %122 = arith.maximumf %120, %121 : vector<256x128xf32>
    %c24_83 = arith.constant 24 : index
    %c0_84 = arith.constant 0 : index
    %123 = vector.load %arg9[%c24_83, %c0_84] : memref<304x128xf32, #tpu.memory_space<vmem>>, vector<256x128xf32>
    tpu.vector_store %arg9[%c24_83, %c0_84], %122 {strides = array<i32>} : memref<304x128xf32, #tpu.memory_space<vmem>>, vector<256x128xf32>,
    %cst_85 = arith.constant 0.000000e+00 : f32
    %124 = vector.broadcast %cst_85 : f32 to vector<256x128xf32>
    %c7_86 = arith.constant 7 : index
    %c0_87 = arith.constant 0 : index
    %125 = vector.load %arg9[%c7_86, %c0_87] : memref<304x128xf32, #tpu.memory_space<vmem>>, vector<256x128xf32>
    %cst_88 = arith.constant 0.000000e+00 : f32
    %126 = vector.broadcast %cst_88 : f32 to vector<256x128xf32>
    %127 = arith.select %22, %126, %125 : vector<256x128xi1>, vector<256x128xf32>
    %128 = arith.truncf %127 : vector<256x128xf32> to vector<256x128xbf16>
    %c0_89 = arith.constant 0 : index
    %c0_90 = arith.constant 0 : index
    %c0_91 = arith.constant 0 : index
    %129 = vector.load %arg6[%c0_89, %c0_90, %c0_91] : memref<9x128x128xbf16, #tpu.memory_space<vmem>>, vector<1x128x128xbf16>
    %130 = vector.shape_cast %129 : vector<1x128x128xbf16> to vector<128x128xbf16>
    %cst_92 = arith.constant dense<0.000000e+00> : vector<256x128xf32>
    %131 = tpu.matmul %128, %130, %cst_92 {dimension_numbers = #tpu.dot_dimension_numbers<[1], [0], [0], [1], [0, 0, 1, 1], [], []>} : vector<256x128xbf16>, vector<128x128xbf16>, vector<256x128xf32> -> vector<256x128xf32>
    %132 = arith.addf %124, %131 : vector<256x128xf32>
    %c8_93 = arith.constant 8 : index
    %c0_94 = arith.constant 0 : index
    %133 = vector.load %arg9[%c8_93, %c0_94] : memref<304x128xf32, #tpu.memory_space<vmem>>, vector<256x128xf32>
    %134 = arith.truncf %133 : vector<256x128xf32> to vector<256x128xbf16>
    %c1_95 = arith.constant 1 : index
    %c0_96 = arith.constant 0 : index
    %c0_97 = arith.constant 0 : index
    %135 = vector.load %arg6[%c1_95, %c0_96, %c0_97] : memref<9x128x128xbf16, #tpu.memory_space<vmem>>, vector<1x128x128xbf16>
    %136 = vector.shape_cast %135 : vector<1x128x128xbf16> to vector<128x128xbf16>
    %cst_98 = arith.constant dense<0.000000e+00> : vector<256x128xf32>
    %137 = tpu.matmul %134, %136, %cst_98 {dimension_numbers = #tpu.dot_dimension_numbers<[1], [0], [0], [1], [0, 0, 1, 1], [], []>} : vector<256x128xbf16>, vector<128x128xbf16>, vector<256x128xf32> -> vector<256x128xf32>
    %138 = arith.addf %132, %137 : vector<256x128xf32>
    %c9_99 = arith.constant 9 : index
    %c0_100 = arith.constant 0 : index
    %139 = vector.load %arg9[%c9_99, %c0_100] : memref<304x128xf32, #tpu.memory_space<vmem>>, vector<256x128xf32>
    %cst_101 = arith.constant 0.000000e+00 : f32
    %140 = vector.broadcast %cst_101 : f32 to vector<256x128xf32>
    %141 = arith.select %24, %140, %139 : vector<256x128xi1>, vector<256x128xf32>
    %142 = arith.truncf %141 : vector<256x128xf32> to vector<256x128xbf16>
    %c2_102 = arith.constant 2 : index
    %c0_103 = arith.constant 0 : index
    %c0_104 = arith.constant 0 : index
    %143 = vector.load %arg6[%c2_102, %c0_103, %c0_104] : memref<9x128x128xbf16, #tpu.memory_space<vmem>>, vector<1x128x128xbf16>
    %144 = vector.shape_cast %143 : vector<1x128x128xbf16> to vector<128x128xbf16>
    %cst_105 = arith.constant dense<0.000000e+00> : vector<256x128xf32>
    %145 = tpu.matmul %142, %144, %cst_105 {dimension_numbers = #tpu.dot_dimension_numbers<[1], [0], [0], [1], [0, 0, 1, 1], [], []>} : vector<256x128xbf16>, vector<128x128xbf16>, vector<256x128xf32> -> vector<256x128xf32>
    %146 = arith.addf %138, %145 : vector<256x128xf32>
    %c23_106 = arith.constant 23 : index
    %c0_107 = arith.constant 0 : index
    %147 = vector.load %arg9[%c23_106, %c0_107] : memref<304x128xf32, #tpu.memory_space<vmem>>, vector<256x128xf32>
    %cst_108 = arith.constant 0.000000e+00 : f32
    %148 = vector.broadcast %cst_108 : f32 to vector<256x128xf32>
    %149 = arith.select %22, %148, %147 : vector<256x128xi1>, vector<256x128xf32>
    %150 = arith.truncf %149 : vector<256x128xf32> to vector<256x128xbf16>
    %c3_109 = arith.constant 3 : index
    %c0_110 = arith.constant 0 : index
    %c0_111 = arith.constant 0 : index
    %151 = vector.load %arg6[%c3_109, %c0_110, %c0_111] : memref<9x128x128xbf16, #tpu.memory_space<vmem>>, vector<1x128x128xbf16>
    %152 = vector.shape_cast %151 : vector<1x128x128xbf16> to vector<128x128xbf16>
    %cst_112 = arith.constant dense<0.000000e+00> : vector<256x128xf32>
    %153 = tpu.matmul %150, %152, %cst_112 {dimension_numbers = #tpu.dot_dimension_numbers<[1], [0], [0], [1], [0, 0, 1, 1], [], []>} : vector<256x128xbf16>, vector<128x128xbf16>, vector<256x128xf32> -> vector<256x128xf32>
    %154 = arith.addf %146, %153 : vector<256x128xf32>
    %c24_113 = arith.constant 24 : index
    %c0_114 = arith.constant 0 : index
    %155 = vector.load %arg9[%c24_113, %c0_114] : memref<304x128xf32, #tpu.memory_space<vmem>>, vector<256x128xf32>
    %156 = arith.truncf %155 : vector<256x128xf32> to vector<256x128xbf16>
    %c4_115 = arith.constant 4 : index
    %c0_116 = arith.constant 0 : index
    %c0_117 = arith.constant 0 : index
    %157 = vector.load %arg6[%c4_115, %c0_116, %c0_117] : memref<9x128x128xbf16, #tpu.memory_space<vmem>>, vector<1x128x128xbf16>
    %158 = vector.shape_cast %157 : vector<1x128x128xbf16> to vector<128x128xbf16>
    %cst_118 = arith.constant dense<0.000000e+00> : vector<256x128xf32>
    %159 = tpu.matmul %156, %158, %cst_118 {dimension_numbers = #tpu.dot_dimension_numbers<[1], [0], [0], [1], [0, 0, 1, 1], [], []>} : vector<256x128xbf16>, vector<128x128xbf16>, vector<256x128xf32> -> vector<256x128xf32>
    %160 = arith.addf %154, %159 : vector<256x128xf32>
    %c25_119 = arith.constant 25 : index
    %c0_120 = arith.constant 0 : index
    %161 = vector.load %arg9[%c25_119, %c0_120] : memref<304x128xf32, #tpu.memory_space<vmem>>, vector<256x128xf32>
    %cst_121 = arith.constant 0.000000e+00 : f32
    %162 = vector.broadcast %cst_121 : f32 to vector<256x128xf32>
    %163 = arith.select %24, %162, %161 : vector<256x128xi1>, vector<256x128xf32>
    %164 = arith.truncf %163 : vector<256x128xf32> to vector<256x128xbf16>
    %c5_122 = arith.constant 5 : index
    %c0_123 = arith.constant 0 : index
    %c0_124 = arith.constant 0 : index
    %165 = vector.load %arg6[%c5_122, %c0_123, %c0_124] : memref<9x128x128xbf16, #tpu.memory_space<vmem>>, vector<1x128x128xbf16>
    %166 = vector.shape_cast %165 : vector<1x128x128xbf16> to vector<128x128xbf16>
    %cst_125 = arith.constant dense<0.000000e+00> : vector<256x128xf32>
    %167 = tpu.matmul %164, %166, %cst_125 {dimension_numbers = #tpu.dot_dimension_numbers<[1], [0], [0], [1], [0, 0, 1, 1], [], []>} : vector<256x128xbf16>, vector<128x128xbf16>, vector<256x128xf32> -> vector<256x128xf32>
    %168 = arith.addf %160, %167 : vector<256x128xf32>
    %c39_126 = arith.constant 39 : index
    %c0_127 = arith.constant 0 : index
    %169 = vector.load %arg9[%c39_126, %c0_127] : memref<304x128xf32, #tpu.memory_space<vmem>>, vector<256x128xf32>
    %cst_128 = arith.constant 0.000000e+00 : f32
    %170 = vector.broadcast %cst_128 : f32 to vector<256x128xf32>
    %171 = arith.select %22, %170, %169 : vector<256x128xi1>, vector<256x128xf32>
    %172 = arith.truncf %171 : vector<256x128xf32> to vector<256x128xbf16>
    %c6_129 = arith.constant 6 : index
    %c0_130 = arith.constant 0 : index
    %c0_131 = arith.constant 0 : index
    %173 = vector.load %arg6[%c6_129, %c0_130, %c0_131] : memref<9x128x128xbf16, #tpu.memory_space<vmem>>, vector<1x128x128xbf16>
    %174 = vector.shape_cast %173 : vector<1x128x128xbf16> to vector<128x128xbf16>
    %cst_132 = arith.constant dense<0.000000e+00> : vector<256x128xf32>
    %175 = tpu.matmul %172, %174, %cst_132 {dimension_numbers = #tpu.dot_dimension_numbers<[1], [0], [0], [1], [0, 0, 1, 1], [], []>} : vector<256x128xbf16>, vector<128x128xbf16>, vector<256x128xf32> -> vector<256x128xf32>
    %176 = arith.addf %168, %175 : vector<256x128xf32>
    %c40_133 = arith.constant 40 : index
    %c0_134 = arith.constant 0 : index
    %177 = vector.load %arg9[%c40_133, %c0_134] : memref<304x128xf32, #tpu.memory_space<vmem>>, vector<256x128xf32>
    %178 = arith.truncf %177 : vector<256x128xf32> to vector<256x128xbf16>
    %c7_135 = arith.constant 7 : index
    %c0_136 = arith.constant 0 : index
    %c0_137 = arith.constant 0 : index
    %179 = vector.load %arg6[%c7_135, %c0_136, %c0_137] : memref<9x128x128xbf16, #tpu.memory_space<vmem>>, vector<1x128x128xbf16>
    %180 = vector.shape_cast %179 : vector<1x128x128xbf16> to vector<128x128xbf16>
    %cst_138 = arith.constant dense<0.000000e+00> : vector<256x128xf32>
    %181 = tpu.matmul %178, %180, %cst_138 {dimension_numbers = #tpu.dot_dimension_numbers<[1], [0], [0], [1], [0, 0, 1, 1], [], []>} : vector<256x128xbf16>, vector<128x128xbf16>, vector<256x128xf32> -> vector<256x128xf32>
    %182 = arith.addf %176, %181 : vector<256x128xf32>
    %c41_139 = arith.constant 41 : index
    %c0_140 = arith.constant 0 : index
    %183 = vector.load %arg9[%c41_139, %c0_140] : memref<304x128xf32, #tpu.memory_space<vmem>>, vector<256x128xf32>
    %cst_141 = arith.constant 0.000000e+00 : f32
    %184 = vector.broadcast %cst_141 : f32 to vector<256x128xf32>
    %185 = arith.select %24, %184, %183 : vector<256x128xi1>, vector<256x128xf32>
    %186 = arith.truncf %185 : vector<256x128xf32> to vector<256x128xbf16>
    %c8_142 = arith.constant 8 : index
    %c0_143 = arith.constant 0 : index
    %c0_144 = arith.constant 0 : index
    %187 = vector.load %arg6[%c8_142, %c0_143, %c0_144] : memref<9x128x128xbf16, #tpu.memory_space<vmem>>, vector<1x128x128xbf16>
    %188 = vector.shape_cast %187 : vector<1x128x128xbf16> to vector<128x128xbf16>
    %cst_145 = arith.constant dense<0.000000e+00> : vector<256x128xf32>
    %189 = tpu.matmul %186, %188, %cst_145 {dimension_numbers = #tpu.dot_dimension_numbers<[1], [0], [0], [1], [0, 0, 1, 1], [], []>} : vector<256x128xbf16>, vector<128x128xbf16>, vector<256x128xf32> -> vector<256x128xf32>
    %190 = arith.addf %182, %189 : vector<256x128xf32>
    %c0_146 = arith.constant 0 : index
    %c0_147 = arith.constant 0 : index
    %191 = vector.load %arg7[%c0_146, %c0_147] : memref<1x128xf32, #tpu.memory_space<vmem>>, vector<1x128xf32>
    %192 = vector.broadcast %191 : vector<1x128xf32> to vector<256x128xf32>
    %193 = arith.addf %190, %192 : vector<256x128xf32>
    %c0_148 = arith.constant 0 : index
    %c0_149 = arith.constant 0 : index
    %194 = vector.load %arg10[%c0_148, %c0_149] : memref<256x128xf32, #tpu.memory_space<vmem>>, vector<256x128xf32>
    %195 = arith.addf %193, %194 : vector<256x128xf32>
    %cst_150 = arith.constant 0.000000e+00 : f32
    %196 = vector.broadcast %cst_150 : f32 to vector<256x128xf32>
    %197 = arith.maximumf %195, %196 : vector<256x128xf32>
    %c0_151 = arith.constant 0 : index
    %c0_152 = arith.constant 0 : index
    %c0_153 = arith.constant 0 : index
    %198 = vector.load %arg8[%c0_151, %c0_152, %c0_153] : memref<1x256x128xf32, #tpu.memory_space<vmem>>, vector<1x256x128xf32>
    %199 = vector.shape_cast %198 : vector<1x256x128xf32> to vector<256x128xf32>
    %200 = vector.shape_cast %197 : vector<256x128xf32> to vector<1x256x128xf32>
    tpu.vector_store %arg8[%c0_151, %c0_152, %c0_153], %200 {strides = array<i32>} : memref<1x256x128xf32, #tpu.memory_space<vmem>>, vector<1x256x128xf32>,
    return
  }
  func.func @transform_0(%arg0: i32) -> (i32, i32, i32) {
    %c0_i32 = arith.constant 0 : i32
    %c0_i32_0 = arith.constant 0 : i32
    %c0_i32_1 = arith.constant 0 : i32
    return %arg0, %c0_i32, %c0_i32_0 : i32, i32, i32
  }
  func.func @transform_1(%arg0: i32) -> (i32, i32, i32) {
    %c0_i32 = arith.constant 0 : i32
    %c0_i32_0 = arith.constant 0 : i32
    %c0_i32_1 = arith.constant 0 : i32
    %c0_i32_2 = arith.constant 0 : i32
    return %c0_i32, %c0_i32_0, %c0_i32_1 : i32, i32, i32
  }
  func.func @transform_2(%arg0: i32) -> (i32, i32) {
    %c0_i32 = arith.constant 0 : i32
    %c0_i32_0 = arith.constant 0 : i32
    %c0_i32_1 = arith.constant 0 : i32
    return %c0_i32, %c0_i32_0 : i32, i32
  }
  func.func @transform_3(%arg0: i32) -> (i32, i32, i32) {
    %c0_i32 = arith.constant 0 : i32
    %c0_i32_0 = arith.constant 0 : i32
    %c0_i32_1 = arith.constant 0 : i32
    %c0_i32_2 = arith.constant 0 : i32
    return %c0_i32, %c0_i32_0, %c0_i32_1 : i32, i32, i32
  }
  func.func @transform_4(%arg0: i32) -> (i32, i32) {
    %c0_i32 = arith.constant 0 : i32
    %c0_i32_0 = arith.constant 0 : i32
    %c0_i32_1 = arith.constant 0 : i32
    return %c0_i32, %c0_i32_0 : i32, i32
  }
  func.func @transform_5(%arg0: i32) -> (i32, i32, i32) {
    %c0_i32 = arith.constant 0 : i32
    %c0_i32_0 = arith.constant 0 : i32
    %c0_i32_1 = arith.constant 0 : i32
    %c0_i32_2 = arith.constant 0 : i32
    return %c0_i32, %c0_i32_0, %c0_i32_1 : i32, i32, i32
  }
  func.func @transform_6(%arg0: i32) -> (i32, i32) {
    %c0_i32 = arith.constant 0 : i32
    %c0_i32_0 = arith.constant 0 : i32
    %c0_i32_1 = arith.constant 0 : i32
    return %c0_i32, %c0_i32_0 : i32, i32
  }
  func.func @transform_7(%arg0: i32) -> (i32, i32, i32) {
    %c0_i32 = arith.constant 0 : i32
    %c0_i32_0 = arith.constant 0 : i32
    %c0_i32_1 = arith.constant 0 : i32
    return %arg0, %c0_i32, %c0_i32_0 : i32, i32, i32
  }
}

</mosaic_0001>

<bundles_post_ra>
// kernel: backbone_forward_features.1
= control target key start
LH: loop header
LB: loop body
LE: loop exit
PB: predicated region body
PF: predicated region fallthrough
CT: control target
= control target key end

     0   :  { %s10903_s24 = smov 0   ;;  %s14146_s0 = inlined_call_operand.vmem [shape: bf16[2,288,24], index: 0, kind: input, shape index: {}]   ;;  %s14147_s1 = inlined_call_operand.vmem [shape: bf16[3,24,128], index: 1, kind: input, shape index: {}]   ;;  %s14148_s2 = inlined_call_operand.vmem [shape: f32[1,128], index: 2, kind: input, shape index: {}]   ;;  %s14149_s3 = inlined_call_operand.vmem [shape: bf16[9,128,128], index: 3, kind: input, shape index: {}]   ;;  %s14150_s4 = inlined_call_operand.vmem [shape: f32[1,128], index: 4, kind: input, shape index: {}]   ;;  %s14151_s5 = inlined_call_operand.vmem [shape: bf16[9,128,128], index: 5, kind: input, shape index: {}]   ;;  %s14152_s6 = inlined_call_operand.vmem [shape: f32[1,128], index: 6, kind: input, shape index: {}]   ;;  %s14153_s7 = inlined_call_operand.vmem [shape: f32[2,256,128], index: 7, kind: output, shape index: {}]  }
   0x1 LB: > { %s7883_s25 = sadd.s32 4294967295, %s10858_s24   ;;  %p7887_p0 = scmp.ge.s32.totalorder %s10858_s24, 1  ;;  %s10858_s24 = sphi %s10903_s24, %s17_s24  }
   0x2   : > { %p237_p1 = scmp.lt.s32.totalorder %s10858_s24, 3 }
   0x4   : > { %p238_p2 = pnand %p7887_p0, %p237_p1 }
   0x6   : > { %241 = sbr.rel (%p238_p2) target bundleno = 1248 (0x4e0), region = 48 }
   0xb   : > { %v10667_v0 = vld [vmem:[%s14147_s1 + $0x14] ss:$0 sps:$4 sm:$0xff]   ;;  %vm946_vm0 = vcmask 1043456   ;;  %v10668_v1 = vld [vmem:[%s14147_s1 + $0xc] sm:$0xff]   ;;  %p269_p3 = scmp.lt.s32.totalorder %s7883_s25, 1  ;;  %vm897_vm1 = vcmask 195584   ;;  %v286_v58 = vlaneseq }
   0xc   : > { %10652 = vmatprep.subr.msk.bf16.mxu0 %vm946_vm0, %v10667_v0  ;;  %10653 = vmatprep.subr.msk.bf16.mxu1 %vm946_vm0, %v10667_v0  ;;  %v948_v2 = vsel %vm946_vm0, %v10667_v0, 0  ;;  %v10673_v3 = vld [vmem:[%s14147_s1 + $0x8] ss:$0 sps:$4 sm:$0xff]   ;;  %v10674_v4 = vld [vmem:[%s14147_s1 + $0x20] ss:$0 sps:$4 sm:$0xff]   ;;  %v10684_v10 = vld [vmem:[%s14147_s1 + $0x18] sm:$0xff]  }
   0xd   : > { %9677 = vmatpush3.bf16.msra.mxu0 %v948_v2  ;;  %10650 = vmatpush3.bf16.msra.mxu1 %v948_v2  ;;  %s14910_s25 = smov (!%p269_p3, %s7883_s25), 1  ;;  %v10683_v7 = vld [vmem:[%s14147_s1] sm:$0xff]   ;;  %v1466_v9 = vsel %vm946_vm0, %v10674_v4, 0  ;;  %v1129_v12 = vsel %vm946_vm0, %v10673_v3, 0  ;;  %v10706_v15 = vld [vmem:[%s14149_s3 + $0x78] sm:$0xff]   ;;  %v10707_v38 = vld [vmem:[%s14149_s3 + $0x70] sm:$0xff]  }
   0xe   : > { %9678 = vmatprep.subr.bf16.mxu0 %v10668_v1  ;;  %10649 = vmatprep.subr.bf16.mxu1 %v10668_v1  ;;  %s10656_s11 = smul.u32 144, %s14910_s25  ;;  %v10708_v41 = vld [vmem:[%s14149_s3 + $0x68] sm:$0xff]   ;;  %v10709_v44 = vld [vmem:[%s14149_s3 + $0x60] sm:$0xff]   ;;  %v10711_v46 = vld [vmem:[%s14149_s3 + $0x38] sm:$0xff]   ;;  %v10860_v56 = vmov 0.0   ;;  %v10861_v59 = vmov 0.0|0.0  }
   0xf   : > { %v10710_v47 = vld [vmem:[%s14149_s3 + $0x58] sm:$0xff]   ;;  %v10712_v48 = vld [vmem:[%s14149_s3 + $0x30] sm:$0xff]   ;;  %v10714_v49 = vld [vmem:[%s14149_s3 + $0x28] sm:$0xff]   ;;  %281 = vst [vmem:[#allocation2 + $0x8] sm:$0xff] %v10860_v56  ;;  %v11098_v60 = vshrl.u32 %v286_v58, 7  ;;  %vm14215_vm3 = vmmov 1  }
  0x10   : > { %s10932_s14 = scalar_lea.vmem %s14146_s0, %s10656_s11  ;;  %v10713_v50 = vld [vmem:[%s14149_s3 + $0x50] sm:$0xff]   ;;  %v10715_v51 = vld [vmem:[%s14149_s3 + $0x20] sm:$0xff]   ;;  %v10716_v52 = vld [vmem:[%s14149_s3 + $0x48] sm:$0xff]   ;;  %282 = vst [vmem:[#allocation2 + $0x10] sm:$0xff] %v10860_v56  ;;  %v14329_v2 = vmov 0  ;;  %s9157_s19 = sshll.u32 %s14910_s25, 8 }
  0x11   : > { %9679 = vmatpush3.bf16.msra.mxu0 %v10668_v1  ;;  %10651 = vmatpush3.bf16.msra.mxu1 %v10668_v1  ;;  %v10669_v5 = vld [vmem:[%s10932_s14 + $0x8] sm:$0xff]   ;;  %v10671_v8 = vld [vmem:[%s10932_s14 + $0x10] sm:$0xff]   ;;  %v10675_v13 = vld [vmem:[%s10932_s14 + $0x18] sm:$0xff]   ;;  %280 = vst [vmem:[#allocation2] sm:$0xff] %v10860_v56  ;;  %v323_v62 = vand.u32 15, %v11098_v60  ;;  %s13932_s21 = scalar_lea.vmem %s14153_s7, %s9157_s19 }
  0x12   : > { %10654 = vmatprep.subr.msk.bf16.mxu1 %vm946_vm0, %v10673_v3  ;;  %10655 = vmatprep.subr.msk.bf16.mxu0 %vm946_vm0, %v10674_v4  ;;  %v10938_v6 = vld [vmem:[%s10932_s14 + $0x48] sm:$0xff]   ;;  %v10952_v11 = vld [vmem:[%s10932_s14 + $0x50] sm:$0xff]   ;;  %v10960_v14 = vld [vmem:[%s10932_s14 + $0x58] sm:$0xff]   ;;  %283 = vst [vmem:[#allocation2 + $0x118] sm:$0xff] %v10860_v56 }
  0x13   : > { %9680 = vmatprep.mubr.msk.bf16.mxu0 %vm897_vm1, %v10669_v5  ;;  %9696 = vmatprep.mubr.msk.bf16.mxu1 %vm897_vm1, %v10938_v6  ;;  %v10677_v16 = vld [vmem:[%s10932_s14 + $0x20] sm:$0xff]   ;;  %v10679_v18 = vld [vmem:[%s10932_s14 + $0x28] sm:$0xff]   ;;  %v10681_v20 = vld [vmem:[%s10932_s14 + $0x30] sm:$0xff]   ;;  %284 = vst [vmem:[#allocation2 + $0x120] sm:$0xff] %v10860_v56  ;;  %vm9158_vm2 = vcmp.ne.s32.totalorder %v323_v62, 0 }
  0x14   : > { %9681 = vmatmul.mubr.msk.bf16.vlgmr.msra.gmra.mxu0 %vm897_vm1, %v10671_v8  ;;  %9697 = vmatmul.mubr.msk.bf16.vlgmr.msra.gmra.mxu1 %vm897_vm1, %v10952_v11  ;;  %v10970_v17 = vld [vmem:[%s10932_s14 + $0x60] sm:$0xff]   ;;  %v10974_v19 = vld [vmem:[%s10932_s14 + $0x68] sm:$0xff]   ;;  %v10984_v21 = vld [vmem:[%s10932_s14 + $0x70] sm:$0xff]   ;;  %285 = vst [vmem:[#allocation2 + $0x128] sm:$0xff] %v10860_v56 }
  0x15   : > { %9749 = vmatpush3.bf16.msra.mxu0 %v1466_v9  ;;  %9713 = vmatpush3.bf16.msra.mxu1 %v1129_v12  ;;  %v10685_v22 = vld [vmem:[%s10932_s14 + $0x38] sm:$0xff]   ;;  %v10687_v24 = vld [vmem:[%s10932_s14 + $0x40] sm:$0xff]   ;;  %v10690_v26 = vld [vmem:[%s10932_s14 + $0x10] sm:$0xff]  }
  0x16   : > { %9684 = vmatprep.mubr.msk.bf16.mxu0 %vm897_vm1, %v10675_v13  ;;  %9700 = vmatprep.mubr.msk.bf16.mxu1 %vm897_vm1, %v10960_v14  ;;  %v10988_v23 = vld [vmem:[%s10932_s14 + $0x78] sm:$0xff]   ;;  %v10688_v25 = vld [vmem:[%s10932_s14 + $0x80] sm:$0xff]   ;;  %v10693_v30 = vld [vmem:[%s10932_s14 + $0x28] sm:$0xff]  }
  0x17   : > { %9714 = vmatprep.subr.bf16.mxu1 %v10683_v7  ;;  %9750 = vmatprep.subr.bf16.mxu0 %v10684_v10  ;;  %v10689_v27 = vld [vmem:[%s10932_s14] sm:$0xff]   ;;  %v10691_v28 = vld [vmem:[%s10932_s14 + $0x18] sm:$0xff]   ;;  %v10694_v31 = vld [vmem:[%s10932_s14 + $0x30] sm:$0xff]  }
  0x18   : > { %v10692_v29 = vld [vmem:[%s10932_s14 + $0x20] sm:$0xff]   ;;  %v10695_v32 = vld [vmem:[%s10932_s14 + $0x38] sm:$0xff]   ;;  %v10697_v34 = vld [vmem:[%s10932_s14 + $0x48] sm:$0xff]  }
  0x19   : > { %9751 = vmatpush3.bf16.msra.mxu0 %v10684_v10  ;;  %9715 = vmatpush3.bf16.msra.mxu1 %v10683_v7  ;;  %v10696_v33 = vld [vmem:[%s10932_s14 + $0x40] sm:$0xff]   ;;  %v10698_v35 = vld [vmem:[%s10932_s14 + $0x50] sm:$0xff]   ;;  %v10699_v36 = vld [vmem:[%s10932_s14 + $0x58] sm:$0xff]  }
  0x1a   : > { %9784 = vmatprep.subr.bf16.mxu1 %v10706_v15  ;;  %v10700_v37 = vld [vmem:[%s10932_s14 + $0x60] sm:$0xff]   ;;  %v10701_v39 = vld [vmem:[%s10932_s14 + $0x68] sm:$0xff]   ;;  %v10702_v40 = vld [vmem:[%s10932_s14 + $0x70] sm:$0xff]   ;;  %9832 = vmatprep.subr.bf16.mxu0 %v10711_v46 }
  0x1b   : > { %v10703_v42 = vld [vmem:[%s10932_s14 + $0x78] sm:$0xff]   ;;  %v10704_v43 = vld [vmem:[%s10932_s14 + $0x80] sm:$0xff]   ;;  %v10705_v45 = vld [vmem:[%s10932_s14 + $0x88] sm:$0xff]  }
  0x1c   : > { %9685 = vmatmul.mubr.msk.bf16.gmra.mxu0 %vm897_vm1, %v10677_v16  ;;  %9701 = vmatmul.mubr.msk.bf16.gmra.mxu1 %vm897_vm1, %v10970_v17  ;;  %v10717_v53 = vld [vmem:[%s14149_s3 + $0x18] sm:$0xff]   ;;  %v10718_v54 = vld [vmem:[%s14149_s3 + $0x10] sm:$0xff]   ;;  %v10719_v55 = vld [vmem:[%s14149_s3 + $0x40] sm:$0xff]  }
  0x1d   : > { %9688 = vmatprep.mubr.msk.bf16.mxu0 %vm897_vm1, %v10679_v18  ;;  %9704 = vmatprep.mubr.msk.bf16.mxu1 %vm897_vm1, %v10974_v19  ;;  %v10720_v57 = vld [vmem:[%s14149_s3 + $0x8] sm:$0xff]   ;;  %v10721_v61 = vld [vmem:[%s14149_s3] sm:$0xff]   ;;  %vm11105_vm4 = vmpackc.low %vm14215_vm3, %vm9158_vm2 }
  0x1e   : > { %v1796_v63 = vld [vmem:[#allocation2 + $0x7] sm:$0xff]  ;;  %v1797_v0 = vld [vmem:[#allocation2 + $0xf] sm:$0xff]  ;;  %v14330_v2 = vsel %vm11105_vm4, 4294967295, %v14329_v2  ;;  %v11114_v3 = vld [vmem:[%s14149_s3 + $0xb8] sm:$0xff]  }
  0x1f   : > { %v8019_v1 = vpack.c.bf16 %v1797_v0, %v1796_v63  ;;  %14331 = vst [vmem:[#allocation4_spill] sm:$0xff] %v14330_v2  ;;  %v11120_v4 = vld [vmem:[%s14149_s3 + $0xf8] sm:$0xff]  }
  0x24   : > { %9689 = vmatmul.mubr.msk.bf16.gmra.mxu0 %vm897_vm1, %v10681_v20  ;;  %9705 = vmatmul.mubr.msk.bf16.gmra.mxu1 %vm897_vm1, %v10984_v21 }
  0x25   : > { %9692 = vmatprep.mubr.msk.bf16.mxu0 %vm897_vm1, %v10685_v22  ;;  %9708 = vmatprep.mubr.msk.bf16.mxu1 %vm897_vm1, %v10988_v23 }
  0x2c   : > { %9693 = vmatmul.mubr.msk.bf16.gmra.mxu0 %vm897_vm1, %v10687_v24  ;;  %9709 = vmatmul.mubr.msk.bf16.gmra.mxu1 %vm897_vm1, %v10688_v25 }
  0x2d   : > { %9752 = vmatprep.mubr.msk.bf16.mxu0 %vm897_vm1, %v10690_v26  ;;  %9716 = vmatprep.mubr.msk.bf16.mxu1 %vm897_vm1, %v10689_v27 }
  0x34   : > { %9753 = vmatmul.mubr.msk.bf16.vlgmr.msra.gmra.mxu0 %vm897_vm1, %v10691_v28  ;;  %9717 = vmatmul.mubr.msk.bf16.vlgmr.msra.gmra.mxu1 %vm897_vm1, %v10669_v5 }
  0x35   : > { %9756 = vmatprep.mubr.msk.bf16.mxu0 %vm897_vm1, %v10692_v29  ;;  %9720 = vmatprep.mubr.msk.bf16.mxu1 %vm897_vm1, %v10671_v8 }
  0x36   : > { %9785 = vmatpush3.bf16.msra.mxu1 %v10706_v15  ;;  %9833 = vmatpush3.bf16.msra.mxu0 %v10711_v46 }
  0x37   : > { %9786 = vmatprep.subr.bf16.mxu1 %v10707_v38  ;;  %9834 = vmatprep.subr.bf16.mxu0 %v10712_v48 }
  0x3a   : > { %9787 = vmatpush3.bf16.msra.mxu1 %v10707_v38  ;;  %9835 = vmatpush3.bf16.msra.mxu0 %v10712_v48 }
  0x3b   : > { %9788 = vmatprep.subr.bf16.mxu1 %v10708_v41  ;;  %9836 = vmatprep.subr.bf16.mxu0 %v10714_v49 }
  0x3c   : > { %9757 = vmatmul.mubr.msk.bf16.gmra.mxu0 %vm897_vm1, %v10693_v30  ;;  %9721 = vmatmul.mubr.msk.bf16.gmra.mxu1 %vm897_vm1, %v10675_v13 }
  0x3d   : > { %9760 = vmatprep.mubr.msk.bf16.mxu0 %vm897_vm1, %v10694_v31  ;;  %9724 = vmatprep.mubr.msk.bf16.mxu1 %vm897_vm1, %v10677_v16 }
  0x3e   : > { %9789 = vmatpush3.bf16.msra.mxu1 %v10708_v41  ;;  %9837 = vmatpush3.bf16.msra.mxu0 %v10714_v49  ;;  %v11176_v41 = vld [vmem:[%s14148_s2] ss:$0 sm:$0xff] }
  0x3f   : > { %9790 = vmatprep.subr.bf16.mxu1 %v10709_v44  ;;  %9838 = vmatprep.subr.bf16.mxu0 %v10715_v51 }
  0x42   : > { %9791 = vmatpush3.bf16.msra.mxu1 %v10709_v44  ;;  %9839 = vmatpush3.bf16.msra.mxu0 %v10715_v51 }
  0x43   : > { %9792 = vmatprep.subr.bf16.mxu1 %v10710_v47  ;;  %9840 = vmatprep.subr.bf16.mxu0 %v10717_v53 }
  0x44   : > { %9761 = vmatmul.mubr.msk.bf16.gmra.mxu0 %vm897_vm1, %v10695_v32  ;;  %9725 = vmatmul.mubr.msk.bf16.gmra.mxu1 %vm897_vm1, %v10679_v18 }
  0x45   : > { %9764 = vmatprep.mubr.msk.bf16.mxu0 %vm897_vm1, %v10696_v33  ;;  %9728 = vmatprep.mubr.msk.bf16.mxu1 %vm897_vm1, %v10681_v20 }
  0x46   : > { %9793 = vmatpush3.bf16.msra.mxu1 %v10710_v47  ;;  %9841 = vmatpush3.bf16.msra.mxu0 %v10717_v53 }
  0x47   : > { %9794 = vmatprep.subr.bf16.mxu1 %v10713_v50  ;;  %9842 = vmatprep.subr.bf16.mxu0 %v10718_v54 }
  0x4a   : > { %9795 = vmatpush3.bf16.msra.mxu1 %v10713_v50  ;;  %9843 = vmatpush3.bf16.msra.mxu0 %v10718_v54 }
  0x4b   : > { %9796 = vmatprep.subr.bf16.mxu1 %v10716_v52  ;;  %9844 = vmatprep.subr.bf16.mxu0 %v10720_v57 }
  0x4c   : > { %9765 = vmatmul.mubr.msk.bf16.gmra.mxu0 %vm897_vm1, %v10697_v34  ;;  %9729 = vmatmul.mubr.msk.bf16.gmra.mxu1 %vm897_vm1, %v10685_v22 }
  0x4d   : > { %9768 = vmatprep.mubr.msk.bf16.mxu0 %vm897_vm1, %v10698_v35  ;;  %9732 = vmatprep.mubr.msk.bf16.mxu1 %vm897_vm1, %v10687_v24 }
  0x4e   : > { %9797 = vmatpush3.bf16.msra.mxu1 %v10716_v52  ;;  %9845 = vmatpush3.bf16.msra.mxu0 %v10720_v57 }
  0x4f   : > { %9798 = vmatprep.subr.bf16.mxu1 %v10719_v55  ;;  %9846 = vmatprep.subr.bf16.mxu0 %v10721_v61 }
  0x52   : > { %9799 = vmatpush3.bf16.msra.mxu1 %v10719_v55  ;;  %9847 = vmatpush3.bf16.msra.mxu0 %v10721_v61 }
  0x53   : > { %9880 = vmatprep.subr.bf16.mxu1 %v11114_v3  ;;  %9928 = vmatprep.subr.bf16.mxu0 %v11120_v4 }
  0x54   : > { %9769 = vmatmul.mubr.msk.bf16.gmra.mxu0 %vm897_vm1, %v10699_v36  ;;  %9733 = vmatmul.mubr.msk.bf16.gmra.mxu1 %vm897_vm1, %v10938_v6 }
  0x55   : > { %9772 = vmatprep.mubr.msk.bf16.mxu0 %vm897_vm1, %v10700_v37  ;;  %9736 = vmatprep.mubr.msk.bf16.mxu1 %vm897_vm1, %v10952_v11 }
  0x5c   : > { %9773 = vmatmul.mubr.msk.bf16.gmra.mxu0 %vm897_vm1, %v10701_v39  ;;  %9737 = vmatmul.mubr.msk.bf16.gmra.mxu1 %vm897_vm1, %v10960_v14 }
  0x5d   : > { %9776 = vmatprep.mubr.msk.bf16.mxu0 %vm897_vm1, %v10702_v40  ;;  %9740 = vmatprep.mubr.msk.bf16.mxu1 %vm897_vm1, %v10970_v17 }
  0x64   : > { %9777 = vmatmul.mubr.msk.bf16.gmra.mxu0 %vm897_vm1, %v10703_v42  ;;  %9741 = vmatmul.mubr.msk.bf16.gmra.mxu1 %vm897_vm1, %v10974_v19 }
  0x65   : > { %9780 = vmatprep.mubr.msk.bf16.mxu0 %vm897_vm1, %v10704_v43  ;;  %9744 = vmatprep.mubr.msk.bf16.mxu1 %vm897_vm1, %v10984_v21 }
  0x6c   : > { %9781 = vmatmul.mubr.msk.bf16.gmra.mxu0 %vm897_vm1, %v10705_v45  ;;  %9745 = vmatmul.mubr.msk.bf16.gmra.mxu1 %vm897_vm1, %v10988_v23 }
  0x6d   : > { %9800 = vmatprep.mubr.bf16.mxu1 %v10861_v59  ;;  %9848 = vmatprep.mubr.msk.bf16.mxu0 %vm11105_vm4, %v8019_v1 }
  0xd4   : > { %v9682_v5 = vpop.f32.mrf.mxu0  ;;  %v11123_v6 = vpop.f32.mrf.mxu1 }
  0xd6   : > { %v984_v7 = vpop.f32.mrf.mxu0  ;;  %v11125_v8 = vpop.f32.mrf.mxu1 }
  0xd8   : > { %v9683_v9 = vpop.f32.mrf.mxu0  ;;  %v11127_v10 = vpop.f32.mrf.mxu1 }
  0xda   : > { %v987_v11 = vpop.f32.mrf.mxu0  ;;  %v11129_v12 = vpop.f32.mrf.mxu1 }
  0xdc   : > { %v9686_v13 = vpop.f32.mrf.mxu0  ;;  %v11131_v14 = vpop.f32.mrf.mxu1 }
  0xde   : > { %v1000_v15 = vpop.f32.mrf.mxu0  ;;  %v11133_v16 = vpop.f32.mrf.mxu1 }
  0xe0   : > { %v9687_v17 = vpop.f32.mrf.mxu0  ;;  %v11135_v18 = vpop.f32.mrf.mxu1 }
  0xe2   : > { %v11137_v19 = vpop.f32.mrf.mxu0  ;;  %v11139_v20 = vpop.f32.mrf.mxu1 }
  0xe4   : > { %v11141_v21 = vpop.f32.mrf.mxu0  ;;  %v11143_v22 = vpop.f32.mrf.mxu1 }
  0xe6   : > { %v11145_v23 = vpop.f32.mrf.mxu0  ;;  %v11147_v24 = vpop.f32.mrf.mxu1 }
  0xe8   : > { %v11149_v25 = vpop.f32.mrf.mxu0  ;;  %v11151_v26 = vpop.f32.mrf.mxu1 }
  0xea   : > { %v11153_v27 = vpop.f32.mrf.mxu0  ;;  %v11155_v28 = vpop.f32.mrf.mxu1 }
  0xec   : > { %v11157_v29 = vpop.f32.mrf.mxu0  ;;  %v11159_v30 = vpop.f32.mrf.mxu1 }
  0xee   : > { %v11161_v31 = vpop.f32.mrf.mxu0  ;;  %v11163_v32 = vpop.f32.mrf.mxu1 }
  0xf0   : > { %v11165_v33 = vpop.f32.mrf.mxu0  ;;  %v11167_v34 = vpop.f32.mrf.mxu1 }
  0xf2   : > { %v11169_v35 = vpop.f32.mrf.mxu0  ;;  %v11171_v36 = vpop.f32.mrf.mxu1 }
  0xf4   : > { %v9754_v37 = vpop.f32.mrf.mxu0  ;;  %v9718_v38 = vpop.f32.mrf.mxu1 }
  0xf5   : > { %v1174_v39 = vadd.f32 %v9718_v38, %v9682_v5  ;;  %v289_v38 = vadd.s32 16, %v11098_v60 }
  0xf6   : > { %v1502_v40 = vpop.f32.mrf.mxu0  ;;  %v1165_v42 = vpop.f32.mrf.mxu1 }
  0xf7   : > { %v1631_v43 = vadd.f32 %v9754_v37, %v1174_v39  ;;  %v1166_v44 = vadd.f32 %v1165_v42, %v984_v7  ;;  %v291_v39 = vadd.s32 32, %v11098_v60 }
  0xf8   : > { %v9755_v45 = vpop.f32.mrf.mxu0  ;;  %v9719_v46 = vpop.f32.mrf.mxu1 }
  0xf9   : > { %v1670_v47 = vadd.f32 %v11176_v41, %v1631_v43  ;;  %v1629_v48 = vadd.f32 %v1502_v40, %v1166_v44  ;;  %v1177_v49 = vadd.f32 %v9719_v46, %v9683_v9 }
  0xfa   : > { %v1505_v50 = vpop.f32.mrf.mxu0  ;;  %v1168_v51 = vpop.f32.mrf.mxu1 }
  0xfb   : > { %v11179_v52 = vmax.f32 %v1670_v47, 0.0  ;;  %v1668_v53 = vadd.f32 %v11176_v41, %v1629_v48  ;;  %v1632_v54 = vadd.f32 %v9755_v45, %v1177_v49  ;;  %v1169_v55 = vadd.f32 %v1168_v51, %v987_v11 }
  0xfc   : > { %v9758_v56 = vpop.f32.mrf.mxu0  ;;  %v9722_v57 = vpop.f32.mrf.mxu1 }
  0xfd   : > { %14332 = vst [vmem:[#allocation5_spill] sm:$0xff] %v11179_v52  ;;  %1766 = vst [vmem:[#allocation2 + $0x28] sm:$0xff] %v11179_v52  ;;  %v11183_v58 = vmax.f32 %v1668_v53, 0.0  ;;  %v1671_v59 = vadd.f32 %v11176_v41, %v1632_v54  ;;  %v1630_v61 = vadd.f32 %v1505_v50, %v1169_v55  ;;  %v1190_v62 = vadd.f32 %v9722_v57, %v9686_v13  ;;  %v10723_v55 = vld [vmem:[%s14149_s3 + $0xb0] sm:$0xff]  }
  0xfe   : > { %v1518_v63 = vpop.f32.mrf.mxu0  ;;  %v1181_v0 = vpop.f32.mrf.mxu1  ;;  %v337_v53 = vand.u32 15, %v289_v38  ;;  %v351_v54 = vand.u32 15, %v291_v39  ;;  %v10728_v38 = vld [vmem:[%s14149_s3 + $0xf0] sm:$0xff]  }
  0xff   : > { %14333 = vst [vmem:[#allocation6_spill] sm:$0xff] %v11183_v58  ;;  %1764 = vst [vmem:[#allocation2 + $0x18] sm:$0xff] %v11183_v58  ;;  %v11187_v1 = vmax.f32 %v1671_v59, 0.0  ;;  %v1669_v5 = vadd.f32 %v11176_v41, %v1630_v61  ;;  %v1635_v7 = vadd.f32 %v9758_v56, %v1190_v62  ;;  %v1182_v9 = vadd.f32 %v1181_v0, %v1000_v15 }
 0x100   : > { %v9759_v11 = vpop.f32.mrf.mxu0  ;;  %v9723_v37 = vpop.f32.mrf.mxu1  ;;  %v11217_v0 = vadd.s32 64, %v11098_v60  ;;  %vm11225_vm5 = vcmp.ne.s32.totalorder %v337_v53, 0  ;;  %vm11229_vm6 = vcmp.ne.s32.totalorder %v351_v54, 0 }
 0x101   : > { %14334 = vst [vmem:[#allocation7_spill] sm:$0xff] %v11187_v1  ;;  %1767 = vst [vmem:[#allocation2 + $0x30] sm:$0xff] %v11187_v1  ;;  %v11193_v40 = vmax.f32 %v1669_v5, 0.0  ;;  %v1674_v13 = vadd.f32 %v11176_v41, %v1635_v7  ;;  %v1633_v42 = vadd.f32 %v1518_v63, %v1182_v9  ;;  %v1193_v43 = vadd.f32 %v9723_v37, %v9687_v17 }
 0x102   : > { %v1521_v44 = vpop.f32.mrf.mxu0  ;;  %v1184_v45 = vpop.f32.mrf.mxu1  ;;  %v1926_v17 = vpack.c.bf16 %v11187_v1, %v11179_v52  ;;  %v11214_v63 = vadd.s32 48, %v11098_v60  ;;  %vm11251_vm7 = vmpackc.low %vm14215_vm3, %vm11225_vm5 }
 0x103   : > { %14335 = vst [vmem:[#allocation8_spill] sm:$0xff] %v11193_v40  ;;  %1765 = vst [vmem:[#allocation2 + $0x20] sm:$0xff] %v11193_v40  ;;  %v11197_v46 = vmax.f32 %v1674_v13, 0.0  ;;  %v1672_v15 = vadd.f32 %v11176_v41, %v1633_v42  ;;  %v1636_v47 = vadd.f32 %v9759_v11, %v1193_v43  ;;  %v1185_v48 = vadd.f32 %v1184_v45, %v11137_v19  ;;  %v10724_v13 = vld [vmem:[%s14149_s3 + $0xa8] sm:$0xff]  }
 0x104   : > { %v9762_v49 = vpop.f32.mrf.mxu0  ;;  %v9726_v50 = vpop.f32.mrf.mxu1  ;;  %v1925_v51 = vpack.c.bf16 %v11193_v40, %v11183_v58  ;;  %vm11260_vm8 = vmpackc.low %vm14215_vm3, %vm11229_vm6  ;;  %v10755_v40 = vld [vmem:[%s14149_s3 + $0x1b0] sm:$0xff]  }
 0x105   : > { %14336 = vst [vmem:[#allocation9_spill] sm:$0xff] %v11197_v46  ;;  %1770 = vst [vmem:[#allocation2 + $0x48] sm:$0xff] %v11197_v46  ;;  %v11209_v56 = vmax.f32 %v1672_v15, 0.0  ;;  %v1675_v19 = vadd.f32 %v11176_v41, %v1636_v47  ;;  %v1634_v57 = vadd.f32 %v1521_v44, %v1185_v48  ;;  %v1206_v59 = vadd.f32 %v9726_v50, %v11141_v21 }
 0x106   : > { %v1534_v61 = vpop.f32.mrf.mxu0  ;;  %v1197_v62 = vpop.f32.mrf.mxu1  ;;  %9801 = vmatmul.mubr.bf16.vlgmr.msra.gmra.mxu1 %v1925_v51  ;;  %v365_v48 = vand.u32 15, %v11214_v63 }
 0x107   : > { %14337 = vst [vmem:[#allocation10_spill] sm:$0xff] %v11209_v56  ;;  %1768 = vst [vmem:[#allocation2 + $0x38] sm:$0xff] %v11209_v56  ;;  %v11220_v5 = vmax.f32 %v1675_v19, 0.0  ;;  %v1673_v7 = vadd.f32 %v11176_v41, %v1634_v57  ;;  %v1639_v9 = vadd.f32 %v9762_v49, %v1206_v59  ;;  %v1198_v11 = vadd.f32 %v1197_v62, %v11145_v23  ;;  %v1798_v19 = vld [vmem:[#allocation2 + $0x17] sm:$0xff] }
 0x108   : > { %v9763_v37 = vpop.f32.mrf.mxu0  ;;  %9804 = vmatprep.mubr.bf16.mxu1 %v1926_v17  ;;  %9881 = vmatpush3.bf16.msra.mxu1 %v11114_v3  ;;  %v9727_v21 = vpop.f32.mrf.mxu1  ;;  %v379_v49 = vand.u32 15, %v11217_v0  ;;  %v1801_v57 = vld [vmem:[#allocation2 + $0x2f] sm:$0xff]  ;;  %v14348_v62 = vmov 0  ;;  %vm11295_vm9 = vcmp.ne.s32.totalorder %v365_v48, 0 }
 0x109   : > { %14338 = vst [vmem:[#allocation11_spill] sm:$0xff] %v11220_v5  ;;  %9882 = vmatprep.subr.bf16.mxu1 %v10723_v55  ;;  %1771 = vst [vmem:[#allocation2 + $0x50] sm:$0xff] %v11220_v5  ;;  %v11237_v23 = vmax.f32 %v1673_v7, 0.0  ;;  %v1678_v3 = vadd.f32 %v11176_v41, %v1639_v9  ;;  %v1637_v42 = vadd.f32 %v1534_v61, %v1198_v11  ;;  %v14349_v62 = vsel %vm11260_vm8, 4294967295, %v14348_v62 }
 0x10a   : > { %v1209_v43 = vadd.f32 %v9727_v21, %v11149_v25  ;;  %v1537_v44 = vpop.f32.mrf.mxu0  ;;  %v1200_v45 = vpop.f32.mrf.mxu1  ;;  %v1799_v15 = vld [vmem:[#allocation2 + $0x1f] sm:$0xff]  ;;  %v1800_v47 = vld [vmem:[#allocation2 + $0x27] sm:$0xff]  ;;  %v14345_v25 = vmov 0  ;;  %14350 = vst [vmem:[#allocation15_spill] sm:$0xff] %v14349_v62  ;;  %v1928_v0 = vpack.c.bf16 %v11220_v5, %v11197_v46  ;;  %vm11299_vm10 = vcmp.ne.s32.totalorder %v379_v49, 0  ;;  %vm11327_vm11 = vmpackc.low %vm14215_vm3, %vm11295_vm9 }
 0x10b   : > { %14343 = vst [vmem:[#allocation12_spill] sm:$0xff] %v11237_v23  ;;  %1769 = vst [vmem:[#allocation2 + $0x40] sm:$0xff] %v11237_v23  ;;  %v11244_v50 = vmax.f32 %v1678_v3, 0.0  ;;  %v1676_v51 = vadd.f32 %v11176_v41, %v1637_v42  ;;  %v1201_v17 = vadd.f32 %v1200_v45, %v11153_v27  ;;  %v14346_v25 = vsel %vm11251_vm7, 4294967295, %v14345_v25  ;;  %v10725_v21 = vld [vmem:[%s14149_s3 + $0xa0] sm:$0xff]   ;;  %v10726_v49 = vld [vmem:[%s14149_s3 + $0x98] sm:$0xff]  }
 0x10c   : > { %v1640_v53 = vadd.f32 %v9763_v37, %v1209_v43  ;;  %v9766_v54 = vpop.f32.mrf.mxu0  ;;  %14347 = vst [vmem:[#allocation14_spill] sm:$0xff] %v14346_v25  ;;  %9883 = vmatpush3.bf16.msra.mxu1 %v10723_v55  ;;  %v9730_v59 = vpop.f32.mrf.mxu1  ;;  %v11255_v61 = vpack.c.bf16 %v1799_v15, %v1798_v19  ;;  %v11264_v27 = vpack.c.bf16 %v1801_v57, %v1800_v47  ;;  %v11285_v3 = vadd.s32 80, %v11098_v60  ;;  %vm11336_vm12 = vmpackc.low %vm14215_vm3, %vm11299_vm10 }
 0x10d   : > { %14344 = vst [vmem:[#allocation13_spill] sm:$0xff] %v11244_v50  ;;  %v1927_v63 = vpack.c.bf16 %v11237_v23, %v11209_v56  ;;  %9884 = vmatprep.subr.bf16.mxu1 %v10724_v13  ;;  %1774 = vst [vmem:[#allocation2 + $0x68] sm:$0xff] %v11244_v50  ;;  %v11271_v55 = vmax.f32 %v1676_v51, 0.0  ;;  %v1638_v9 = vadd.f32 %v1537_v44, %v1201_v17  ;;  %v10750_v23 = vld [vmem:[%s14149_s3 + $0x150] sm:$0xff]   ;;  %v10753_v56 = vld [vmem:[%s14149_s3 + $0x140] sm:$0xff]  }
 0x10e   : > { %v1679_v7 = vadd.f32 %v11176_v41, %v1640_v53  ;;  %v1222_v11 = vadd.f32 %v9730_v59, %v11157_v29  ;;  %v1550_v37 = vpop.f32.mrf.mxu0  ;;  %9849 = vmatmul.mubr.msk.bf16.vlgmr.msra.gmra.mxu0 %vm11251_vm7, %v11255_v61  ;;  %v1213_v39 = vpop.f32.mrf.mxu1  ;;  %v299_v53 = vadd.s32 96, %v11098_v60 }
 0x10f   : > { %14351 = vst [vmem:[#allocation16_spill] sm:$0xff] %v11271_v55  ;;  %9805 = vmatmul.mubr.bf16.gmra.mxu1 %v1927_v63  ;;  %1772 = vst [vmem:[#allocation2 + $0x58] sm:$0xff] %v11271_v55  ;;  %v1677_v42 = vadd.f32 %v11176_v41, %v1638_v9  ;;  %v1214_v44 = vadd.f32 %v1213_v39, %v11161_v31  ;;  %9852 = vmatprep.mubr.msk.bf16.mxu0 %vm11260_vm8, %v11264_v27  ;;  %v393_v63 = vand.u32 15, %v11285_v3  ;;  %v1802_v39 = vld [vmem:[#allocation2 + $0x37] sm:$0xff] }
 0x110   : > { %v11288_v29 = vmax.f32 %v1679_v7, 0.0  ;;  %v1643_v43 = vadd.f32 %v9766_v54, %v1222_v11  ;;  %v9767_v45 = vpop.f32.mrf.mxu0  ;;  %9808 = vmatprep.mubr.bf16.mxu1 %v1928_v0  ;;  %v9731_v15 = vpop.f32.mrf.mxu1  ;;  %9885 = vmatpush3.bf16.msra.mxu1 %v10724_v13  ;;  %v1805_v3 = vld [vmem:[#allocation2 + $0x4f] sm:$0xff]  ;;  %v407_v47 = vand.u32 15, %v299_v53  ;;  %v11359_v53 = vadd.s32 112, %v11098_v60 }
 0x111   : > { %9929 = vmatpush3.bf16.msra.mxu0 %v11120_v4  ;;  %v11306_v31 = vmax.f32 %v1677_v42, 0.0  ;;  %v1641_v54 = vadd.f32 %v1550_v37, %v1214_v44  ;;  %v1225_v48 = vadd.f32 %v9731_v15, %v11165_v33  ;;  %9886 = vmatprep.subr.bf16.mxu1 %v10725_v21  ;;  %v10730_v4 = vld [vmem:[%s14149_s3 + $0xe8] sm:$0xff]   ;;  %v14359_v42 = vmov 0 }
 0x112   : > { %14352 = vst [vmem:[#allocation17_spill] sm:$0xff] %v11288_v29  ;;  %1775 = vst [vmem:[#allocation2 + $0x70] sm:$0xff] %v11288_v29  ;;  %v1682_v17 = vadd.f32 %v11176_v41, %v1643_v43  ;;  %v1553_v19 = vpop.f32.mrf.mxu0  ;;  %9930 = vmatprep.subr.bf16.mxu0 %v10728_v38  ;;  %v1216_v13 = vpop.f32.mrf.mxu1  ;;  %v1803_v57 = vld [vmem:[#allocation2 + $0x3f] sm:$0xff]  ;;  %v1804_v59 = vld [vmem:[#allocation2 + $0x47] sm:$0xff]  ;;  %v1930_v0 = vpack.c.bf16 %v11288_v29, %v11244_v50  ;;  %v14360_v42 = vsel %vm11327_vm11, 4294967295, %v14359_v42  ;;  %vm11369_vm13 = vcmp.ne.s32.totalorder %v393_v63, 0 }
 0x113   : > { %14357 = vst [vmem:[#allocation18_spill] sm:$0xff] %v11306_v31  ;;  %1773 = vst [vmem:[#allocation2 + $0x60] sm:$0xff] %v11306_v31  ;;  %v1680_v7 = vadd.f32 %v11176_v41, %v1641_v54  ;;  %v1644_v9 = vadd.f32 %v9767_v45, %v1225_v48  ;;  %v1217_v11 = vadd.f32 %v1216_v13, %v11169_v35  ;;  %v14362_v45 = vmov 0 }
 0x114   : > { %v11320_v33 = vmax.f32 %v1682_v17, 0.0  ;;  %v9770_v37 = vpop.f32.mrf.mxu0  ;;  %14361 = vst [vmem:[#allocation20_spill] sm:$0xff] %v14360_v42  ;;  %v9734_v43 = vpop.f32.mrf.mxu1  ;;  %v11331_v44 = vpack.c.bf16 %v1803_v57, %v1802_v39  ;;  %v14363_v45 = vsel %vm11336_vm12, 4294967295, %v14362_v45  ;;  %v11340_v35 = vpack.c.bf16 %v1805_v3, %v1804_v59  ;;  %9887 = vmatpush3.bf16.msra.mxu1 %v10725_v21  ;;  %v10729_v57 = vld [vmem:[%s14149_s3 + $0x90] sm:$0xff]   ;;  %v10731_v21 = vld [vmem:[%s14149_s3 + $0xe0] sm:$0xff]   ;;  %vm11400_vm15 = vmpackc.low %vm14215_vm3, %vm11369_vm13 }
 0x115   : > { %14364 = vst [vmem:[#allocation21_spill] sm:$0xff] %v14363_v45  ;;  %v1929_v15 = vpack.c.bf16 %v11306_v31, %v11271_v55  ;;  %9931 = vmatpush3.bf16.msra.mxu0 %v10728_v38  ;;  %v11345_v17 = vmax.f32 %v1680_v7, 0.0  ;;  %v1683_v54 = vadd.f32 %v11176_v41, %v1644_v9  ;;  %v1642_v51 = vadd.f32 %v1553_v19, %v1217_v11  ;;  %v10745_v55 = vld [vmem:[%s14149_s3 + $0x110] sm:$0xff]  }
 0x116   : > { %14358 = vst [vmem:[#allocation19_spill] sm:$0xff] %v11320_v33  ;;  %1778 = vst [vmem:[#allocation2 + $0x88] sm:$0xff] %v11320_v33  ;;  %v1238_v48 = vadd.f32 %v9734_v43, %v11123_v6  ;;  %v1566_v13 = vpop.f32.mrf.mxu0  ;;  %9888 = vmatprep.subr.bf16.mxu1 %v10726_v49  ;;  %9932 = vmatprep.subr.bf16.mxu0 %v10730_v4  ;;  %v1229_v38 = vpop.f32.mrf.mxu1  ;;  %vm11373_vm14 = vcmp.ne.s32.totalorder %v407_v47, 0  ;;  %v303_v43 = vadd.s32 128, %v11098_v60  ;;  %v10732_v47 = vld [vmem:[%s14149_s3 + $0x88] sm:$0xff]   ;;  %v14373_v31 = vmov 0 }
 0x117   : > { %14365 = vst [vmem:[#allocation22_spill] sm:$0xff] %v11345_v17  ;;  %9853 = vmatmul.mubr.msk.bf16.gmra.mxu0 %vm11327_vm11, %v11331_v44  ;;  %9809 = vmatmul.mubr.bf16.gmra.mxu1 %v1929_v15  ;;  %1776 = vst [vmem:[#allocation2 + $0x78] sm:$0xff] %v11345_v17  ;;  %v11362_v6 = vmax.f32 %v1683_v54, 0.0  ;;  %v1681_v19 = vadd.f32 %v11176_v41, %v1642_v51  ;;  %v1230_v7 = vadd.f32 %v1229_v38, %v11125_v8 }
 0x118   : > { %v1647_v59 = vadd.f32 %v9770_v37, %v1238_v48  ;;  %9856 = vmatprep.mubr.msk.bf16.mxu0 %vm11336_vm12, %v11340_v35  ;;  %v9771_v9 = vpop.f32.mrf.mxu0  ;;  %9812 = vmatprep.mubr.bf16.mxu1 %v1930_v0  ;;  %v9735_v11 = vpop.f32.mrf.mxu1  ;;  %v421_v48 = vand.u32 15, %v11359_v53  ;;  %v14374_v31 = vsel %vm11400_vm15, 4294967295, %v14373_v31  ;;  %vm11409_vm0 = vmpackc.low %vm14215_vm3, %vm11373_vm14 }
 0x119   : > { %14366 = vst [vmem:[#allocation23_spill] sm:$0xff] %v11362_v6  ;;  %9889 = vmatpush3.bf16.msra.mxu1 %v10726_v49  ;;  %9933 = vmatpush3.bf16.msra.mxu0 %v10730_v4  ;;  %1779 = vst [vmem:[#allocation2 + $0x90] sm:$0xff] %v11362_v6  ;;  %v11379_v8 = vmax.f32 %v1681_v19, 0.0  ;;  %v1645_v0 = vadd.f32 %v1566_v13, %v1230_v7  ;;  %v1241_v63 = vadd.f32 %v9735_v11, %v11127_v10  ;;  %v10733_v49 = vld [vmem:[%s14149_s3 + $0xd8] sm:$0xff]   ;;  %v1809_v53 = vld [vmem:[#allocation2 + $0x6f] sm:$0xff] }
 0x11a   : > { %v1686_v37 = vadd.f32 %v11176_v41, %v1647_v59  ;;  %v1569_v15 = vpop.f32.mrf.mxu0  ;;  %9890 = vmatprep.subr.bf16.mxu1 %v10729_v57  ;;  %9934 = vmatprep.subr.bf16.mxu0 %v10731_v21  ;;  %v1232_v4 = vpop.f32.mrf.mxu1  ;;  %v1807_v54 = vld [vmem:[#allocation2 + $0x5f] sm:$0xff]  ;;  %v1808_v51 = vld [vmem:[#allocation2 + $0x67] sm:$0xff]  ;;  %v1932_v13 = vpack.c.bf16 %v11362_v6, %v11320_v33  ;;  %v1806_v11 = vld [vmem:[#allocation2 + $0x57] sm:$0xff]  ;;  %14375 = vst [vmem:[#allocation26_spill] sm:$0xff] %v14374_v31  ;;  %vm11442_vm1 = vcmp.ne.s32.totalorder %v421_v48, 0 }
 0x11b   : > { %14371 = vst [vmem:[#allocation24_spill] sm:$0xff] %v11379_v8  ;;  %1777 = vst [vmem:[#allocation2 + $0x80] sm:$0xff] %v11379_v8  ;;  %v1684_v38 = vadd.f32 %v11176_v41, %v1645_v0  ;;  %v1648_v19 = vadd.f32 %v9771_v9, %v1241_v63  ;;  %v1233_v59 = vadd.f32 %v1232_v4, %v11129_v12  ;;  %v14376_v9 = vmov 0 }
 0x11c   : > { %v11393_v10 = vmax.f32 %v1686_v37, 0.0  ;;  %v9774_v7 = vpop.f32.mrf.mxu0  ;;  %v9738_v6 = vpop.f32.mrf.mxu1  ;;  %v11404_v33 = vpack.c.bf16 %v1807_v54, %v1806_v11  ;;  %v14377_v9 = vsel %vm11409_vm0, 4294967295, %v14376_v9  ;;  %v11413_v12 = vpack.c.bf16 %v1809_v53, %v1808_v51  ;;  %v10734_v51 = vld [vmem:[%s14149_s3 + $0xd0] sm:$0xff]   ;;  %vm11475_vm5 = vmpackc.low %vm14215_vm3, %vm11442_vm1 }
 0x11d   : > { %14378 = vst [vmem:[#allocation27_spill] sm:$0xff] %v14377_v9  ;;  %v1931_v39 = vpack.c.bf16 %v11379_v8, %v11345_v17  ;;  %v435_v37 = vand.u32 15, %v303_v43  ;;  %9891 = vmatpush3.bf16.msra.mxu1 %v10729_v57  ;;  %9935 = vmatpush3.bf16.msra.mxu0 %v10731_v21  ;;  %v11418_v0 = vmax.f32 %v1684_v38, 0.0  ;;  %v1687_v63 = vadd.f32 %v11176_v41, %v1648_v19  ;;  %v10735_v57 = vld [vmem:[%s14149_s3 + $0x80] sm:$0xff]  }
 0x11e   : > { %14372 = vst [vmem:[#allocation25_spill] sm:$0xff] %v11393_v10  ;;  %1782 = vst [vmem:[#allocation2 + $0xa8] sm:$0xff] %v11393_v10  ;;  %v1646_v3 = vadd.f32 %v1569_v15, %v1233_v59  ;;  %v1254_v4 = vadd.f32 %v9738_v6, %v11131_v14  ;;  %v1582_v54 = vpop.f32.mrf.mxu0  ;;  %9892 = vmatprep.subr.bf16.mxu1 %v10732_v47  ;;  %9936 = vmatprep.subr.bf16.mxu0 %v10733_v49  ;;  %v1245_v21 = vpop.f32.mrf.mxu1  ;;  %v11432_v43 = vadd.s32 144, %v11098_v60  ;;  %v1810_v8 = vld [vmem:[#allocation2 + $0x77] sm:$0xff]  ;;  %v14387_v17 = vmov 0 }
 0x11f   : > { %14379 = vst [vmem:[#allocation28_spill] sm:$0xff] %v11418_v0  ;;  %9857 = vmatmul.mubr.msk.bf16.gmra.mxu0 %vm11400_vm15, %v11404_v33  ;;  %9813 = vmatmul.mubr.bf16.gmra.mxu1 %v1931_v39  ;;  %1780 = vst [vmem:[#allocation2 + $0x98] sm:$0xff] %v11418_v0  ;;  %v11435_v14 = vmax.f32 %v1687_v63, 0.0  ;;  %v1246_v38 = vadd.f32 %v1245_v21, %v11133_v16  ;;  %vm11446_vm2 = vcmp.ne.s32.totalorder %v435_v37, 0  ;;  %v307_v39 = vadd.s32 160, %v11098_v60  ;;  %v10736_v37 = vld [vmem:[%s14149_s3 + $0xc8] sm:$0xff]  }
 0x120   : > { %v1685_v6 = vadd.f32 %v11176_v41, %v1646_v3  ;;  %v1651_v15 = vadd.f32 %v9774_v7, %v1254_v4  ;;  %9860 = vmatprep.mubr.msk.bf16.mxu0 %vm11409_vm0, %v11413_v12  ;;  %v9775_v19 = vpop.f32.mrf.mxu0  ;;  %9816 = vmatprep.mubr.bf16.mxu1 %v1932_v13  ;;  %v9739_v59 = vpop.f32.mrf.mxu1  ;;  %v449_v21 = vand.u32 15, %v11432_v43  ;;  %v14388_v17 = vsel %vm11475_vm5, 4294967295, %v14387_v17  ;;  %v1813_v43 = vld [vmem:[#allocation2 + $0x8f] sm:$0xff]  ;;  %vm11484_vm6 = vmpackc.low %vm14215_vm3, %vm11446_vm2 }
 0x121   : > { %14380 = vst [vmem:[#allocation29_spill] sm:$0xff] %v11435_v14  ;;  %9893 = vmatpush3.bf16.msra.mxu1 %v10732_v47  ;;  %9937 = vmatpush3.bf16.msra.mxu0 %v10733_v49  ;;  %1783 = vst [vmem:[#allocation2 + $0xb0] sm:$0xff] %v11435_v14  ;;  %v1649_v13 = vadd.f32 %v1582_v54, %v1246_v38  ;;  %v1257_v48 = vadd.f32 %v9739_v59, %v11135_v18  ;;  %v11462_v47 = vld [vmem:[%s14149_s3 + $0x138] sm:$0xff]  }
 0x122   : > { %v11452_v16 = vmax.f32 %v1685_v6, 0.0  ;;  %v1690_v7 = vadd.f32 %v11176_v41, %v1651_v15  ;;  %v1585_v63 = vpop.f32.mrf.mxu0  ;;  %9938 = vmatprep.subr.bf16.mxu0 %v10734_v51  ;;  %9894 = vmatprep.subr.bf16.mxu1 %v10735_v57  ;;  %v1248_v49 = vpop.f32.mrf.mxu1  ;;  %v1811_v3 = vld [vmem:[#allocation2 + $0x7f] sm:$0xff]  ;;  %v1812_v4 = vld [vmem:[#allocation2 + $0x87] sm:$0xff]  ;;  %v1934_v18 = vpack.c.bf16 %v11435_v14, %v11393_v10  ;;  %14389 = vst [vmem:[#allocation32_spill] sm:$0xff] %v14388_v17  ;;  %vm11518_vm9 = vcmp.ne.s32.totalorder %v449_v21, 0 }
 0x123   : > { %v1688_v6 = vadd.f32 %v11176_v41, %v1649_v13  ;;  %v1652_v15 = vadd.f32 %v9775_v19, %v1257_v48  ;;  %v1249_v38 = vadd.f32 %v1248_v49, %v11139_v20  ;;  %v11479_v10 = vpack.c.bf16 %v1811_v3, %v1810_v8  ;;  %v10737_v3 = vld [vmem:[%s14149_s3 + $0xc0] sm:$0xff]   ;;  %v11534_v21 = vld [vmem:[%s14149_s3 + $0x178] sm:$0xff]   ;;  %vm11546_vm13 = vmpackc.low %vm14215_vm3, %vm11518_vm9 }
 0x124   : > { %14385 = vst [vmem:[#allocation30_spill] sm:$0xff] %v11452_v16  ;;  %1781 = vst [vmem:[#allocation2 + $0xa0] sm:$0xff] %v11452_v16  ;;  %v11468_v54 = vmax.f32 %v1690_v7, 0.0  ;;  %v9778_v59 = vpop.f32.mrf.mxu0  ;;  %v9742_v14 = vpop.f32.mrf.mxu1  ;;  %v14390_v19 = vmov 0  ;;  %v11488_v20 = vpack.c.bf16 %v1813_v43, %v1812_v4  ;;  %v1933_v11 = vpack.c.bf16 %v11452_v16, %v11418_v0 }
 0x125   : > { %v14391_v19 = vsel %vm11484_vm6, 4294967295, %v14390_v19  ;;  %v463_v7 = vand.u32 15, %v307_v39  ;;  %9939 = vmatpush3.bf16.msra.mxu0 %v10734_v51  ;;  %9895 = vmatpush3.bf16.msra.mxu1 %v10735_v57  ;;  %v11493_v13 = vmax.f32 %v1688_v6, 0.0  ;;  %v1691_v8 = vadd.f32 %v11176_v41, %v1652_v15 }
 0x126   : > { %14386 = vst [vmem:[#allocation31_spill] sm:$0xff] %v11468_v54  ;;  %14392 = vst [vmem:[#allocation33_spill] sm:$0xff] %v14391_v19  ;;  %v1650_v53 = vadd.f32 %v1585_v63, %v1249_v38  ;;  %v1270_v48 = vadd.f32 %v9742_v14, %v11143_v22  ;;  %v1598_v49 = vpop.f32.mrf.mxu0  ;;  %9940 = vmatprep.subr.bf16.mxu0 %v10736_v37  ;;  %9976 = vmatprep.subr.bf16.mxu1 %v11462_v47  ;;  %v1261_v51 = vpop.f32.mrf.mxu1  ;;  %v11505_v57 = vadd.s32 176, %v11098_v60  ;;  %v14401_v16 = vmov 0 }
 0x127   : > { %1786 = vst [vmem:[#allocation2 + $0xc8] sm:$0xff] %v11468_v54  ;;  %14393 = vst [vmem:[#allocation34_spill] sm:$0xff] %v11493_v13  ;;  %9861 = vmatmul.mubr.msk.bf16.gmra.mxu0 %vm11475_vm5, %v11479_v10  ;;  %9817 = vmatmul.mubr.bf16.gmra.mxu1 %v1933_v11  ;;  %v11508_v39 = vadd.s32 192, %v11098_v60  ;;  %v11511_v22 = vmax.f32 %v1691_v8, 0.0  ;;  %v1262_v4 = vadd.f32 %v1261_v51, %v11147_v24  ;;  %vm11522_vm10 = vcmp.ne.s32.totalorder %v463_v7, 0 }
 0x128   : > { %1784 = vst [vmem:[#allocation2 + $0xb8] sm:$0xff] %v11493_v13  ;;  %v1689_v14 = vadd.f32 %v11176_v41, %v1650_v53  ;;  %v1655_v63 = vadd.f32 %v9778_v59, %v1270_v48  ;;  %9864 = vmatprep.mubr.msk.bf16.mxu0 %vm11484_vm6, %v11488_v20  ;;  %v9779_v6 = vpop.f32.mrf.mxu0  ;;  %9820 = vmatprep.mubr.bf16.mxu1 %v1934_v18  ;;  %v9743_v15 = vpop.f32.mrf.mxu1  ;;  %v14402_v16 = vsel %vm11546_vm13, 4294967295, %v14401_v16  ;;  %vm11555_vm14 = vmpackc.low %vm14215_vm3, %vm11522_vm10 }
 0x129   : > { %14394 = vst [vmem:[#allocation35_spill] sm:$0xff] %v11511_v22  ;;  %9941 = vmatpush3.bf16.msra.mxu0 %v10736_v37  ;;  %1787 = vst [vmem:[#allocation2 + $0xd0] sm:$0xff] %v11511_v22  ;;  %v1653_v11 = vadd.f32 %v1598_v49, %v1262_v4  ;;  %v1273_v8 = vadd.f32 %v9743_v15, %v11151_v26  ;;  %v477_v37 = vand.u32 15, %v11505_v57  ;;  %v491_v51 = vand.u32 15, %v11508_v39  ;;  %v1814_v15 = vld [vmem:[#allocation2 + $0x97] sm:$0xff]  ;;  %v1817_v57 = vld [vmem:[#allocation2 + $0xaf] sm:$0xff] }
 0x12a   : > { %v11527_v59 = vmax.f32 %v1689_v14, 0.0  ;;  %v1694_v24 = vadd.f32 %v11176_v41, %v1655_v63  ;;  %v1601_v18 = vpop.f32.mrf.mxu0  ;;  %9942 = vmatprep.subr.bf16.mxu0 %v10737_v3  ;;  %v1264_v7 = vpop.f32.mrf.mxu1  ;;  %14403 = vst [vmem:[#allocation38_spill] sm:$0xff] %v14402_v16 }
 0x12b   : > { %v1815_v53 = vld [vmem:[#allocation2 + $0x9f] sm:$0xff]  ;;  %v1816_v48 = vld [vmem:[#allocation2 + $0xa7] sm:$0xff]  ;;  %v1692_v26 = vadd.f32 %v11176_v41, %v1653_v11  ;;  %v1656_v49 = vadd.f32 %v9779_v6, %v1273_v8  ;;  %v1265_v63 = vadd.f32 %v1264_v7, %v11155_v28  ;;  %v14404_v6 = vmov 0 }
 0x12c   : > { %14399 = vst [vmem:[#allocation36_spill] sm:$0xff] %v11527_v59  ;;  %1785 = vst [vmem:[#allocation2 + $0xc0] sm:$0xff] %v11527_v59  ;;  %v11539_v14 = vmax.f32 %v1694_v24, 0.0  ;;  %v9782_v4 = vpop.f32.mrf.mxu0  ;;  %v9746_v39 = vpop.f32.mrf.mxu1  ;;  %v11550_v0 = vpack.c.bf16 %v1815_v53, %v1814_v15  ;;  %v14405_v6 = vsel %vm11555_vm14, 4294967295, %v14404_v6  ;;  %v11559_v28 = vpack.c.bf16 %v1817_v57, %v1816_v48 }
 0x12d   : > { %14406 = vst [vmem:[#allocation39_spill] sm:$0xff] %v14405_v6  ;;  %v1935_v38 = vpack.c.bf16 %v11527_v59, %v11493_v13  ;;  %v1936_v24 = vpack.c.bf16 %v11511_v22, %v11468_v54  ;;  %9943 = vmatpush3.bf16.msra.mxu0 %v10737_v3  ;;  %v11566_v11 = vmax.f32 %v1692_v26, 0.0  ;;  %v1695_v43 = vadd.f32 %v11176_v41, %v1656_v49 }
 0x12e   : > { %14400 = vst [vmem:[#allocation37_spill] sm:$0xff] %v11539_v14  ;;  %1790 = vst [vmem:[#allocation2 + $0xe8] sm:$0xff] %v11539_v14  ;;  %v1654_v8 = vadd.f32 %v1601_v18, %v1265_v63  ;;  %v1286_v7 = vadd.f32 %v9746_v39, %v11159_v30  ;;  %v1614_v53 = vpop.f32.mrf.mxu0  ;;  %10024 = vmatprep.subr.bf16.mxu0 %v11534_v21  ;;  %v1277_v48 = vpop.f32.mrf.mxu1  ;;  %v313_v3 = vadd.s32 208, %v11098_v60  ;;  %v315_v15 = vadd.s32 224, %v11098_v60 }
 0x12f   : > { %14407 = vst [vmem:[#allocation40_spill] sm:$0xff] %v11566_v11  ;;  %9865 = vmatmul.mubr.msk.bf16.gmra.mxu0 %vm11546_vm13, %v11550_v0  ;;  %9821 = vmatmul.mubr.bf16.gmra.mxu1 %v1935_v38  ;;  %1788 = vst [vmem:[#allocation2 + $0xd8] sm:$0xff] %v11566_v11  ;;  %v11577_v26 = vmax.f32 %v1695_v43, 0.0  ;;  %v1278_v49 = vadd.f32 %v1277_v48, %v11163_v32  ;;  %vm11584_vm1 = vcmp.ne.s32.totalorder %v477_v37, 0  ;;  %vm11588_vm2 = vcmp.ne.s32.totalorder %v491_v51, 0  ;;  %v1818_v29 = vld [vmem:[#allocation2 + $0xb7] sm:$0xff] }
 0x130   : > { %v1693_v18 = vadd.f32 %v11176_v41, %v1654_v8  ;;  %v1659_v30 = vadd.f32 %v9782_v4, %v1286_v7  ;;  %9868 = vmatprep.mubr.msk.bf16.mxu0 %vm11555_vm14, %v11559_v28  ;;  %9824 = vmatprep.mubr.bf16.mxu1 %v1936_v24  ;;  %v9747_v63 = vpop.f32.mrf.mxu1  ;;  %v9783_v57 = vpop.f32.mrf.mxu0  ;;  %v288_v43 = vadd.s32 8, %v11098_v60  ;;  %v505_v59 = vand.u32 15, %v313_v3  ;;  %vm11607_vm9 = vmpackc.low %vm14215_vm3, %vm11584_vm1 }
 0x131   : > { %14408 = vst [vmem:[#allocation41_spill] sm:$0xff] %v11577_v26  ;;  %1791 = vst [vmem:[#allocation2 + $0xf0] sm:$0xff] %v11577_v26  ;;  %v1657_v24 = vadd.f32 %v1614_v53, %v1278_v49  ;;  %v1289_v8 = vadd.f32 %v9747_v63, %v11167_v34  ;;  %v519_v51 = vand.u32 15, %v315_v15  ;;  %v14415_v34 = vmov 0  ;;  %v1821_v53 = vld [vmem:[#allocation2 + $0xcf] sm:$0xff] }
 0x132   : > { %v11594_v32 = vmax.f32 %v1693_v18, 0.0  ;;  %v11597_v4 = vadd.f32 %v11176_v41, %v1659_v30  ;;  %v1280_v37 = vpop.f32.mrf.mxu1  ;;  %v14416_v34 = vsel %vm11607_vm9, 4294967295, %v14415_v34  ;;  %v1617_v3 = vpop.f32.mrf.mxu0  ;;  %vm11616_vm10 = vmpackc.low %vm14215_vm3, %vm11588_vm2  ;;  %v14418_v30 = vmov 0 }
 0x133   : > { %v1819_v7 = vld [vmem:[#allocation2 + $0xbf] sm:$0xff]  ;;  %v1820_v48 = vld [vmem:[#allocation2 + $0xc7] sm:$0xff]  ;;  %v1696_v13 = vadd.f32 %v11176_v41, %v1657_v24  ;;  %v1660_v54 = vadd.f32 %v9783_v57, %v1289_v8  ;;  %v1281_v18 = vadd.f32 %v1280_v37, %v11171_v36  ;;  %14417 = vst [vmem:[#allocation44_spill] sm:$0xff] %v14416_v34  ;;  %v14419_v30 = vsel %vm11616_vm10, 4294967295, %v14418_v30 }
 0x134   : > { %14413 = vst [vmem:[#allocation42_spill] sm:$0xff] %v11594_v32  ;;  %14414 = vst [vmem:[#allocation43_spill] sm:$0xff] %v11597_v4  ;;  %v14181_v22 = vmax.f32 %v11597_v4, 0.0  ;;  %v11611_v15 = vpack.c.bf16 %v1819_v7, %v1818_v29  ;;  %v11620_v36 = vpack.c.bf16 %v1821_v53, %v1820_v48  ;;  %v1937_v49 = vpack.c.bf16 %v11594_v32, %v11566_v11  ;;  %v2375_v8 = vld [vmem:[#allocation2 + $0x9] sm:$0xff]  ;;  %v2376_v48 = vld [vmem:[#allocation2 + $0x11] sm:$0xff] }
 0x135   : > { %1789 = vst [vmem:[#allocation2 + $0xe0] sm:$0xff] %v11594_v32  ;;  %14420 = vst [vmem:[#allocation45_spill] sm:$0xff] %v14419_v30  ;;  %v330_v63 = vand.u32 15, %v288_v43  ;;  %v11626_v57 = vmax.f32 %v1696_v13, 0.0  ;;  %v11629_v29 = vadd.f32 %v11176_v41, %v1660_v54  ;;  %v1658_v39 = vadd.f32 %v1617_v3, %v1281_v18 }
 0x136   : > { %1794 = vst [vmem:[#allocation2 + $0x108] sm:$0xff] %v14181_v22  ;;  %v1938_v38 = vpack.c.bf16 %v11577_v26, %v11539_v14  ;;  %vm9171_vm1 = vcmp.ne.s32.totalorder %v505_v59, 0  ;;  %v317_v43 = vadd.s32 240, %v11098_v60  ;;  %vm11643_vm2 = vcmp.ne.s32.totalorder %v519_v51, 0  ;;  %v1822_v7 = vld [vmem:[#allocation2 + $0xd7] sm:$0xff]  ;;  %v2379_v22 = vld [vmem:[#allocation2 + $0x29] sm:$0xff] }
 0x137   : > { %14421 = vst [vmem:[#allocation46_spill] sm:$0xff] %v11626_v57  ;;  %14422 = vst [vmem:[#allocation47_spill] sm:$0xff] %v11629_v29  ;;  %9869 = vmatmul.mubr.msk.bf16.gmra.mxu0 %vm11607_vm9, %v11611_v15  ;;  %9825 = vmatmul.mubr.bf16.gmra.mxu1 %v1937_v49  ;;  %v14174_v13 = vmax.f32 %v11629_v29, 0.0  ;;  %v1697_v24 = vadd.f32 %v11176_v41, %v1658_v39  ;;  %v290_v59 = vadd.s32 24, %v11098_v60  ;;  %v14426_v41 = vmov 0  ;;  %v10741_v26 = vld [vmem:[%s14149_s3 + $0x120] sm:$0xff]  }
 0x138   : > { %1792 = vst [vmem:[#allocation2 + $0xf8] sm:$0xff] %v11626_v57  ;;  %9872 = vmatprep.mubr.msk.bf16.mxu0 %vm11616_vm10, %v11620_v36  ;;  %9828 = vmatprep.mubr.bf16.mxu1 %v1938_v38  ;;  %vm11653_vm9 = vmpackc.low %vm14215_vm3, %vm9171_vm1  ;;  %vm9174_vm10 = vcmp.ne.s32.totalorder %v330_v63, 15  ;;  %v292_v51 = vadd.s32 40, %v11098_v60  ;;  %v1825_v3 = vld [vmem:[#allocation2 + $0xef] sm:$0xff]  ;;  %v533_v49 = vand.u32 15, %v317_v43  ;;  %v14429_v38 = vmov 0 }
 0x139   : > { %1795 = vst [vmem:[#allocation2 + $0x110] sm:$0xff] %v14174_v13  ;;  %v11650_v37 = vmax.f32 %v1697_v24, 0.0  ;;  %v14427_v41 = vsel %vm11653_vm9, 4294967295, %v14426_v41  ;;  %vm11664_vm14 = vmpackc.low %vm14215_vm3, %vm11643_vm2  ;;  %v14432_v13 = vmov 0  ;;  %v344_v43 = vand.u32 15, %v290_v59  ;;  %v2377_v59 = vld [vmem:[#allocation2 + $0x19] sm:$0xff] }
 0x13a   : > { %14428 = vst [vmem:[#allocation49_spill] sm:$0xff] %v14427_v41  ;;  %v14430_v38 = vsel %vm11664_vm14, 4294967295, %v14429_v38  ;;  %vm11673_vm1 = vmpackc.low %vm9174_vm10, %vm14215_vm3  ;;  %vm9173_vm2 = vcmp.ne.s32.totalorder %v533_v49, 0  ;;  %v294_v54 = vadd.s32 56, %v11098_v60  ;;  %v2380_v49 = vld [vmem:[#allocation2 + $0x31] sm:$0xff] }
 0x13b   : > { %14425 = vst [vmem:[#allocation48_spill] sm:$0xff] %v11650_v37  ;;  %1793 = vst [vmem:[#allocation2 + $0x100] sm:$0xff] %v11650_v37  ;;  %v1939_v63 = vpack.c.bf16 %v11650_v37, %v11626_v57  ;;  %v14433_v13 = vsel %vm11673_vm1, 4294967295, %v14432_v13  ;;  %vm9175_vm10 = vcmp.ne.s32.totalorder %v344_v43, 15  ;;  %v14438_v43 = vmov 0 }
 0x13c   : > { %v1823_v18 = vld [vmem:[#allocation2 + $0xdf] sm:$0xff]  ;;  %v1824_v53 = vld [vmem:[#allocation2 + $0xe7] sm:$0xff]  ;;  %14431 = vst [vmem:[#allocation50_spill] sm:$0xff] %v14430_v38  ;;  %14434 = vst [vmem:[#allocation51_spill] sm:$0xff] %v14433_v13  ;;  %v14441_v37 = vmov 0  ;;  %v11706_v29 = vpack.c.bf16 %v2380_v49, %v2379_v22  ;;  %v298_v22 = vadd.s32 88, %v11098_v60 }
 0x13d   : > { %v11659_v39 = vpack.c.bf16 %v1823_v18, %v1822_v7  ;;  %v11668_v24 = vpack.c.bf16 %v1825_v3, %v1824_v53  ;;  %v8107_v7 = vpack.c.bf16 %v2376_v48, %v2375_v8  ;;  %v358_v18 = vand.u32 15, %v292_v51  ;;  %vm11687_vm13 = vmpackc.low %vm14215_vm3, %vm9173_vm2  ;;  %v2378_v48 = vld [vmem:[#allocation2 + $0x21] sm:$0xff] }
 0x13e   : > { %v14435_v8 = vmov 0  ;;  %v296_v51 = vadd.s32 72, %v11098_v60  ;;  %v14444_v49 = vmov 0  ;;  %v14447_v57 = vmov 0 }
 0x13f   : > { %9873 = vmatmul.mubr.msk.bf16.gmra.mxu0 %vm11653_vm9, %v11659_v39  ;;  %9829 = vmatmul.mubr.bf16.gmra.mxu1 %v1939_v63  ;;  %v14436_v8 = vsel %vm11687_vm13, 4294967295, %v14435_v8  ;;  %vm9176_vm9 = vcmp.ne.s32.totalorder %v358_v18, 15  ;;  %v1826_v53 = vld [vmem:[#allocation2 + $0xf7] sm:$0xff]  ;;  %v372_v18 = vand.u32 15, %v294_v54 }
 0x140   : > { %9876 = vmatprep.mubr.msk.bf16.mxu0 %vm11664_vm14, %v11668_v24  ;;  %9896 = vmatprep.mubr.msk.bf16.mxu1 %vm11673_vm1, %v8107_v7  ;;  %14437 = vst [vmem:[#allocation52_spill] sm:$0xff] %v14436_v8  ;;  %vm11695_vm1 = vmpackc.low %vm9175_vm10, %vm14215_vm3  ;;  %v11699_v7 = vpack.c.bf16 %v2378_v48, %v2377_v59  ;;  %v2381_v54 = vld [vmem:[#allocation2 + $0x39] sm:$0xff]  ;;  %v2382_v59 = vld [vmem:[#allocation2 + $0x41] sm:$0xff] }
 0x141   : > { %v14439_v43 = vsel %vm11695_vm1, 4294967295, %v14438_v43  ;;  %vm11702_vm2 = vmpackc.low %vm9176_vm9, %vm14215_vm3  ;;  %vm9177_vm9 = vcmp.ne.s32.totalorder %v372_v18, 15  ;;  %v10740_v48 = vld [vmem:[%s14149_s3 + $0x128] sm:$0xff]   ;;  %v4344_v8 = vld [vmem:[#allocation2 + $0x51] sm:$0xff] }
 0x142   : > { %v1827_v3 = vld [vmem:[#allocation2 + $0xff] sm:$0xff]  ;;  %14440 = vst [vmem:[#allocation53_spill] sm:$0xff] %v14439_v43  ;;  %v14442_v37 = vsel %vm11702_vm2, 4294967295, %v14441_v37  ;;  %v2383_v18 = vld [vmem:[#allocation2 + $0x49] sm:$0xff] }
 0x143   : > { %v11692_v63 = vpack.c.bf16 %v1827_v3, %v1826_v53  ;;  %14443 = vst [vmem:[#allocation54_spill] sm:$0xff] %v14442_v37  ;;  %v10739_v53 = vld [vmem:[%s14149_s3 + $0x130] sm:$0xff]   ;;  %v386_v3 = vand.u32 15, %v296_v51  ;;  %v300_v51 = vadd.s32 104, %v11098_v60 }
 0x145   : > { %vm9178_vm10 = vcmp.ne.s32.totalorder %v386_v3, 15  ;;  %v400_v3 = vand.u32 15, %v298_v22  ;;  %v414_v32 = vand.u32 15, %v300_v51  ;;  %v2385_v22 = vld [vmem:[#allocation2 + $0x59] sm:$0xff]  ;;  %v10746_v51 = vld [vmem:[%s14149_s3 + $0x168] sm:$0xff]  }
 0x147   : > { %9877 = vmatmul.mubr.msk.bf16.gmra.mxu0 %vm11687_vm13, %v11692_v63  ;;  %9897 = vmatmul.mubr.msk.bf16.vlgmr.msra.gmra.mxu1 %vm11695_vm1, %v11699_v7 }
 0x148   : > { %9944 = vmatprep.mubr.msk.bf16.mxu0 %vm11105_vm4, %v11255_v61  ;;  %9900 = vmatprep.mubr.msk.bf16.mxu1 %vm11702_vm2, %v11706_v29  ;;  %v2384_v61 = vld [vmem:[#allocation2 + $0x51] sm:$0xff]  ;;  %vm11730_vm4 = vmpackc.low %vm9177_vm9, %vm14215_vm3  ;;  %vm9179_vm9 = vcmp.ne.s32.totalorder %v400_v3, 15 }
 0x149   : > { %9977 = vmatpush3.bf16.msra.mxu1 %v11462_v47  ;;  %v14445_v49 = vsel %vm11730_vm4, 4294967295, %v14444_v49  ;;  %v11734_v47 = vpack.c.bf16 %v2382_v59, %v2381_v54  ;;  %vm11737_vm2 = vmpackc.low %vm9178_vm10, %vm14215_vm3  ;;  %v11741_v4 = vpack.c.bf16 %v2384_v61, %v2383_v18  ;;  %v10744_v54 = vld [vmem:[%s14149_s3 + $0x170] sm:$0xff]   ;;  %v2386_v59 = vld [vmem:[#allocation2 + $0x61] sm:$0xff]  ;;  %vm9180_vm10 = vcmp.ne.s32.totalorder %v414_v32, 15 }
 0x14a   : > { %9978 = vmatprep.subr.bf16.mxu1 %v10739_v53  ;;  %14446 = vst [vmem:[#allocation55_spill] sm:$0xff] %v14445_v49  ;;  %v14448_v57 = vsel %vm11737_vm2, 4294967295, %v14447_v57  ;;  %v14450_v61 = vmov 0  ;;  %v11775_v18 = vpack.c.bf16 %v2386_v59, %v2385_v22  ;;  %v14453_v32 = vmov 0  ;;  %v10747_v22 = vld [vmem:[%s14149_s3 + $0x160] sm:$0xff]  }
 0x14b   : > { %14449 = vst [vmem:[#allocation56_spill] sm:$0xff] %v14448_v57  ;;  %v308_v59 = vadd.s32 168, %v11098_v60 }
 0x14d   : > { %9979 = vmatpush3.bf16.msra.mxu1 %v10739_v53  ;;  %v302_v53 = vadd.s32 120, %v11098_v60  ;;  %v470_v50 = vand.u32 15, %v308_v59  ;;  %v2396_v59 = vld [vmem:[#allocation2 + $0xb1] sm:$0xff] }
 0x14e   : > { %9980 = vmatprep.subr.bf16.mxu1 %v10740_v48 }
 0x14f   : > { %9945 = vmatmul.mubr.msk.bf16.vlgmr.msra.gmra.mxu0 %vm11251_vm7, %v11264_v27  ;;  %9901 = vmatmul.mubr.msk.bf16.gmra.mxu1 %vm11730_vm4, %v11734_v47  ;;  %v10742_v27 = vld [vmem:[%s14149_s3 + $0x118] sm:$0xff]   ;;  %vm11778_vm7 = vmpackc.low %vm9180_vm10, %vm14215_vm3  ;;  %v428_v3 = vand.u32 15, %v302_v53  ;;  %v2390_v53 = vld [vmem:[#allocation2 + $0x81] sm:$0xff] }
 0x150   : > { %9948 = vmatprep.mubr.msk.bf16.mxu0 %vm11260_vm8, %v11331_v44  ;;  %9904 = vmatprep.mubr.msk.bf16.mxu1 %vm11737_vm2, %v11741_v4  ;;  %v304_v44 = vadd.s32 136, %v11098_v60  ;;  %vm11771_vm8 = vmpackc.low %vm9179_vm9, %vm14215_vm3  ;;  %v14454_v32 = vsel %vm11778_vm7, 4294967295, %v14453_v32 }
 0x151   : > { %9981 = vmatpush3.bf16.msra.mxu1 %v10740_v48  ;;  %10025 = vmatpush3.bf16.msra.mxu0 %v11534_v21  ;;  %v2388_v48 = vld [vmem:[#allocation2 + $0x71] sm:$0xff]  ;;  %v14451_v61 = vsel %vm11771_vm8, 4294967295, %v14450_v61  ;;  %v2387_v21 = vld [vmem:[#allocation2 + $0x69] sm:$0xff]  ;;  %14455 = vst [vmem:[#allocation58_spill] sm:$0xff] %v14454_v32  ;;  %vm9181_vm9 = vcmp.ne.s32.totalorder %v428_v3, 15 }
 0x152   : > { %9982 = vmatprep.subr.bf16.mxu1 %v10741_v26  ;;  %10026 = vmatprep.subr.bf16.mxu0 %v10744_v54  ;;  %14452 = vst [vmem:[#allocation57_spill] sm:$0xff] %v14451_v61  ;;  %v11782_v11 = vpack.c.bf16 %v2388_v48, %v2387_v21  ;;  %v442_v14 = vand.u32 15, %v304_v44  ;;  %v2392_v44 = vld [vmem:[#allocation2 + $0x91] sm:$0xff]  ;;  %v2391_v48 = vld [vmem:[#allocation2 + $0x89] sm:$0xff] }
 0x153   : > { %v11822_v3 = vpack.c.bf16 %v2392_v44, %v2391_v48  ;;  %v2395_v44 = vld [vmem:[#allocation2 + $0xa9] sm:$0xff] }
 0x154   : > { %vm9182_vm10 = vcmp.ne.s32.totalorder %v442_v14, 15  ;;  %v14459_v14 = vmov 0 }
 0x155   : > { %9983 = vmatpush3.bf16.msra.mxu1 %v10741_v26  ;;  %10027 = vmatpush3.bf16.msra.mxu0 %v10744_v54  ;;  %v306_v26 = vadd.s32 152, %v11098_v60  ;;  %v2389_v54 = vld [vmem:[#allocation2 + $0x79] sm:$0xff] }
 0x156   : > { %9984 = vmatprep.subr.bf16.mxu1 %v10742_v27  ;;  %10028 = vmatprep.subr.bf16.mxu0 %v10746_v51 }
 0x157   : > { %9949 = vmatmul.mubr.msk.bf16.gmra.mxu0 %vm11327_vm11, %v11340_v35  ;;  %9905 = vmatmul.mubr.msk.bf16.gmra.mxu1 %vm11771_vm8, %v11775_v18  ;;  %v10748_v35 = vld [vmem:[%s14149_s3 + $0x108] sm:$0xff]   ;;  %vm11818_vm11 = vmpackc.low %vm9182_vm10, %vm14215_vm3  ;;  %v456_v21 = vand.u32 15, %v306_v26  ;;  %vm9184_vm10 = vcmp.ne.s32.totalorder %v470_v50, 15  ;;  %v14465_v50 = vmov 0 }
 0x158   : > { %9952 = vmatprep.mubr.msk.bf16.mxu0 %vm11336_vm12, %v11404_v33  ;;  %9908 = vmatprep.mubr.msk.bf16.mxu1 %vm11778_vm7, %v11782_v11  ;;  %v10749_v33 = vld [vmem:[%s14149_s3 + $0x158] sm:$0xff]   ;;  %vm11811_vm12 = vmpackc.low %vm9181_vm9, %vm14215_vm3  ;;  %v14460_v14 = vsel %vm11818_vm11, 4294967295, %v14459_v14  ;;  %v2394_v26 = vld [vmem:[#allocation2 + $0xa1] sm:$0xff] }
 0x159   : > { %9985 = vmatpush3.bf16.msra.mxu1 %v10742_v27  ;;  %10029 = vmatpush3.bf16.msra.mxu0 %v10746_v51  ;;  %v14456_v27 = vmov 0  ;;  %v11815_v51 = vpack.c.bf16 %v2390_v53, %v2389_v54  ;;  %14461 = vst [vmem:[#allocation60_spill] sm:$0xff] %v14460_v14  ;;  %v10751_v54 = vld [vmem:[%s14149_s3 + $0x100] sm:$0xff]   ;;  %vm9183_vm9 = vcmp.ne.s32.totalorder %v456_v21, 15  ;;  %v312_v53 = vadd.s32 200, %v11098_v60 }
 0x15a   : > { %9986 = vmatprep.subr.bf16.mxu1 %v10745_v55  ;;  %10030 = vmatprep.subr.bf16.mxu0 %v10747_v22  ;;  %v14457_v27 = vsel %vm11811_vm12, 4294967295, %v14456_v27  ;;  %v11864_v21 = vpack.c.bf16 %v2396_v59, %v2395_v44 }
 0x15b   : > { %14458 = vst [vmem:[#allocation59_spill] sm:$0xff] %v14457_v27  ;;  %v498_v5 = vand.u32 15, %v312_v53 }
 0x15d   : > { %9987 = vmatpush3.bf16.msra.mxu1 %v10745_v55  ;;  %10031 = vmatpush3.bf16.msra.mxu0 %v10747_v22  ;;  %v310_v55 = vadd.s32 184, %v11098_v60  ;;  %v2393_v22 = vld [vmem:[#allocation2 + $0x99] sm:$0xff] }
 0x15e   : > { %9988 = vmatprep.subr.bf16.mxu1 %v10748_v35  ;;  %10032 = vmatprep.subr.bf16.mxu0 %v10749_v33 }
 0x15f   : > { %9953 = vmatmul.mubr.msk.bf16.gmra.mxu0 %vm11400_vm15, %v11413_v12  ;;  %9909 = vmatmul.mubr.msk.bf16.gmra.mxu1 %vm11811_vm12, %v11815_v51  ;;  %v10752_v12 = vld [vmem:[%s14149_s3 + $0x148] sm:$0xff]   ;;  %vm11860_vm15 = vmpackc.low %vm9184_vm10, %vm14215_vm3  ;;  %v484_v48 = vand.u32 15, %v310_v55  ;;  %vm9186_vm10 = vcmp.ne.s32.totalorder %v498_v5, 15  ;;  %v14471_v5 = vmov 0 }
 0x160   : > { %9956 = vmatprep.mubr.msk.bf16.mxu0 %vm11409_vm0, %v11479_v10  ;;  %9912 = vmatprep.mubr.msk.bf16.mxu1 %vm11818_vm11, %v11822_v3  ;;  %v11850_v10 = vld [vmem:[%s14149_s3 + $0x1b8] sm:$0xff]   ;;  %vm11853_vm0 = vmpackc.low %vm9183_vm9, %vm14215_vm3  ;;  %v14466_v50 = vsel %vm11860_vm15, 4294967295, %v14465_v50  ;;  %v2398_v55 = vld [vmem:[#allocation2 + $0xc1] sm:$0xff] }
 0x161   : > { %9989 = vmatpush3.bf16.msra.mxu1 %v10748_v35  ;;  %10033 = vmatpush3.bf16.msra.mxu0 %v10749_v33  ;;  %v14462_v35 = vmov 0  ;;  %v11857_v33 = vpack.c.bf16 %v2394_v26, %v2393_v22  ;;  %14467 = vst [vmem:[#allocation62_spill] sm:$0xff] %v14466_v50  ;;  %vm9185_vm9 = vcmp.ne.s32.totalorder %v484_v48, 15  ;;  %v11887_v22 = vld [vmem:[%s14149_s3 + $0x1f8] sm:$0xff]   ;;  %v14468_v26 = vmov 0 }
 0x162   : > { %10034 = vmatprep.subr.bf16.mxu0 %v10750_v23  ;;  %9990 = vmatprep.subr.bf16.mxu1 %v10751_v54  ;;  %v14463_v35 = vsel %vm11853_vm0, 4294967295, %v14462_v35 }
 0x163   : > { %14464 = vst [vmem:[#allocation61_spill] sm:$0xff] %v14463_v35 }
 0x165   : > { %10035 = vmatpush3.bf16.msra.mxu0 %v10750_v23  ;;  %9991 = vmatpush3.bf16.msra.mxu1 %v10751_v54  ;;  %v314_v23 = vadd.s32 216, %v11098_v60  ;;  %v2397_v54 = vld [vmem:[#allocation2 + $0xb9] sm:$0xff] }
 0x166   : > { %10036 = vmatprep.subr.bf16.mxu0 %v10752_v12  ;;  %10072 = vmatprep.subr.bf16.mxu1 %v11850_v10  ;;  %v11894_v53 = vpack.c.bf16 %v2398_v55, %v2397_v54  ;;  %v2402_v54 = vld [vmem:[#allocation2 + $0xe1] sm:$0xff]  ;;  %v2404_v55 = vld [vmem:[#allocation2 + $0xf1] sm:$0xff] }
 0x167   : > { %9957 = vmatmul.mubr.msk.bf16.gmra.mxu0 %vm11475_vm5, %v11488_v20  ;;  %9913 = vmatmul.mubr.msk.bf16.gmra.mxu1 %vm11853_vm0, %v11857_v33  ;;  %v316_v20 = vadd.s32 232, %v11098_v60  ;;  %vm11897_vm5 = vmpackc.low %vm9186_vm10, %vm14215_vm3  ;;  %v512_v59 = vand.u32 15, %v314_v23  ;;  %vm14475_vm10 = vnez %v14405_v6  ;;  %v2401_v23 = vld [vmem:[#allocation2 + $0xd9] sm:$0xff] }
 0x168   : > { %9960 = vmatprep.mubr.msk.bf16.mxu0 %vm11484_vm6, %v11550_v0  ;;  %9916 = vmatprep.mubr.msk.bf16.mxu1 %vm11860_vm15, %v11864_v21  ;;  %v2400_v0 = vld [vmem:[#allocation2 + $0xd1] sm:$0xff]  ;;  %vm11890_vm6 = vmpackc.low %vm9185_vm9, %vm14215_vm3  ;;  %v14472_v5 = vsel %vm11897_vm5, 4294967295, %v14471_v5  ;;  %vm14474_vm9 = vnez %v14402_v16 }
 0x169   : > { %10037 = vmatpush3.bf16.msra.mxu0 %v10752_v12  ;;  %v14469_v26 = vsel %vm11890_vm6, 4294967295, %v14468_v26  ;;  %v2399_v12 = vld [vmem:[#allocation2 + $0xc9] sm:$0xff]  ;;  %14473 = vst [vmem:[#allocation64_spill] sm:$0xff] %v14472_v5  ;;  %v526_v48 = vand.u32 15, %v316_v20  ;;  %vm9187_vm3 = vcmp.ne.s32.totalorder %v512_v59, 15  ;;  %v11922_v20 = vpack.c.bf16 %v2402_v54, %v2401_v23  ;;  %v3051_v54 = vld [vmem:[#allocation2 + $0x18] sm:$0xff] }
 0x16a   : > { %10038 = vmatprep.subr.bf16.mxu0 %v10753_v56  ;;  %14470 = vst [vmem:[#allocation63_spill] sm:$0xff] %v14469_v26  ;;  %v11901_v44 = vpack.c.bf16 %v2400_v0, %v2399_v12  ;;  %v2403_v0 = vld [vmem:[#allocation2 + $0xe9] sm:$0xff]  ;;  %v14485_v23 = vmov 0 }
 0x16b   : > { %vm9188_vm15 = vcmp.ne.s32.totalorder %v526_v48, 15  ;;  %v11929_v59 = vpack.c.bf16 %v2404_v55, %v2403_v0  ;;  %v2406_v48 = vld [vmem:[#allocation2 + $0x101] sm:$0xff]  ;;  %v3054_v0 = vld [vmem:[#allocation2 + $0x30] sm:$0xff] }
 0x16d   : > { %10039 = vmatpush3.bf16.msra.mxu0 %v10753_v56  ;;  %v318_v56 = vadd.s32 248, %v11098_v60  ;;  %v2405_v60 = vld [vmem:[#allocation2 + $0xf9] sm:$0xff] }
 0x16e   : > { %10120 = vmatprep.subr.bf16.mxu0 %v11887_v22 }
 0x16f   : > { %9961 = vmatmul.mubr.msk.bf16.gmra.mxu0 %vm14474_vm9, %v11559_v28  ;;  %9917 = vmatmul.mubr.msk.bf16.gmra.mxu1 %vm11890_vm6, %v11894_v53  ;;  %vm14476_vm9 = vmmov 1   ;;  %v14477_v28 = vmov 0  ;;  %v540_v12 = vand.u32 15, %v318_v56  ;;  %v3052_v56 = vld [vmem:[#allocation2 + $0x20] sm:$0xff] }
 0x170   : > { %9964 = vmatprep.mubr.msk.bf16.mxu0 %vm14475_vm10, %v11611_v15  ;;  %9920 = vmatprep.mubr.msk.bf16.mxu1 %vm11897_vm5, %v11901_v44  ;;  %vm11918_vm0 = vmpackc.low %vm9187_vm3, %vm14476_vm9  ;;  %v14480_v15 = vmov 0  ;;  %vm14483_vm5 = vnez %v14416_v34  ;;  %vm14484_vm3 = vnez %v14419_v30  ;;  %v3083_v55 = vpack.c.bf16 %v3052_v56, %v3051_v54  ;;  %v3055_v54 = vld [vmem:[#allocation2 + $0x38] sm:$0xff] }
 0x171   : > { %v14478_v28 = vsel %vm11918_vm0, 4294967295, %v14477_v28  ;;  %vm11925_vm10 = vmpackc.low %vm9188_vm15, %vm14476_vm9  ;;  %vm9189_vm15 = vcmp.ne.s32.totalorder %v540_v12, 15  ;;  %v3056_v12 = vld [vmem:[#allocation2 + $0x40] sm:$0xff] }
 0x172   : > { %14479 = vst [vmem:[#allocation65_spill] sm:$0xff] %v14478_v28  ;;  %v14481_v15 = vsel %vm11925_vm10, 4294967295, %v14480_v15  ;;  %vm11944_vm6 = vmpackc.low %vm9189_vm15, %vm14476_vm9  ;;  %vm14489_vm9 = vnez %v14433_v13  ;;  %vm14490_vm15 = vnez %v14442_v37  ;;  %v4781_v37 = vld [vmem:[#allocation2 + $0xf] sm:$0xff] }
 0x173   : > { %14482 = vst [vmem:[#allocation66_spill] sm:$0xff] %v14481_v15  ;;  %v14486_v23 = vsel %vm11944_vm6, 4294967295, %v14485_v23 }
 0x174   : > { %14487 = vst [vmem:[#allocation67_spill] sm:$0xff] %v14486_v23 }
 0x177   : > { %9965 = vmatmul.mubr.msk.bf16.gmra.mxu0 %vm14483_vm5, %v11620_v36  ;;  %9921 = vmatmul.mubr.msk.bf16.gmra.mxu1 %vm11918_vm0, %v11922_v20  ;;  %v11948_v36 = vpack.c.bf16 %v2406_v48, %v2405_v60  ;;  %v2744_v60 = vld [vmem:[#allocation2 + $0x10f] sm:$0xff] }
 0x178   : > { %9968 = vmatprep.mubr.msk.bf16.mxu0 %vm14484_vm3, %v11659_v39  ;;  %9924 = vmatprep.mubr.msk.bf16.mxu1 %vm11925_vm10, %v11929_v59  ;;  %vm14488_vm3 = vnez %v14427_v41  ;;  %v2743_v39 = vld [vmem:[#allocation2 + $0x107] sm:$0xff] }
 0x179   : > { %v3053_v48 = vld [vmem:[#allocation2 + $0x28] sm:$0xff]  ;;  %v11959_v46 = vpack.c.bf16 %v2744_v60, %v2743_v39  ;;  %v3060_v39 = vld [vmem:[#allocation2 + $0x60] sm:$0xff]  ;;  %v3059_v60 = vld [vmem:[#allocation2 + $0x58] sm:$0xff] }
 0x17a   : > { %v11961_v56 = vpack.c.bf16 %v3054_v0, %v3053_v48  ;;  %v3057_v0 = vld [vmem:[#allocation2 + $0x48] sm:$0xff]  ;;  %v11982_v48 = vpack.c.bf16 %v3060_v39, %v3059_v60  ;;  %v10763_v60 = vld [vmem:[%s14149_s3 + $0x1e0] sm:$0xff]  }
 0x17b   : > { %v3061_v39 = vld [vmem:[#allocation2 + $0x68] sm:$0xff] }
 0x17f   : > { %9969 = vmatmul.mubr.msk.bf16.gmra.mxu0 %vm14488_vm3, %v11668_v24  ;;  %9925 = vmatmul.mubr.msk.bf16.gmra.mxu1 %vm11944_vm6, %v11948_v36  ;;  %v11963_v24 = vpack.c.bf16 %v3056_v12, %v3055_v54  ;;  %v10758_v54 = vld [vmem:[%s14149_s3 + $0x198] sm:$0xff]  }
 0x180   : > { %9972 = vmatprep.mubr.msk.bf16.mxu0 %vm11664_vm14, %v11692_v63  ;;  %9992 = vmatprep.mubr.bf16.mxu1 %v3083_v55  ;;  %v3058_v63 = vld [vmem:[#allocation2 + $0x50] sm:$0xff]  ;;  %v10756_v55 = vld [vmem:[%s14149_s3 + $0x1a8] sm:$0xff]  }
 0x181   : > { %v11980_v12 = vpack.c.bf16 %v3058_v63, %v3057_v0  ;;  %v3064_v63 = vld [vmem:[#allocation2 + $0x80] sm:$0xff] }
 0x187   : > { %9973 = vmatmul.mubr.msk.bf16.gmra.mxu0 %vm11687_vm13, %v11959_v46  ;;  %9993 = vmatmul.mubr.bf16.vlgmr.msra.gmra.mxu1 %v11961_v56 }
 0x188   : > { %10040 = vmatprep.mubr.msk.bf16.mxu0 %vm14489_vm9, %v11699_v7  ;;  %9996 = vmatprep.mubr.bf16.mxu1 %v11963_v24  ;;  %v10757_v7 = vld [vmem:[%s14149_s3 + $0x1a0] sm:$0xff]  }
 0x189   : > { %10073 = vmatpush3.bf16.msra.mxu1 %v11850_v10  ;;  %v10760_v10 = vld [vmem:[%s14149_s3 + $0x1f0] sm:$0xff]  }
 0x18a   : > { %10074 = vmatprep.subr.bf16.mxu1 %v10755_v40 }
 0x18d   : > { %10075 = vmatpush3.bf16.msra.mxu1 %v10755_v40  ;;  %v3062_v40 = vld [vmem:[#allocation2 + $0x70] sm:$0xff] }
 0x18e   : > { %10076 = vmatprep.subr.bf16.mxu1 %v10756_v55  ;;  %v12005_v0 = vpack.c.bf16 %v3062_v40, %v3061_v39  ;;  %v3068_v40 = vld [vmem:[#allocation2 + $0xa0] sm:$0xff] }
 0x18f   : > { %10041 = vmatmul.mubr.msk.bf16.vlgmr.msra.gmra.mxu0 %vm11695_vm1, %v11706_v29  ;;  %9997 = vmatmul.mubr.bf16.gmra.mxu1 %v11980_v12  ;;  %v10762_v29 = vld [vmem:[%s14149_s3 + $0x1e8] sm:$0xff]  }
 0x190   : > { %10044 = vmatprep.mubr.msk.bf16.mxu0 %vm14490_vm15, %v11734_v47  ;;  %10000 = vmatprep.mubr.bf16.mxu1 %v11982_v48  ;;  %v3063_v47 = vld [vmem:[#allocation2 + $0x78] sm:$0xff] }
 0x191   : > { %10077 = vmatpush3.bf16.msra.mxu1 %v10756_v55  ;;  %10121 = vmatpush3.bf16.msra.mxu0 %v11887_v22  ;;  %v12007_v55 = vpack.c.bf16 %v3064_v63, %v3063_v47  ;;  %v10761_v22 = vld [vmem:[%s14149_s3 + $0x190] sm:$0xff]   ;;  %v3065_v63 = vld [vmem:[#allocation2 + $0x88] sm:$0xff]  ;;  %v10767_v47 = vld [vmem:[%s14149_s3 + $0x180] sm:$0xff]  }
 0x192   : > { %10078 = vmatprep.subr.bf16.mxu1 %v10757_v7  ;;  %10122 = vmatprep.subr.bf16.mxu0 %v10760_v10 }
 0x195   : > { %10079 = vmatpush3.bf16.msra.mxu1 %v10757_v7  ;;  %10123 = vmatpush3.bf16.msra.mxu0 %v10760_v10  ;;  %v3066_v7 = vld [vmem:[#allocation2 + $0x90] sm:$0xff]  ;;  %v10764_v10 = vld [vmem:[%s14149_s3 + $0x188] sm:$0xff]  }
 0x196   : > { %10080 = vmatprep.subr.bf16.mxu1 %v10758_v54  ;;  %10124 = vmatprep.subr.bf16.mxu0 %v10762_v29  ;;  %v12029_v39 = vpack.c.bf16 %v3066_v7, %v3065_v63  ;;  %v3072_v7 = vld [vmem:[#allocation2 + $0xc0] sm:$0xff] }
 0x197   : > { %10045 = vmatmul.mubr.msk.bf16.gmra.mxu0 %vm11730_vm4, %v11741_v4  ;;  %10001 = vmatmul.mubr.bf16.gmra.mxu1 %v12005_v0  ;;  %v10765_v4 = vld [vmem:[%s14149_s3 + $0x1d8] sm:$0xff]  }
 0x198   : > { %10048 = vmatprep.mubr.msk.bf16.mxu0 %vm11737_vm2, %v11775_v18  ;;  %10004 = vmatprep.mubr.bf16.mxu1 %v12007_v55  ;;  %v3067_v18 = vld [vmem:[#allocation2 + $0x98] sm:$0xff] }
 0x199   : > { %10081 = vmatpush3.bf16.msra.mxu1 %v10758_v54  ;;  %10125 = vmatpush3.bf16.msra.mxu0 %v10762_v29  ;;  %v12031_v54 = vpack.c.bf16 %v3068_v40, %v3067_v18  ;;  %v10766_v29 = vld [vmem:[%s14149_s3 + $0x1d0] sm:$0xff]   ;;  %v3069_v40 = vld [vmem:[#allocation2 + $0xa8] sm:$0xff] }
 0x19a   : > { %10082 = vmatprep.subr.bf16.mxu1 %v10761_v22  ;;  %10126 = vmatprep.subr.bf16.mxu0 %v10763_v60  ;;  %v3074_v18 = vld [vmem:[#allocation2 + $0xd0] sm:$0xff] }
 0x19d   : > { %10083 = vmatpush3.bf16.msra.mxu1 %v10761_v22  ;;  %10127 = vmatpush3.bf16.msra.mxu0 %v10763_v60  ;;  %v3070_v22 = vld [vmem:[#allocation2 + $0xb0] sm:$0xff]  ;;  %v10768_v60 = vld [vmem:[%s14149_s3 + $0x1c8] sm:$0xff]  }
 0x19e   : > { %10084 = vmatprep.subr.bf16.mxu1 %v10764_v10  ;;  %10128 = vmatprep.subr.bf16.mxu0 %v10765_v4  ;;  %v12055_v63 = vpack.c.bf16 %v3070_v22, %v3069_v40 }
 0x19f   : > { %10049 = vmatmul.mubr.msk.bf16.gmra.mxu0 %vm11771_vm8, %v11782_v11  ;;  %10005 = vmatmul.mubr.bf16.gmra.mxu1 %v12029_v39  ;;  %v12053_v11 = vld [vmem:[%s14149_s3 + $0x238] sm:$0xff]  }
 0x1a0   : > { %10052 = vmatprep.mubr.msk.bf16.mxu0 %vm11778_vm7, %v11815_v51  ;;  %10008 = vmatprep.mubr.bf16.mxu1 %v12031_v54  ;;  %v3071_v51 = vld [vmem:[#allocation2 + $0xb8] sm:$0xff]  ;;  %vm14493_vm7 = vnez %v14469_v26 }
 0x1a1   : > { %10085 = vmatpush3.bf16.msra.mxu1 %v10764_v10  ;;  %10129 = vmatpush3.bf16.msra.mxu0 %v10765_v4  ;;  %v12057_v10 = vpack.c.bf16 %v3072_v7, %v3071_v51  ;;  %v10769_v4 = vld [vmem:[%s14149_s3 + $0x1c0] sm:$0xff]   ;;  %v3075_v7 = vld [vmem:[#allocation2 + $0xd8] sm:$0xff] }
 0x1a2   : > { %10130 = vmatprep.subr.bf16.mxu0 %v10766_v29  ;;  %10086 = vmatprep.subr.bf16.mxu1 %v10767_v47 }
 0x1a5   : > { %10131 = vmatpush3.bf16.msra.mxu0 %v10766_v29  ;;  %10087 = vmatpush3.bf16.msra.mxu1 %v10767_v47  ;;  %v3076_v29 = vld [vmem:[#allocation2 + $0xe0] sm:$0xff]  ;;  %v3073_v47 = vld [vmem:[#allocation2 + $0xc8] sm:$0xff] }
 0x1a6   : > { %10132 = vmatprep.subr.bf16.mxu0 %v10768_v60  ;;  %10168 = vmatprep.subr.bf16.mxu1 %v12053_v11  ;;  %v12071_v22 = vpack.c.bf16 %v3074_v18, %v3073_v47  ;;  %v12073_v40 = vpack.c.bf16 %v3076_v29, %v3075_v7  ;;  %v3081_v29 = vld [vmem:[#allocation2 + $0x108] sm:$0xff] }
 0x1a7   : > { %10053 = vmatmul.mubr.msk.bf16.gmra.mxu0 %vm11811_vm12, %v11822_v3  ;;  %10009 = vmatmul.mubr.bf16.gmra.mxu1 %v12055_v63  ;;  %vm14491_vm12 = vnez %v14463_v35  ;;  %v3078_v3 = vld [vmem:[#allocation2 + $0xf0] sm:$0xff] }
 0x1a8   : > { %10056 = vmatprep.mubr.msk.bf16.mxu0 %vm11818_vm11, %v11857_v33  ;;  %10012 = vmatprep.mubr.bf16.mxu1 %v12057_v10  ;;  %vm14492_vm11 = vnez %v14466_v50  ;;  %v3080_v33 = vld [vmem:[#allocation2 + $0x100] sm:$0xff]  ;;  %v3696_v7 = vld [vmem:[#allocation2 + $0x2f] sm:$0xff] }
 0x1a9   : > { %10133 = vmatpush3.bf16.msra.mxu0 %v10768_v60  ;;  %v3077_v60 = vld [vmem:[#allocation2 + $0xe8] sm:$0xff] }
 0x1aa   : > { %10134 = vmatprep.subr.bf16.mxu0 %v10769_v4  ;;  %v12083_v51 = vpack.c.bf16 %v3078_v3, %v3077_v60  ;;  %v3699_v60 = vld [vmem:[#allocation2 + $0x47] sm:$0xff] }
 0x1ab   : > { %v4363_v50 = vld [vmem:[#allocation2 + $0xe9] sm:$0xff] }
 0x1ad   : > { %10135 = vmatpush3.bf16.msra.mxu0 %v10769_v4  ;;  %v3079_v4 = vld [vmem:[#allocation2 + $0xf8] sm:$0xff] }
 0x1ae   : > { %v12085_v18 = vpack.c.bf16 %v3080_v33, %v3079_v4  ;;  %v3698_v33 = vld [vmem:[#allocation2 + $0x3f] sm:$0xff]  ;;  %v3697_v4 = vld [vmem:[#allocation2 + $0x37] sm:$0xff] }
 0x1af   : > { %10057 = vmatmul.mubr.msk.bf16.gmra.mxu0 %vm14491_vm12, %v11864_v21  ;;  %10013 = vmatmul.mubr.bf16.gmra.mxu1 %v12071_v22  ;;  %vm14494_vm12 = vnez %v14472_v5  ;;  %v3082_v21 = vld [vmem:[#allocation2 + $0x110] sm:$0xff] }
 0x1b0   : > { %10060 = vmatprep.mubr.msk.bf16.mxu0 %vm14492_vm11, %v11894_v53  ;;  %10016 = vmatprep.mubr.bf16.mxu1 %v12073_v40  ;;  %v3695_v53 = vld [vmem:[#allocation2 + $0x27] sm:$0xff]  ;;  %v12095_v47 = vpack.c.bf16 %v3082_v21, %v3081_v29  ;;  %v3700_v29 = vld [vmem:[#allocation2 + $0x4f] sm:$0xff] }
 0x1b1   : > { %v8395_v3 = vpack.c.bf16 %v3696_v7, %v3695_v53  ;;  %v8399_v53 = vpack.c.bf16 %v3698_v33, %v3697_v4  ;;  %v8403_v7 = vpack.c.bf16 %v3700_v29, %v3699_v60  ;;  %v3703_v60 = vld [vmem:[#allocation2 + $0x67] sm:$0xff]  ;;  %v3701_v4 = vld [vmem:[#allocation2 + $0x57] sm:$0xff] }
 0x1b7   : > { %10061 = vmatmul.mubr.msk.bf16.gmra.mxu0 %vm14493_vm7, %v11901_v44  ;;  %10017 = vmatmul.mubr.bf16.gmra.mxu1 %v12083_v51  ;;  %v3387_v44 = vld [vmem:[#allocation2 + $0x109] sm:$0xff] }
 0x1b8   : > { %10064 = vmatprep.mubr.msk.bf16.mxu0 %vm14494_vm12, %v11922_v20  ;;  %10020 = vmatprep.mubr.bf16.mxu1 %v12085_v18  ;;  %vm14495_vm12 = vnez %v14330_v2  ;;  %v3388_v20 = vld [vmem:[#allocation2 + $0x111] sm:$0xff] }
 0x1b9   : > { %v12106_v21 = vpack.c.bf16 %v3388_v20, %v3387_v44  ;;  %v3702_v44 = vld [vmem:[#allocation2 + $0x5f] sm:$0xff]  ;;  %v10772_v20 = vld [vmem:[%s14149_s3 + $0x228] sm:$0xff]  }
 0x1ba   : > { %v8407_v1 = vpack.c.bf16 %v3702_v44, %v3701_v4  ;;  %v3706_v4 = vld [vmem:[#allocation2 + $0x7f] sm:$0xff] }
 0x1bf   : > { %10065 = vmatmul.mubr.msk.bf16.gmra.mxu0 %vm11918_vm0, %v11929_v59  ;;  %10021 = vmatmul.mubr.bf16.gmra.mxu1 %v12095_v47  ;;  %v10771_v59 = vld [vmem:[%s14149_s3 + $0x230] sm:$0xff]  }
 0x1c0   : > { %10068 = vmatprep.mubr.msk.bf16.mxu0 %vm11925_vm10, %v11948_v36  ;;  %10088 = vmatprep.mubr.msk.bf16.mxu1 %vm14495_vm12, %v8395_v3  ;;  %vm14496_vm12 = vnez %v14346_v25  ;;  %vm14497_vm10 = vnez %v14349_v62  ;;  %v3708_v62 = vld [vmem:[#allocation2 + $0x8f] sm:$0xff] }
 0x1c6   : > { %v9802_v36 = vpop.f32.mrf.mxu1 }
 0x1c7   : > { %10069 = vmatmul.mubr.msk.bf16.gmra.mxu0 %vm11944_vm6, %v12106_v21  ;;  %10089 = vmatmul.mubr.msk.bf16.vlgmr.msra.gmra.mxu1 %vm14496_vm12, %v8399_v53  ;;  %v3704_v53 = vld [vmem:[#allocation2 + $0x6f] sm:$0xff]  ;;  %vm14499_vm12 = vnez %v14363_v45 }
 0x1c8   : > { %10136 = vmatprep.mubr.bf16.mxu0 %v11961_v56  ;;  %10092 = vmatprep.mubr.msk.bf16.mxu1 %vm14497_vm10, %v8403_v7  ;;  %v2039_v3 = vpop.f32.mrf.mxu1  ;;  %v8411_v56 = vpack.c.bf16 %v3704_v53, %v3703_v60  ;;  %vm14498_vm10 = vnez %v14360_v42 }
 0x1c9   : > { %10169 = vmatpush3.bf16.msra.mxu1 %v12053_v11  ;;  %v10773_v11 = vld [vmem:[%s14149_s3 + $0x220] sm:$0xff]  }
 0x1ca   : > { %10170 = vmatprep.subr.bf16.mxu1 %v10771_v59  ;;  %v9803_v33 = vpop.f32.mrf.mxu1 }
 0x1cc   : > { %v2042_v29 = vpop.f32.mrf.mxu1 }
 0x1cd   : > { %10171 = vmatpush3.bf16.msra.mxu1 %v10771_v59 }
 0x1ce   : > { %10172 = vmatprep.subr.bf16.mxu1 %v10772_v20  ;;  %v9850_v7 = vpop.f32.mrf.mxu0 }
 0x1cf   : > { %10137 = vmatmul.mubr.bf16.vlgmr.msra.gmra.mxu0 %v11963_v24  ;;  %v9806_v58 = vpop.f32.mrf.mxu1  ;;  %10093 = vmatmul.mubr.msk.bf16.gmra.mxu1 %vm14498_vm10, %v8407_v1  ;;  %v12129_v52 = vadd.f32 %v9850_v7, %v9802_v36  ;;  %v10774_v24 = vld [vmem:[%s14149_s3 + $0x218] sm:$0xff]   ;;  %v3707_v36 = vld [vmem:[#allocation2 + $0x87] sm:$0xff]  ;;  %vm14501_vm10 = vnez %v14377_v9 }
 0x1d0   : > { %10140 = vmatprep.mubr.bf16.mxu0 %v11980_v12  ;;  %10096 = vmatprep.mubr.msk.bf16.mxu1 %vm14499_vm12, %v8411_v56  ;;  %v2248_v59 = vpop.f32.mrf.mxu0  ;;  %v3705_v12 = vld [vmem:[#allocation2 + $0x77] sm:$0xff]  ;;  %vm14500_vm12 = vnez %v14374_v31 }
 0x1d1   : > { %v2055_v44 = vpop.f32.mrf.mxu1  ;;  %10173 = vmatpush3.bf16.msra.mxu1 %v10772_v20  ;;  %v12134_v60 = vadd.f32 %v2248_v59, %v2039_v3  ;;  %v8415_v56 = vpack.c.bf16 %v3706_v4, %v3705_v12  ;;  %v8419_v3 = vpack.c.bf16 %v3708_v62, %v3707_v36  ;;  %v10775_v59 = vld [vmem:[%s14149_s3 + $0x210] sm:$0xff]  }
 0x1d2   : > { %10174 = vmatprep.subr.bf16.mxu1 %v10773_v11  ;;  %v9851_v53 = vpop.f32.mrf.mxu0 }
 0x1d3   : > { %v9807_v1 = vpop.f32.mrf.mxu1  ;;  %v12139_v7 = vadd.f32 %v9851_v53, %v9803_v33 }
 0x1d4   : > { %v2251_v42 = vpop.f32.mrf.mxu0 }
 0x1d5   : > { %v2058_v45 = vpop.f32.mrf.mxu1  ;;  %10175 = vmatpush3.bf16.msra.mxu1 %v10773_v11  ;;  %v12141_v20 = vadd.f32 %v2251_v42, %v2042_v29  ;;  %v3710_v11 = vld [vmem:[#allocation2 + $0x9f] sm:$0xff] }
 0x1d6   : > { %10176 = vmatprep.subr.bf16.mxu1 %v10774_v24 }
 0x1d7   : > { %v9854_v25 = vpop.f32.mrf.mxu0  ;;  %10141 = vmatmul.mubr.bf16.gmra.mxu0 %v11982_v48  ;;  %v9810_v2 = vpop.f32.mrf.mxu1  ;;  %10097 = vmatmul.mubr.msk.bf16.gmra.mxu1 %vm14500_vm12, %v8415_v56  ;;  %v10776_v48 = vld [vmem:[%s14149_s3 + $0x208] sm:$0xff]   ;;  %vm14503_vm12 = vnez %v14391_v19 }
 0x1d8   : > { %v12149_v33 = vadd.f32 %v9854_v25, %v9806_v58  ;;  %10144 = vmatprep.mubr.bf16.mxu0 %v12005_v0  ;;  %10100 = vmatprep.mubr.msk.bf16.mxu1 %vm14501_vm10, %v8419_v3  ;;  %v3711_v58 = vld [vmem:[#allocation2 + $0xa7] sm:$0xff]  ;;  %v3709_v0 = vld [vmem:[#allocation2 + $0x97] sm:$0xff]  ;;  %v3712_v3 = vld [vmem:[#allocation2 + $0xaf] sm:$0xff]  ;;  %vm14502_vm10 = vnez %v14388_v17 }
 0x1d9   : > { %v2264_v62 = vpop.f32.mrf.mxu0  ;;  %v2071_v42 = vpop.f32.mrf.mxu1  ;;  %10177 = vmatpush3.bf16.msra.mxu1 %v10774_v24  ;;  %v8423_v56 = vpack.c.bf16 %v3710_v11, %v3709_v0  ;;  %v3715_v0 = vld [vmem:[#allocation2 + $0xc7] sm:$0xff] }
 0x1da   : > { %v12154_v29 = vadd.f32 %v2264_v62, %v2055_v44  ;;  %10178 = vmatprep.subr.bf16.mxu1 %v10775_v59  ;;  %v8427_v44 = vpack.c.bf16 %v3712_v3, %v3711_v58  ;;  %v10777_v62 = vld [vmem:[%s14149_s3 + $0x200] sm:$0xff]  }
 0x1db   : > { %v9855_v4 = vpop.f32.mrf.mxu0  ;;  %v9811_v53 = vpop.f32.mrf.mxu1 }
 0x1dc   : > { %v12159_v25 = vadd.f32 %v9855_v4, %v9807_v1  ;;  %v3714_v4 = vld [vmem:[#allocation2 + $0xbf] sm:$0xff] }
 0x1dd   : > { %v2267_v36 = vpop.f32.mrf.mxu0  ;;  %v2074_v12 = vpop.f32.mrf.mxu1  ;;  %10179 = vmatpush3.bf16.msra.mxu1 %v10775_v59 }
 0x1de   : > { %v12161_v24 = vadd.f32 %v2267_v36, %v2058_v45  ;;  %10180 = vmatprep.subr.bf16.mxu1 %v10776_v48 }
 0x1df   : > { %v9858_v9 = vpop.f32.mrf.mxu0  ;;  %10145 = vmatmul.mubr.bf16.gmra.mxu0 %v12007_v55  ;;  %v9814_v31 = vpop.f32.mrf.mxu1  ;;  %10101 = vmatmul.mubr.msk.bf16.gmra.mxu1 %vm14502_vm10, %v8423_v56  ;;  %v3713_v56 = vld [vmem:[#allocation2 + $0xb7] sm:$0xff]  ;;  %vm14505_vm10 = vnez %v14405_v6 }
 0x1e0   : > { %v12169_v1 = vadd.f32 %v9858_v9, %v9810_v2  ;;  %10148 = vmatprep.mubr.bf16.mxu0 %v12029_v39  ;;  %10104 = vmatprep.mubr.msk.bf16.mxu1 %vm14503_vm12, %v8427_v44  ;;  %v8431_v3 = vpack.c.bf16 %v3714_v4, %v3713_v56  ;;  %v3716_v39 = vld [vmem:[#allocation2 + $0xcf] sm:$0xff]  ;;  %vm14504_vm12 = vnez %v14402_v16  ;;  %v3717_v56 = vld [vmem:[#allocation2 + $0xd7] sm:$0xff] }
 0x1e1   : > { %v2280_v45 = vpop.f32.mrf.mxu0  ;;  %v2087_v59 = vpop.f32.mrf.mxu1  ;;  %10181 = vmatpush3.bf16.msra.mxu1 %v10776_v48  ;;  %v8435_v44 = vpack.c.bf16 %v3716_v39, %v3715_v0  ;;  %v3719_v0 = vld [vmem:[#allocation2 + $0xe7] sm:$0xff] }
 0x1e2   : > { %v12174_v11 = vadd.f32 %v2280_v45, %v2071_v42  ;;  %10182 = vmatprep.subr.bf16.mxu1 %v10777_v62 }
 0x1e3   : > { %v9859_v58 = vpop.f32.mrf.mxu0  ;;  %v9815_v55 = vpop.f32.mrf.mxu1 }
 0x1e4   : > { %v12176_v36 = vadd.f32 %v9859_v58, %v9811_v53 }
 0x1e5   : > { %v2283_v2 = vpop.f32.mrf.mxu0  ;;  %v2090_v9 = vpop.f32.mrf.mxu1  ;;  %10183 = vmatpush3.bf16.msra.mxu1 %v10777_v62 }
 0x1e6   : > { %v12178_v19 = vadd.f32 %v2283_v2, %v2074_v12  ;;  %v3718_v12 = vld [vmem:[#allocation2 + $0xdf] sm:$0xff] }
 0x1e7   : > { %v9862_v17 = vpop.f32.mrf.mxu0  ;;  %10149 = vmatmul.mubr.bf16.gmra.mxu0 %v12031_v54  ;;  %v9818_v42 = vpop.f32.mrf.mxu1  ;;  %10105 = vmatmul.mubr.msk.bf16.gmra.mxu1 %vm14504_vm12, %v8431_v3 }
 0x1e8   : > { %v12183_v48 = vadd.f32 %v9862_v17, %v9814_v31  ;;  %10152 = vmatprep.mubr.bf16.mxu0 %v12055_v63  ;;  %10108 = vmatprep.mubr.msk.bf16.mxu1 %vm14505_vm10, %v8435_v44  ;;  %v8439_v31 = vpack.c.bf16 %v3718_v12, %v3717_v56  ;;  %v3720_v17 = vld [vmem:[#allocation2 + $0xef] sm:$0xff]  ;;  %vm14506_vm10 = vnez %v14419_v30 }
 0x1e9   : > { %v2296_v53 = vpop.f32.mrf.mxu0  ;;  %v2103_v45 = vpop.f32.mrf.mxu1  ;;  %v8443_v39 = vpack.c.bf16 %v3720_v17, %v3719_v0  ;;  %v4340_v30 = vld [vmem:[#allocation2 + $0x31] sm:$0xff] }
 0x1ea   : > { %v12188_v62 = vadd.f32 %v2296_v53, %v2087_v59 }
 0x1eb   : > { %v9863_v4 = vpop.f32.mrf.mxu0  ;;  %v9819_v58 = vpop.f32.mrf.mxu1 }
 0x1ec   : > { %v12190_v54 = vadd.f32 %v9863_v4, %v9815_v55 }
 0x1ed   : > { %v2299_v2 = vpop.f32.mrf.mxu0  ;;  %v12192_v3 = vpop.f32.mrf.mxu1 }
 0x1ee   : > { %v12194_v63 = vadd.f32 %v2299_v2, %v2090_v9  ;;  %v3722_v9 = vld [vmem:[#allocation2 + $0xff] sm:$0xff] }
 0x1ef   : > { %v9866_v44 = vpop.f32.mrf.mxu0  ;;  %10153 = vmatmul.mubr.bf16.gmra.mxu0 %v12057_v10  ;;  %v9822_v59 = vpop.f32.mrf.mxu1  ;;  %10109 = vmatmul.mubr.msk.bf16.gmra.mxu1 %vm14483_vm5, %v8439_v31  ;;  %v3721_v10 = vld [vmem:[#allocation2 + $0xf7] sm:$0xff] }
 0x1f0   : > { %v12199_v53 = vadd.f32 %v9866_v44, %v9818_v42  ;;  %10156 = vmatprep.mubr.bf16.mxu0 %v12071_v22  ;;  %10112 = vmatprep.mubr.msk.bf16.mxu1 %vm14506_vm10, %v8443_v39  ;;  %v8447_v42 = vpack.c.bf16 %v3722_v9, %v3721_v10  ;;  %v3725_v9 = vld [vmem:[#allocation2 + $0x117] sm:$0xff] }
 0x1f1   : > { %v2312_v55 = vpop.f32.mrf.mxu0  ;;  %v2119_v12 = vpop.f32.mrf.mxu1 }
 0x1f2   : > { %v12204_v4 = vadd.f32 %v2312_v55, %v2103_v45 }
 0x1f3   : > { %v9867_v0 = vpop.f32.mrf.mxu0  ;;  %v9823_v56 = vpop.f32.mrf.mxu1 }
 0x1f4   : > { %v12206_v2 = vadd.f32 %v9867_v0, %v9819_v58  ;;  %v3726_v0 = vld [vmem:[#allocation2 + $0x11f] sm:$0xff] }
 0x1f5   : > { %v12208_v17 = vpop.f32.mrf.mxu0  ;;  %v12210_v31 = vpop.f32.mrf.mxu1 }
 0x1f7   : > { %v9870_v44 = vpop.f32.mrf.mxu0  ;;  %10157 = vmatmul.mubr.bf16.gmra.mxu0 %v12073_v40  ;;  %v9826_v22 = vpop.f32.mrf.mxu1  ;;  %10113 = vmatmul.mubr.msk.bf16.gmra.mxu1 %vm14488_vm3, %v8447_v42 }
 0x1f8   : > { %v12215_v45 = vadd.f32 %v9870_v44, %v9822_v59  ;;  %10160 = vmatprep.mubr.bf16.mxu0 %v12083_v51  ;;  %10116 = vmatprep.mubr.msk.bf16.mxu1 %vm11664_vm14, %v11959_v46  ;;  %v8455_v51 = vpack.c.bf16 %v3726_v0, %v3725_v9  ;;  %v4339_v44 = vld [vmem:[#allocation2 + $0x29] sm:$0xff]  ;;  %v4341_v9 = vld [vmem:[#allocation2 + $0x39] sm:$0xff] }
 0x1f9   : > { %v2328_v58 = vpop.f32.mrf.mxu0  ;;  %v2135_v39 = vpop.f32.mrf.mxu1  ;;  %v8507_v41 = vpack.c.bf16 %v4340_v30, %v4339_v44  ;;  %v4342_v30 = vld [vmem:[#allocation2 + $0x41] sm:$0xff] }
 0x1fa   : > { %v12221_v55 = vadd.f32 %v2328_v58, %v2119_v12  ;;  %v10850_v44 = vld [vmem:[#allocation2 + $0x8] sm:$0xff] }
 0x1fb   : > { %v9871_v10 = vpop.f32.mrf.mxu0  ;;  %v9827_v40 = vpop.f32.mrf.mxu1 }
 0x1fc   : > { %v12223_v34 = vadd.f32 %v9871_v10, %v9823_v56 }
 0x1fd   : > { %v12225_v42 = vpop.f32.mrf.mxu0  ;;  %v12227_v59 = vpop.f32.mrf.mxu1 }
 0x1fe   : > { %14507 = vst [vmem:[#allocation68_spill] sm:$0xff] %v12227_v59  ;;  %v4348_v59 = vld [vmem:[#allocation2 + $0x71] sm:$0xff] }
 0x1ff   : > { %v9874_v38 = vpop.f32.mrf.mxu0  ;;  %10161 = vmatmul.mubr.bf16.gmra.mxu0 %v12085_v18  ;;  %v9830_v46 = vpop.f32.mrf.mxu1  ;;  %10117 = vmatmul.mubr.msk.bf16.gmra.mxu1 %vm11687_vm13, %v8455_v51  ;;  %v12239_v18 = vpack.c.bf16 %v10850_v44, %v10850_v44 }
 0x200   : > { %v12232_v12 = vadd.f32 %v9874_v38, %v9826_v22  ;;  %10164 = vmatprep.mubr.bf16.mxu0 %v12095_v47  ;;  %10184 = vmatprep.mubr.msk.bf16.mxu1 %vm14489_vm9, %v8507_v41  ;;  %v8511_v22 = vpack.c.bf16 %v4342_v30, %v4341_v9  ;;  %v4343_v41 = vld [vmem:[#allocation2 + $0x49] sm:$0xff]  ;;  %v4345_v9 = vld [vmem:[#allocation2 + $0x59] sm:$0xff]  ;;  %v4346_v30 = vld [vmem:[#allocation2 + $0x61] sm:$0xff] }
 0x201   : > { %v2344_v56 = vpop.f32.mrf.mxu0  ;;  %v2151_v58 = vpop.f32.mrf.mxu1  ;;  %v8515_v13 = vpack.c.bf16 %v4344_v8, %v4343_v41 }
 0x202   : > { %v12237_v10 = vadd.f32 %v2344_v56, %v2135_v39 }
 0x203   : > { %v9875_v0 = vpop.f32.mrf.mxu0  ;;  %v9831_v6 = vpop.f32.mrf.mxu1 }
 0x204   : > { %v12241_v51 = vadd.f32 %v9875_v0, %v9827_v40 }
 0x205   : > { %v12243_v38 = vpop.f32.mrf.mxu0  ;;  %v12245_v47 = vpop.f32.mrf.mxu1 }
 0x206   : > { %14508 = vst [vmem:[#allocation69_spill] sm:$0xff] %v12243_v38  ;;  %14509 = vst [vmem:[#allocation70_spill] sm:$0xff] %v12245_v47 }
 0x207   : > { %v9878_v16 = vpop.f32.mrf.mxu0  ;;  %10165 = vmatmul.mubr.bf16.gmra.mxu0 %v12239_v18  ;;  %v9898_v39 = vpop.f32.mrf.mxu1  ;;  %10185 = vmatmul.mubr.msk.bf16.vlgmr.msra.gmra.mxu1 %vm11695_vm1, %v8511_v22  ;;  %v8519_v22 = vpack.c.bf16 %v4346_v30, %v4345_v9  ;;  %v4349_v30 = vld [vmem:[#allocation2 + $0x79] sm:$0xff] }
 0x208   : > { %v12250_v56 = vadd.f32 %v9878_v16, %v9830_v46  ;;  %v2683_v44 = vadd.f32 %v9898_v39, %v12129_v52  ;;  %10188 = vmatprep.mubr.msk.bf16.mxu1 %vm14490_vm15, %v8515_v13  ;;  %v4347_v13 = vld [vmem:[#allocation2 + $0x69] sm:$0xff]  ;;  %10232 = vmatprep.mubr.bf16.mxu0 %v12239_v18 }
 0x209   : > { %v2360_v40 = vpop.f32.mrf.mxu0  ;;  %v2554_v0 = vpop.f32.mrf.mxu1  ;;  %v4780_v18 = vld [vmem:[#allocation2 + $0x7] sm:$0xff] }
 0x20a   : > { %v12255_v47 = vadd.f32 %v2360_v40, %v2151_v58  ;;  %v2681_v8 = vadd.f32 %v2554_v0, %v12134_v60  ;;  %v8523_v58 = vpack.c.bf16 %v4348_v59, %v4347_v13  ;;  %v4350_v59 = vld [vmem:[#allocation2 + $0x81] sm:$0xff]  ;;  %v4352_v13 = vld [vmem:[#allocation2 + $0x91] sm:$0xff] }
 0x20b   : > { %v9879_v41 = vpop.f32.mrf.mxu0  ;;  %v9899_v38 = vpop.f32.mrf.mxu1 }
 0x20c   : > { %v12258_v43 = vadd.f32 %v9879_v41, %v9831_v6  ;;  %v2684_v16 = vadd.f32 %v9899_v38, %v12139_v7 }
 0x20d   : > { %v12261_v46 = vpop.f32.mrf.mxu0  ;;  %v2557_v52 = vpop.f32.mrf.mxu1 }
 0x20e   : > { %v12264_v39 = vadd.f32 %v2557_v52, %v12141_v20 }
 0x20f   : > { %v9946_v40 = vpop.f32.mrf.mxu0  ;;  %v9902_v60 = vpop.f32.mrf.mxu1  ;;  %10189 = vmatmul.mubr.msk.bf16.gmra.mxu1 %vm11730_vm4, %v8519_v22 }
 0x210   : > { %v12268_v0 = vadd.f32 %v9946_v40, %v2683_v44  ;;  %v2687_v6 = vadd.f32 %v9902_v60, %v12149_v33  ;;  %10192 = vmatprep.mubr.msk.bf16.mxu1 %vm11737_vm2, %v8523_v58  ;;  %v8527_v40 = vpack.c.bf16 %v4350_v59, %v4349_v30  ;;  %v4351_v58 = vld [vmem:[#allocation2 + $0x89] sm:$0xff]  ;;  %vm14510_vm2 = vnez %v14454_v32  ;;  %v4353_v59 = vld [vmem:[#allocation2 + $0x99] sm:$0xff] }
 0x211   : > { %v2892_v7 = vpop.f32.mrf.mxu0  ;;  %v2570_v38 = vpop.f32.mrf.mxu1 }
 0x212   : > { %v12273_v9 = vadd.f32 %v2892_v7, %v2681_v8  ;;  %v2685_v20 = vadd.f32 %v2570_v38, %v12154_v29  ;;  %v8531_v8 = vpack.c.bf16 %v4352_v13, %v4351_v58  ;;  %v4356_v58 = vld [vmem:[#allocation2 + $0xb1] sm:$0xff] }
 0x213   : > { %v9947_v41 = vpop.f32.mrf.mxu0  ;;  %v9903_v52 = vpop.f32.mrf.mxu1 }
 0x214   : > { %v12276_v49 = vadd.f32 %v9947_v41, %v2684_v16  ;;  %v2688_v44 = vadd.f32 %v9903_v52, %v12159_v25  ;;  %v4354_v52 = vld [vmem:[#allocation2 + $0xa1] sm:$0xff] }
 0x215   : > { %v12279_v22 = vpop.f32.mrf.mxu0  ;;  %v2573_v33 = vpop.f32.mrf.mxu1 }
 0x216   : > { %v12282_v60 = vadd.f32 %v2573_v33, %v12161_v24 }
 0x217   : > { %v9950_v7 = vpop.f32.mrf.mxu0  ;;  %v9906_v29 = vpop.f32.mrf.mxu1  ;;  %10193 = vmatmul.mubr.msk.bf16.gmra.mxu1 %vm11771_vm8, %v8527_v40  ;;  %vm14512_vm8 = vnez %v14460_v14 }
 0x218   : > { %v12286_v38 = vadd.f32 %v9950_v7, %v2687_v6  ;;  %v2691_v16 = vadd.f32 %v9906_v29, %v12169_v1  ;;  %10196 = vmatprep.mubr.msk.bf16.mxu1 %vm14510_vm2, %v8531_v8  ;;  %v8535_v7 = vpack.c.bf16 %v4354_v52, %v4353_v59  ;;  %v4355_v8 = vld [vmem:[#allocation2 + $0xa9] sm:$0xff]  ;;  %vm14511_vm2 = vnez %v14457_v27  ;;  %v4357_v52 = vld [vmem:[#allocation2 + $0xb9] sm:$0xff] }
 0x219   : > { %v2908_v25 = vpop.f32.mrf.mxu0  ;;  %v2586_v41 = vpop.f32.mrf.mxu1 }
 0x21a   : > { %v12291_v30 = vadd.f32 %v2908_v25, %v2685_v20  ;;  %v2689_v24 = vadd.f32 %v2586_v41, %v12174_v11  ;;  %v8539_v20 = vpack.c.bf16 %v4356_v58, %v4355_v8  ;;  %v4360_v8 = vld [vmem:[#allocation2 + $0xd1] sm:$0xff] }
 0x21b   : > { %v9951_v13 = vpop.f32.mrf.mxu0  ;;  %v9907_v33 = vpop.f32.mrf.mxu1 }
 0x21c   : > { %v12294_v61 = vadd.f32 %v9951_v13, %v2688_v44  ;;  %v2692_v6 = vadd.f32 %v9907_v33, %v12176_v36  ;;  %v4358_v33 = vld [vmem:[#allocation2 + $0xc1] sm:$0xff] }
 0x21d   : > { %v12297_v40 = vpop.f32.mrf.mxu0  ;;  %v2589_v1 = vpop.f32.mrf.mxu1 }
 0x21e   : > { %v12300_v29 = vadd.f32 %v2589_v1, %v12178_v19 }
 0x21f   : > { %v9954_v25 = vpop.f32.mrf.mxu0  ;;  %v9910_v11 = vpop.f32.mrf.mxu1  ;;  %10197 = vmatmul.mubr.msk.bf16.gmra.mxu1 %vm14511_vm2, %v8535_v7 }
 0x220   : > { %v12304_v41 = vadd.f32 %v9954_v25, %v2691_v16  ;;  %v2695_v44 = vadd.f32 %v9910_v11, %v12183_v48  ;;  %10200 = vmatprep.mubr.msk.bf16.mxu1 %vm14512_vm8, %v8539_v20  ;;  %v8543_v25 = vpack.c.bf16 %v4358_v33, %v4357_v52  ;;  %v4359_v20 = vld [vmem:[#allocation2 + $0xc9] sm:$0xff]  ;;  %vm14513_vm8 = vnez %v14463_v35 }
 0x221   : > { %v2924_v36 = vpop.f32.mrf.mxu0  ;;  %v2602_v13 = vpop.f32.mrf.mxu1 }
 0x222   : > { %v12309_v59 = vadd.f32 %v2924_v36, %v2689_v24  ;;  %v2693_v19 = vadd.f32 %v2602_v13, %v12188_v62  ;;  %v8547_v24 = vpack.c.bf16 %v4360_v8, %v4359_v20  ;;  %v10778_v62 = vld [vmem:[%s14151_s5 + $0x78] sm:$0xff]   ;;  %v4362_v8 = vld [vmem:[#allocation2 + $0xe1] sm:$0xff] }
 0x223   : > { %v9955_v58 = vpop.f32.mrf.mxu0  ;;  %v9911_v1 = vpop.f32.mrf.mxu1  ;;  %10216 = vmatprep.subr.bf16.mxu0 %v10778_v62 }
 0x224   : > { %v12312_v27 = vadd.f32 %v9955_v58, %v2692_v6  ;;  %v2696_v16 = vadd.f32 %v9911_v1, %v12190_v54  ;;  %10217 = vmatpush3.bf16.msra.mxu0 %v10778_v62  ;;  %v4361_v1 = vld [vmem:[#allocation2 + $0xd9] sm:$0xff] }
 0x225   : > { %v12315_v7 = vpop.f32.mrf.mxu0  ;;  %v2605_v48 = vpop.f32.mrf.mxu1 }
 0x226   : > { %v12318_v11 = vadd.f32 %v2605_v48, %v12194_v63 }
 0x227   : > { %v9958_v36 = vpop.f32.mrf.mxu0  ;;  %v9914_v13 = vpop.f32.mrf.mxu1  ;;  %10201 = vmatmul.mubr.msk.bf16.gmra.mxu1 %vm14513_vm8, %v8543_v25  ;;  %v4364_v25 = vld [vmem:[#allocation2 + $0xf1] sm:$0xff] }
 0x228   : > { %v12325_v6 = vadd.f32 %v9958_v36, %v2695_v44  ;;  %v2699_v54 = vadd.f32 %v9914_v13, %v12199_v53  ;;  %10204 = vmatprep.mubr.msk.bf16.mxu1 %vm14492_vm11, %v8547_v24  ;;  %v8551_v13 = vpack.c.bf16 %v4362_v8, %v4361_v1  ;;  %v8555_v62 = vpack.c.bf16 %v4364_v25, %v4363_v50 }
 0x229   : > { %v2940_v63 = vpop.f32.mrf.mxu0  ;;  %v2618_v52 = vpop.f32.mrf.mxu1  ;;  %vm14514_vm11 = vnez %v14472_v5  ;;  %v10790_v5 = vld [vmem:[%s14151_s5 + $0x10] sm:$0xff]  }
 0x22a   : > { %v12330_v33 = vadd.f32 %v2940_v63, %v2693_v19  ;;  %v2697_v58 = vadd.f32 %v2618_v52, %v12204_v4  ;;  %v10779_v4 = vld [vmem:[%s14151_s5 + $0x70] sm:$0xff]  }
 0x22b   : > { %v9959_v48 = vpop.f32.mrf.mxu0  ;;  %v9915_v20 = vpop.f32.mrf.mxu1  ;;  %10218 = vmatprep.subr.bf16.mxu0 %v10779_v4 }
 0x22c   : > { %v12333_v44 = vadd.f32 %v9959_v48, %v2696_v16  ;;  %v2700_v53 = vadd.f32 %v9915_v20, %v12206_v2  ;;  %10219 = vmatpush3.bf16.msra.mxu0 %v10779_v4  ;;  %v4365_v48 = vld [vmem:[#allocation2 + $0xf9] sm:$0xff]  ;;  %v4366_v20 = vld [vmem:[#allocation2 + $0x101] sm:$0xff] }
 0x22d   : > { %v12336_v36 = vpop.f32.mrf.mxu0  ;;  %v12338_v24 = vpop.f32.mrf.mxu1 }
 0x22f   : > { %v9962_v19 = vpop.f32.mrf.mxu0  ;;  %v9918_v63 = vpop.f32.mrf.mxu1  ;;  %10205 = vmatmul.mubr.msk.bf16.gmra.mxu1 %vm14493_vm7, %v8551_v13 }
 0x230   : > { %v12345_v16 = vadd.f32 %v9962_v19, %v2699_v54  ;;  %v2703_v2 = vadd.f32 %v9918_v63, %v12215_v45  ;;  %10208 = vmatprep.mubr.msk.bf16.mxu1 %vm14514_vm11, %v8555_v62  ;;  %v8559_v62 = vpack.c.bf16 %v4366_v20, %v4365_v48  ;;  %vm14515_vm11 = vnez %v14481_v15  ;;  %v10781_v15 = vld [vmem:[%s14151_s5 + $0x60] sm:$0xff]  }
 0x231   : > { %v2956_v52 = vpop.f32.mrf.mxu0  ;;  %v2634_v1 = vpop.f32.mrf.mxu1 }
 0x232   : > { %v12350_v50 = vadd.f32 %v2956_v52, %v2697_v58  ;;  %v2701_v8 = vadd.f32 %v2634_v1, %v12221_v55  ;;  %v10780_v58 = vld [vmem:[%s14151_s5 + $0x68] sm:$0xff]  }
 0x233   : > { %v9963_v25 = vpop.f32.mrf.mxu0  ;;  %v9919_v26 = vpop.f32.mrf.mxu1  ;;  %10220 = vmatprep.subr.bf16.mxu0 %v10780_v58 }
 0x234   : > { %v12353_v13 = vadd.f32 %v9963_v25, %v2700_v53  ;;  %v2704_v54 = vadd.f32 %v9919_v26, %v12223_v34  ;;  %v4369_v34 = vld [vmem:[#allocation2 + $0x119] sm:$0xff]  ;;  %v4370_v26 = vld [vmem:[#allocation2 + $0x121] sm:$0xff]  ;;  %10221 = vmatpush3.bf16.msra.mxu0 %v10780_v58 }
 0x235   : > { %v12356_v45 = vpop.f32.mrf.mxu0  ;;  %v12358_v19 = vpop.f32.mrf.mxu1  ;;  %10222 = vmatprep.subr.bf16.mxu0 %v10781_v15 }
 0x237   : > { %v9966_v4 = vpop.f32.mrf.mxu0  ;;  %v9922_v63 = vpop.f32.mrf.mxu1  ;;  %10209 = vmatmul.mubr.msk.bf16.gmra.mxu1 %vm11918_vm0, %v8559_v62 }
 0x238   : > { %v12365_v55 = vadd.f32 %v9966_v4, %v2703_v2  ;;  %v2707_v53 = vadd.f32 %v9922_v63, %v12232_v12  ;;  %10212 = vmatprep.mubr.msk.bf16.mxu1 %vm14515_vm11, %v12106_v21  ;;  %v8567_v2 = vpack.c.bf16 %v4370_v26, %v4369_v34  ;;  %10223 = vmatpush3.bf16.msra.mxu0 %v10781_v15  ;;  %v10783_v26 = vld [vmem:[%s14151_s5 + $0x38] sm:$0xff]   ;;  %v10784_v15 = vld [vmem:[%s14151_s5 + $0x30] sm:$0xff]  }
 0x239   : > { %v2972_v52 = vpop.f32.mrf.mxu0  ;;  %v2650_v1 = vpop.f32.mrf.mxu1  ;;  %10264 = vmatprep.subr.bf16.mxu1 %v10783_v26 }
 0x23a   : > { %v12371_v48 = vadd.f32 %v2972_v52, %v2701_v8  ;;  %v2705_v20 = vadd.f32 %v2650_v1, %v12237_v10  ;;  %10265 = vmatpush3.bf16.msra.mxu1 %v10783_v26  ;;  %v10786_v26 = vld [vmem:[%s14151_s5 + $0x28] sm:$0xff]  }
 0x23b   : > { %v9967_v25 = vpop.f32.mrf.mxu0  ;;  %v9923_v62 = vpop.f32.mrf.mxu1  ;;  %10266 = vmatprep.subr.bf16.mxu1 %v10784_v15 }
 0x23c   : > { %v12374_v4 = vadd.f32 %v9967_v25, %v2704_v54  ;;  %v2708_v12 = vadd.f32 %v9923_v62, %v12241_v51 }
 0x23d   : > { %v12377_v63 = vpop.f32.mrf.mxu0  ;;  %v12379_v21 = vpop.f32.mrf.mxu1 }
 0x23e   : > { %14516 = vst [vmem:[#allocation71_spill] sm:$0xff] %v12377_v63  ;;  %14517 = vst [vmem:[#allocation72_spill] sm:$0xff] %v12379_v21  ;;  %10267 = vmatpush3.bf16.msra.mxu1 %v10784_v15  ;;  %v10785_v15 = vld [vmem:[%s14151_s5 + $0x50] sm:$0xff]  }
 0x23f   : > { %v9970_v58 = vpop.f32.mrf.mxu0  ;;  %v9926_v8 = vpop.f32.mrf.mxu1  ;;  %10213 = vmatmul.mubr.msk.bf16.gmra.mxu1 %vm11944_vm6, %v8567_v2  ;;  %10268 = vmatprep.subr.bf16.mxu1 %v10786_v26 }
 0x240   : > { %v12386_v10 = vadd.f32 %v9970_v58, %v2707_v53  ;;  %v2711_v54 = vadd.f32 %v9926_v8, %v12250_v56 }
 0x241   : > { %v2988_v34 = vpop.f32.mrf.mxu0  ;;  %v2666_v51 = vpop.f32.mrf.mxu1 }
 0x242   : > { %v12392_v52 = vadd.f32 %v2988_v34, %v2705_v20  ;;  %v2709_v1 = vadd.f32 %v2666_v51, %v12255_v47  ;;  %v10782_v47 = vld [vmem:[%s14151_s5 + $0x58] sm:$0xff]   ;;  %10269 = vmatpush3.bf16.msra.mxu1 %v10786_v26 }
 0x243   : > { %v9971_v25 = vpop.f32.mrf.mxu0  ;;  %v9927_v62 = vpop.f32.mrf.mxu1  ;;  %10224 = vmatprep.subr.bf16.mxu0 %v10782_v47  ;;  %v10789_v26 = vld [vmem:[%s14151_s5 + $0x18] sm:$0xff]  }
 0x244   : > { %v12395_v2 = vadd.f32 %v9971_v25, %v2708_v12  ;;  %v2712_v53 = vadd.f32 %v9927_v62, %v12258_v43  ;;  %10225 = vmatpush3.bf16.msra.mxu0 %v10782_v47 }
 0x245   : > { %v12398_v56 = vpop.f32.mrf.mxu0  ;;  %v12400_v58 = vpop.f32.mrf.mxu1  ;;  %10226 = vmatprep.subr.bf16.mxu0 %v10785_v15 }
 0x246   : > { %14518 = vst [vmem:[#allocation73_spill] sm:$0xff] %v12398_v56  ;;  %14519 = vst [vmem:[#allocation74_spill] sm:$0xff] %v12400_v58  ;;  %v14525_v56 = vld [vmem:[#allocation4_spill] sm:$0xff] }
 0x247   : > { %v9974_v20 = vpop.f32.mrf.mxu0  ;;  %v9994_v8 = vpop.f32.mrf.mxu1  ;;  %vm14526_vm6 = vnez %v14525_v56 }
 0x248   : > { %v12408_v12 = vadd.f32 %v9974_v20, %v2711_v54  ;;  %v12411_v43 = vadd.f32 %v9994_v8, %v12268_v0  ;;  %10227 = vmatpush3.bf16.msra.mxu0 %v10785_v15 }
 0x249   : > { %v3004_v34 = vpop.f32.mrf.mxu0  ;;  %v3198_v51 = vpop.f32.mrf.mxu1 }
 0x24a   : > { %v12416_v25 = vadd.f32 %v3004_v34, %v2709_v1  ;;  %v12419_v62 = vadd.f32 %v3198_v51, %v12273_v9  ;;  %v10787_v9 = vld [vmem:[%s14151_s5 + $0x20] sm:$0xff]   ;;  %v10788_v51 = vld [vmem:[%s14151_s5 + $0x48] sm:$0xff]  }
 0x24b   : > { %v9975_v23 = vpop.f32.mrf.mxu0  ;;  %v9995_v54 = vpop.f32.mrf.mxu1  ;;  %10270 = vmatprep.subr.bf16.mxu1 %v10787_v9  ;;  %10228 = vmatprep.subr.bf16.mxu0 %v10788_v51 }
 0x24c   : > { %v12421_v20 = vadd.f32 %v9975_v23, %v2712_v53  ;;  %v12424_v0 = vadd.f32 %v9995_v54, %v12276_v49  ;;  %10271 = vmatpush3.bf16.msra.mxu1 %v10787_v9  ;;  %10229 = vmatpush3.bf16.msra.mxu0 %v10788_v51 }
 0x24d   : > { %v12429_v47 = vpop.f32.mrf.mxu0  ;;  %v12431_v1 = vpop.f32.mrf.mxu1  ;;  %10272 = vmatprep.subr.bf16.mxu1 %v10789_v26 }
 0x24e   : > { %14520 = vst [vmem:[#allocation75_spill] sm:$0xff] %v12429_v47 }
 0x24f   : > { %v12436_v8 = vpop.f32.mrf.mxu0  ;;  %v9998_v23 = vpop.f32.mrf.mxu1 }
 0x250   : > { %v12439_v49 = vadd.f32 %v9998_v23, %v12286_v38  ;;  %10273 = vmatpush3.bf16.msra.mxu1 %v10789_v26  ;;  %v10792_v26 = vld [vmem:[%s14151_s5 + $0x8] sm:$0xff]  }
 0x251   : > { %v12441_v53 = vpop.f32.mrf.mxu0  ;;  %v3214_v34 = vpop.f32.mrf.mxu1  ;;  %10274 = vmatprep.subr.bf16.mxu1 %v10790_v5 }
 0x252   : > { %v12450_v54 = vadd.f32 %v3214_v34, %v12291_v30  ;;  %v10791_v30 = vld [vmem:[%s14151_s5 + $0x40] sm:$0xff]  }
 0x253   : > { %v12452_v15 = vpop.f32.mrf.mxu0  ;;  %v9999_v28 = vpop.f32.mrf.mxu1  ;;  %10230 = vmatprep.subr.bf16.mxu0 %v10791_v30 }
 0x254   : > { %v12455_v38 = vadd.f32 %v9999_v28, %v12294_v61  ;;  %10275 = vmatpush3.bf16.msra.mxu1 %v10790_v5  ;;  %10231 = vmatpush3.bf16.msra.mxu0 %v10791_v30  ;;  %v10793_v30 = vld [vmem:[%s14151_s5] sm:$0xff]  }
 0x255   : > { %v12457_v9 = vpop.f32.mrf.mxu0  ;;  %v12459_v23 = vpop.f32.mrf.mxu1  ;;  %10276 = vmatprep.subr.bf16.mxu1 %v10792_v26 }
 0x257   : > { %v12467_v34 = vpop.f32.mrf.mxu0  ;;  %v10002_v35 = vpop.f32.mrf.mxu1 }
 0x258   : > { %v12470_v61 = vadd.f32 %v10002_v35, %v12304_v41  ;;  %10277 = vmatpush3.bf16.msra.mxu1 %v10792_v26 }
 0x259   : > { %v12472_v28 = vpop.f32.mrf.mxu0  ;;  %v3230_v51 = vpop.f32.mrf.mxu1  ;;  %10278 = vmatprep.subr.bf16.mxu1 %v10793_v30 }
 0x25a   : > { %v12478_v14 = vadd.f32 %v3230_v51, %v12309_v59 }
 0x25b   : > { %v12481_v32 = vpop.f32.mrf.mxu0  ;;  %v10003_v57 = vpop.f32.mrf.mxu1 }
 0x25c   : > { %v12484_v35 = vadd.f32 %v10003_v57, %v12312_v27  ;;  %10279 = vmatpush3.bf16.msra.mxu1 %v10793_v30  ;;  %v8604_v57 = vpack.c.bf16 %v4781_v37, %v4780_v18 }
 0x25d   : > { %v12486_v5 = vpop.f32.mrf.mxu0  ;;  %v12488_v41 = vpop.f32.mrf.mxu1 }
 0x25e   : > { %14521 = vst [vmem:[#allocation76_spill] sm:$0xff] %v12484_v35  ;;  %14522 = vst [vmem:[#allocation77_spill] sm:$0xff] %v12488_v41  ;;  %10280 = vmatprep.mubr.msk.bf16.mxu1 %vm14526_vm6, %v8604_v57 }
 0x25f   : > { %v12493_v59 = vpop.f32.mrf.mxu0  ;;  %v10006_v51 = vpop.f32.mrf.mxu1 }
 0x260   : > { %v12496_v47 = vadd.f32 %v10006_v51, %v12325_v6  ;;  %v12513_v6 = vld [vmem:[%s14151_s5 + $0xb8] sm:$0xff]  }
 0x261   : > { %v12498_v27 = vpop.f32.mrf.mxu0  ;;  %v3246_v26 = vpop.f32.mrf.mxu1  ;;  %14529 = vst [vmem:[#allocation82_spill] sm:$0xff] %v12513_v6  ;;  %10312 = vmatprep.subr.bf16.mxu0 %v12513_v6 }
 0x262   : > { %14523 = vst [vmem:[#allocation78_spill] sm:$0xff] %v12496_v47  ;;  %v12501_v58 = vadd.f32 %v3246_v26, %v12330_v33 }
 0x263   : > { %v12505_v21 = vpop.f32.mrf.mxu0  ;;  %v10007_v41 = vpop.f32.mrf.mxu1 }
 0x264   : > { %14524 = vst [vmem:[#allocation79_spill] sm:$0xff] %v12501_v58  ;;  %14527 = vst [vmem:[#allocation80_spill] sm:$0xff] %v12505_v21  ;;  %v12508_v35 = vadd.f32 %v10007_v41, %v12333_v44 }
 0x265   : > { %v12515_v37 = vpop.f32.mrf.mxu0  ;;  %v12517_v30 = vpop.f32.mrf.mxu1 }
 0x266   : > { %14528 = vst [vmem:[#allocation81_spill] sm:$0xff] %v12508_v35  ;;  %14530 = vst [vmem:[#allocation83_spill] sm:$0xff] %v12515_v37 }
 0x267   : > { %14531 = vst [vmem:[#allocation84_spill] sm:$0xff] %v12517_v30  ;;  %v12520_v33 = vpop.f32.mrf.mxu0  ;;  %v10010_v51 = vpop.f32.mrf.mxu1 }
 0x268   : > { %14532 = vst [vmem:[#allocation85_spill] sm:$0xff] %v12520_v33  ;;  %v12523_v18 = vadd.f32 %v10010_v51, %v12345_v16 }
 0x269   : > { %v12525_v57 = vpop.f32.mrf.mxu0  ;;  %v3262_v44 = vpop.f32.mrf.mxu1 }
 0x26a   : > { %14533 = vst [vmem:[#allocation86_spill] sm:$0xff] %v12523_v18  ;;  %14534 = vst [vmem:[#allocation87_spill] sm:$0xff] %v12525_v57  ;;  %v12528_v41 = vadd.f32 %v3262_v44, %v12350_v50 }
 0x26b   : > { %v12530_v26 = vpop.f32.mrf.mxu0  ;;  %v10011_v56 = vpop.f32.mrf.mxu1 }
 0x26c   : > { %14535 = vst [vmem:[#allocation88_spill] sm:$0xff] %v12528_v41  ;;  %14536 = vst [vmem:[#allocation89_spill] sm:$0xff] %v12530_v26  ;;  %v12533_v35 = vadd.f32 %v10011_v56, %v12353_v13 }
 0x26d   : > { %v12535_v30 = vpop.f32.mrf.mxu0  ;;  %v12537_v58 = vpop.f32.mrf.mxu1 }
 0x26e   : > { %14537 = vst [vmem:[#allocation90_spill] sm:$0xff] %v12533_v35  ;;  %14538 = vst [vmem:[#allocation91_spill] sm:$0xff] %v12535_v30 }
 0x26f   : > { %14539 = vst [vmem:[#allocation92_spill] sm:$0xff] %v12537_v58  ;;  %v12539_v33 = vpop.f32.mrf.mxu0  ;;  %v10014_v16 = vpop.f32.mrf.mxu1 }
 0x270   : > { %14540 = vst [vmem:[#allocation93_spill] sm:$0xff] %v12539_v33  ;;  %v12542_v51 = vadd.f32 %v10014_v16, %v12365_v55 }
 0x271   : > { %v12544_v18 = vpop.f32.mrf.mxu0  ;;  %v3278_v50 = vpop.f32.mrf.mxu1 }
 0x272   : > { %14541 = vst [vmem:[#allocation94_spill] sm:$0xff] %v12542_v51  ;;  %14542 = vst [vmem:[#allocation95_spill] sm:$0xff] %v12544_v18  ;;  %v12547_v44 = vadd.f32 %v3278_v50, %v12371_v48 }
 0x273   : > { %v12549_v41 = vpop.f32.mrf.mxu0  ;;  %v10015_v13 = vpop.f32.mrf.mxu1 }
 0x274   : > { %14543 = vst [vmem:[#allocation96_spill] sm:$0xff] %v12547_v44  ;;  %14544 = vst [vmem:[#allocation97_spill] sm:$0xff] %v12549_v41  ;;  %v12552_v56 = vadd.f32 %v10015_v13, %v12374_v4 }
 0x275   : > { %v12554_v35 = vpop.f32.mrf.mxu0  ;;  %v12556_v58 = vpop.f32.mrf.mxu1 }
 0x276   : > { %14545 = vst [vmem:[#allocation98_spill] sm:$0xff] %v12552_v56  ;;  %14546 = vst [vmem:[#allocation99_spill] sm:$0xff] %v12554_v35 }
 0x277   : > { %14547 = vst [vmem:[#allocation100_spill] sm:$0xff] %v12556_v58  ;;  %v12558_v33 = vpop.f32.mrf.mxu0  ;;  %v10018_v55 = vpop.f32.mrf.mxu1 }
 0x278   : > { %14548 = vst [vmem:[#allocation101_spill] sm:$0xff] %v12558_v33  ;;  %v12561_v16 = vadd.f32 %v10018_v55, %v12386_v10 }
 0x279   : > { %v12563_v51 = vpop.f32.mrf.mxu0  ;;  %v3294_v48 = vpop.f32.mrf.mxu1 }
 0x27a   : > { %14549 = vst [vmem:[#allocation102_spill] sm:$0xff] %v12561_v16  ;;  %14550 = vst [vmem:[#allocation103_spill] sm:$0xff] %v12563_v51  ;;  %v12566_v50 = vadd.f32 %v3294_v48, %v12392_v52  ;;  %v12587_v48 = vld [vmem:[%s14151_s5 + $0xf8] sm:$0xff]  }
 0x27b   : > { %v12568_v44 = vpop.f32.mrf.mxu0  ;;  %v10019_v4 = vpop.f32.mrf.mxu1  ;;  %14559 = vst [vmem:[#allocation112_spill] sm:$0xff] %v12587_v48  ;;  %10360 = vmatprep.subr.bf16.mxu1 %v12587_v48 }
 0x27c   : > { %14551 = vst [vmem:[#allocation104_spill] sm:$0xff] %v12566_v50  ;;  %14552 = vst [vmem:[#allocation105_spill] sm:$0xff] %v12568_v44  ;;  %v12571_v13 = vadd.f32 %v10019_v4, %v12395_v2 }
 0x27d   : > { %v12573_v56 = vpop.f32.mrf.mxu0  ;;  %v12575_v58 = vpop.f32.mrf.mxu1 }
 0x27e   : > { %14553 = vst [vmem:[#allocation106_spill] sm:$0xff] %v12571_v13  ;;  %14554 = vst [vmem:[#allocation107_spill] sm:$0xff] %v12573_v56 }
 0x27f   : > { %14555 = vst [vmem:[#allocation108_spill] sm:$0xff] %v12575_v58  ;;  %v12577_v33 = vpop.f32.mrf.mxu0  ;;  %v10022_v10 = vpop.f32.mrf.mxu1 }
 0x280   : > { %14556 = vst [vmem:[#allocation109_spill] sm:$0xff] %v12577_v33  ;;  %v12580_v55 = vadd.f32 %v10022_v10, %v12408_v12 }
 0x281   : > { %v12582_v16 = vpop.f32.mrf.mxu0  ;;  %v3310_v52 = vpop.f32.mrf.mxu1 }
 0x282   : > { %14557 = vst [vmem:[#allocation110_spill] sm:$0xff] %v12580_v55  ;;  %14558 = vst [vmem:[#allocation111_spill] sm:$0xff] %v12582_v16  ;;  %v12590_v2 = vadd.f32 %v3310_v52, %v12416_v25 }
 0x283   : > { %v12592_v4 = vpop.f32.mrf.mxu0  ;;  %v10023_v13 = vpop.f32.mrf.mxu1 }
 0x284   : > { %14560 = vst [vmem:[#allocation113_spill] sm:$0xff] %v12590_v2  ;;  %14561 = vst [vmem:[#allocation114_spill] sm:$0xff] %v12592_v4  ;;  %v12596_v50 = vadd.f32 %v10023_v13, %v12421_v20 }
 0x285   : > { %v12598_v12 = vpop.f32.mrf.mxu0  ;;  %v12600_v10 = vpop.f32.mrf.mxu1 }
 0x286   : > { %14562 = vst [vmem:[#allocation115_spill] sm:$0xff] %v12596_v50  ;;  %14563 = vst [vmem:[#allocation116_spill] sm:$0xff] %v12598_v12 }
 0x287   : > { %14564 = vst [vmem:[#allocation117_spill] sm:$0xff] %v12600_v10  ;;  %v12602_v55 = vpop.f32.mrf.mxu0  ;;  %v10090_v16 = vpop.f32.mrf.mxu1 }
 0x288   : > { %14565 = vst [vmem:[#allocation118_spill] sm:$0xff] %v12602_v55 }
 0x289   : > { %v12604_v33 = vpop.f32.mrf.mxu0  ;;  %v3874_v58 = vpop.f32.mrf.mxu1 }
 0x28a   : > { %14566 = vst [vmem:[#allocation119_spill] sm:$0xff] %v12604_v33 }
 0x28b   : > { %v12606_v25 = vpop.f32.mrf.mxu0  ;;  %v10091_v52 = vpop.f32.mrf.mxu1 }
 0x28c   : > { %14567 = vst [vmem:[#allocation120_spill] sm:$0xff] %v12606_v25 }
 0x28d   : > { %v12608_v2 = vpop.f32.mrf.mxu0  ;;  %v12610_v4 = vpop.f32.mrf.mxu1 }
 0x28e   : > { %14568 = vst [vmem:[#allocation121_spill] sm:$0xff] %v12608_v2 }
 0x28f   : > { %v10138_v56 = vpop.f32.mrf.mxu0  ;;  %v12612_v20 = vpop.f32.mrf.mxu1 }
 0x291   : > { %v4180_v13 = vpop.f32.mrf.mxu0  ;;  %v12614_v50 = vpop.f32.mrf.mxu1 }
 0x293   : > { %v10139_v10 = vpop.f32.mrf.mxu0  ;;  %v12616_v12 = vpop.f32.mrf.mxu1 }
 0x295   : > { %v12618_v55 = vpop.f32.mrf.mxu0  ;;  %v12620_v33 = vpop.f32.mrf.mxu1 }
 0x297   : > { %v12622_v44 = vpop.f32.mrf.mxu0  ;;  %v12624_v25 = vpop.f32.mrf.mxu1 }
 0x299   : > { %v12626_v2 = vpop.f32.mrf.mxu0  ;;  %v12628_v51 = vpop.f32.mrf.mxu1 }
 0x29a   : > { %14569 = vst [vmem:[#allocation122_spill] sm:$0xff] %v12628_v51 }
 0x29b   : > { %v12630_v35 = vpop.f32.mrf.mxu1  ;;  %v12632_v41 = vpop.f32.mrf.mxu0 }
 0x29c   : > { %14570 = vst [vmem:[#allocation123_spill] sm:$0xff] %v12630_v35 }
 0x29d   : > { %v12634_v18 = vpop.f32.mrf.mxu1  ;;  %v12638_v30 = vpop.f32.mrf.mxu0 }
 0x29e   : > { %14571 = vst [vmem:[#allocation124_spill] sm:$0xff] %v12634_v18 }
 0x29f   : > { %v12636_v48 = vpop.f32.mrf.mxu1  ;;  %v12644_v47 = vpop.f32.mrf.mxu0 }
 0x2a0   : > { %14572 = vst [vmem:[#allocation125_spill] sm:$0xff] %v12636_v48  ;;  %14575 = vst [vmem:[#allocation128_spill] sm:$0xff] %v12644_v47 }
 0x2a1   : > { %v12640_v26 = vpop.f32.mrf.mxu1  ;;  %v12650_v51 = vpop.f32.mrf.mxu0 }
 0x2a2   : > { %14573 = vst [vmem:[#allocation126_spill] sm:$0xff] %v12640_v26  ;;  %14578 = vst [vmem:[#allocation131_spill] sm:$0xff] %v12650_v51 }
 0x2a3   : > { %v12642_v57 = vpop.f32.mrf.mxu1  ;;  %v12656_v18 = vpop.f32.mrf.mxu0 }
 0x2a4   : > { %14574 = vst [vmem:[#allocation127_spill] sm:$0xff] %v12642_v57  ;;  %14581 = vst [vmem:[#allocation134_spill] sm:$0xff] %v12656_v18 }
 0x2a5   : > { %v12646_v6 = vpop.f32.mrf.mxu1  ;;  %v12662_v26 = vpop.f32.mrf.mxu0 }
 0x2a6   : > { %14576 = vst [vmem:[#allocation129_spill] sm:$0xff] %v12646_v6  ;;  %14584 = vst [vmem:[#allocation137_spill] sm:$0xff] %v12662_v26 }
 0x2a7   : > { %v12648_v37 = vpop.f32.mrf.mxu1  ;;  %v12668_v6 = vpop.f32.mrf.mxu0 }
 0x2a8   : > { %14577 = vst [vmem:[#allocation130_spill] sm:$0xff] %v12648_v37 }
 0x2a9   : > { %v12652_v35 = vpop.f32.mrf.mxu1 }
 0x2aa   : > { %14579 = vst [vmem:[#allocation132_spill] sm:$0xff] %v12652_v35  ;;  %v12674_v35 = vpop.f32.mrf.mxu0 }
 0x2ab   : > { %v12654_v21 = vpop.f32.mrf.mxu1  ;;  %14589 = vst [vmem:[#allocation142_spill] sm:$0xff] %v12674_v35 }
 0x2ac   : > { %14580 = vst [vmem:[#allocation133_spill] sm:$0xff] %v12654_v21 }
 0x2ad   : > { %v12658_v48 = vpop.f32.mrf.mxu1 }
 0x2ae   : > { %14582 = vst [vmem:[#allocation135_spill] sm:$0xff] %v12658_v48  ;;  %v12680_v48 = vpop.f32.mrf.mxu0 }
 0x2af   : > { %v12660_v63 = vpop.f32.mrf.mxu1  ;;  %14592 = vst [vmem:[#allocation145_spill] sm:$0xff] %v12680_v48 }
 0x2b0   : > { %14583 = vst [vmem:[#allocation136_spill] sm:$0xff] %v12660_v63 }
 0x2b1   : > { %v12664_v57 = vpop.f32.mrf.mxu1 }
 0x2b2   : > { %14585 = vst [vmem:[#allocation138_spill] sm:$0xff] %v12664_v57  ;;  %v12686_v57 = vpop.f32.mrf.mxu0 }
 0x2b3   : > { %v12666_v47 = vpop.f32.mrf.mxu1  ;;  %14595 = vst [vmem:[#allocation148_spill] sm:$0xff] %v12686_v57 }
 0x2b4   : > { %14586 = vst [vmem:[#allocation139_spill] sm:$0xff] %v12666_v47  ;;  %v12698_v35 = vpop.f32.mrf.mxu0 }
 0x2b5   : > { %v12670_v37 = vpop.f32.mrf.mxu1 }
 0x2b6   : > { %14587 = vst [vmem:[#allocation140_spill] sm:$0xff] %v12670_v37  ;;  %v3665_v37 = vadd.f32 %v12436_v8, %v12411_v43 }
 0x2b7   : > { %v12672_v51 = vpop.f32.mrf.mxu1 }
 0x2b8   : > { %14588 = vst [vmem:[#allocation141_spill] sm:$0xff] %v12672_v51  ;;  %v4003_v48 = vadd.f32 %v10090_v16, %v3665_v37  ;;  %v12711_v37 = vpop.f32.mrf.mxu0 }
 0x2b9   : > { %v12676_v21 = vpop.f32.mrf.mxu1 }
 0x2ba   : > { %14590 = vst [vmem:[#allocation143_spill] sm:$0xff] %v12676_v21  ;;  %v3020_v21 = vadd.f32 %v12279_v22, %v12264_v39  ;;  %v4309_v57 = vadd.f32 %v10138_v56, %v4003_v48  ;;  %v12708_v39 = vld [vmem:[%s14150_s4] ss:$0 sm:$0xff] }
 0x2bb   : > { %v12678_v18 = vpop.f32.mrf.mxu1  ;;  %v14599_v48 = vld [vmem:[#allocation70_spill] sm:$0xff] }
 0x2bc   : > { %14591 = vst [vmem:[#allocation144_spill] sm:$0xff] %v12678_v18  ;;  %v3663_v18 = vadd.f32 %v12441_v53, %v12419_v62 }
 0x2bd   : > { %v12682_v63 = vpop.f32.mrf.mxu1 }
 0x2be   : > { %14593 = vst [vmem:[#allocation146_spill] sm:$0xff] %v12682_v63  ;;  %v4001_v43 = vadd.f32 %v3874_v58, %v3663_v18  ;;  %v14597_v58 = vld [vmem:[#allocation68_spill] sm:$0xff]  ;;  %v3669_v18 = vadd.f32 %v12467_v34, %v12439_v49 }
 0x2bf   : > { %v12684_v26 = vpop.f32.mrf.mxu1 }
 0x2c0   : > { %14594 = vst [vmem:[#allocation147_spill] sm:$0xff] %v12684_v26  ;;  %v3666_v26 = vadd.f32 %v12452_v15, %v12424_v0  ;;  %v4307_v62 = vadd.f32 %v4180_v13, %v4001_v43  ;;  %v2316_v0 = vadd.f32 %v12208_v17, %v12192_v3  ;;  %v12727_v3 = vadd.f32 %v12261_v46, %v14599_v48  ;;  %v14604_v48 = vld [vmem:[#allocation122_spill] sm:$0xff] }
 0x2c1   : > { %v12688_v47 = vpop.f32.mrf.mxu1  ;;  %v3024_v17 = vadd.f32 %v12297_v40, %v12282_v60  ;;  %v3028_v46 = vadd.f32 %v12315_v7, %v12300_v29  ;;  %v3670_v60 = vadd.f32 %v12481_v32, %v12455_v38 }
 0x2c2   : > { %14596 = vst [vmem:[#allocation149_spill] sm:$0xff] %v12688_v47  ;;  %v3326_v47 = vadd.f32 %v12431_v1, %v3020_v21  ;;  %v4004_v53 = vadd.f32 %v10091_v52, %v3666_v26  ;;  %v2332_v21 = vadd.f32 %v12225_v42, %v12210_v31  ;;  %v14598_v1 = vld [vmem:[#allocation69_spill] sm:$0xff]  ;;  %v3667_v31 = vadd.f32 %v12472_v28, %v12450_v54 }
 0x2c3   : > { %v12692_v51 = vpop.f32.mrf.mxu1  ;;  %v12719_v15 = vadd.f32 %v14598_v1, %v14597_v58  ;;  %v4007_v42 = vadd.f32 %v12612_v20, %v3669_v18  ;;  %v3330_v40 = vadd.f32 %v12459_v23, %v3024_v17  ;;  %v2698_v29 = vadd.f32 %v12338_v24, %v2316_v0 }
 0x2c4   : > { %v3664_v22 = vadd.f32 %v12457_v9, %v3326_v47  ;;  %v4310_v47 = vadd.f32 %v10139_v10, %v4004_v53  ;;  %v12735_v10 = vpop.f32.mrf.mxu0  ;;  %v4005_v54 = vadd.f32 %v12614_v50, %v3667_v31  ;;  %v4008_v7 = vadd.f32 %v12616_v12, %v3670_v60 }
 0x2c5   : > { %v12700_v63 = vpop.f32.mrf.mxu1  ;;  %v4313_v20 = vadd.f32 %v12622_v44, %v4007_v42  ;;  %v3668_v32 = vadd.f32 %v12486_v5, %v3330_v40  ;;  %v2702_v1 = vadd.f32 %v12358_v19, %v2332_v21  ;;  %v10795_v19 = vld [vmem:[%s14151_s5 + $0xb0] sm:$0xff]   ;;  %v14600_v21 = vld [vmem:[#allocation71_spill] sm:$0xff] }
 0x2c6   : > { %v4002_v9 = vadd.f32 %v12610_v4, %v3664_v22  ;;  %v12748_v22 = vadd.f32 %v12336_v36, %v12318_v11  ;;  %v4311_v23 = vadd.f32 %v12626_v2, %v4005_v54  ;;  %v12754_v50 = vpop.f32.mrf.mxu0  ;;  %v3673_v11 = vadd.f32 %v12493_v59, %v12470_v61  ;;  %v14605_v42 = vld [vmem:[#allocation128_spill] sm:$0xff]  ;;  %v14607_v40 = vld [vmem:[#allocation83_spill] sm:$0xff] }
 0x2c7   : > { %v10186_v8 = vpop.f32.mrf.mxu1  ;;  %v4314_v36 = vadd.f32 %v12632_v41, %v4008_v7  ;;  %v4006_v24 = vadd.f32 %v12620_v33, %v3668_v32 }
 0x2c8   : > { %v4647_v16 = vadd.f32 %v10186_v8, %v4309_v57  ;;  %v4308_v34 = vadd.f32 %v12618_v55, %v4002_v9  ;;  %v4011_v61 = vadd.f32 %v12624_v25, %v3673_v11  ;;  %v12770_v41 = vpop.f32.mrf.mxu0  ;;  %v14603_v25 = vld [vmem:[#allocation77_spill] sm:$0xff] }
 0x2c9   : > { %v4518_v56 = vpop.f32.mrf.mxu1  ;;  %v4312_v18 = vadd.f32 %v12638_v30, %v4006_v24 }
 0x2ca   : > { %v4686_v26 = vadd.f32 %v12708_v39, %v4647_v16  ;;  %v4645_v57 = vadd.f32 %v4518_v56, %v4307_v62  ;;  %v12758_v16 = vadd.f32 %v12356_v45, %v2698_v29  ;;  %v3671_v45 = vadd.f32 %v12498_v27, %v12478_v14  ;;  %v14601_v14 = vld [vmem:[#allocation76_spill] sm:$0xff]  ;;  %v12791_v29 = vpop.f32.mrf.mxu0 }
 0x2cb   : > { %v10187_v49 = vpop.f32.mrf.mxu1  ;;  %v14602_v27 = vld [vmem:[#allocation80_spill] sm:$0xff] }
 0x2cc   : > { %v4718_v4 = vmax.f32 %v4686_v26, 0.0  ;;  %v4684_v52 = vadd.f32 %v12708_v39, %v4645_v57  ;;  %v4648_v13 = vadd.f32 %v10187_v49, %v4310_v47  ;;  %v12777_v26 = vadd.f32 %v14600_v21, %v2702_v1 }
 0x2cd   : > { %v4521_v28 = vpop.f32.mrf.mxu1  ;;  %v3674_v30 = vadd.f32 %v14602_v27, %v14601_v14  ;;  %v3334_v57 = vadd.f32 %v14603_v25, %v3028_v46  ;;  %v4009_v17 = vadd.f32 %v14604_v48, %v3671_v45  ;;  %v4317_v49 = vadd.f32 %v14605_v42, %v4011_v61  ;;  %v14609_v46 = vld [vmem:[#allocation82_spill] sm:$0xff]  ;;  %v14617_v61 = vld [vmem:[#allocation87_spill] sm:$0xff]  ;;  %v14620_v14 = vld [vmem:[#allocation125_spill] sm:$0xff] }
 0x2ce   : > { %4750 = vst [vmem:[#allocation2 + $0x28] sm:$0xff] %v4718_v4  ;;  %v4716_v55 = vmax.f32 %v4684_v52, 0.0  ;;  %v4687_v43 = vadd.f32 %v12708_v39, %v4648_v13  ;;  %v4646_v8 = vadd.f32 %v4521_v28, %v4308_v34  ;;  %v14606_v13 = vld [vmem:[#allocation72_spill] sm:$0xff]  ;;  %v14608_v28 = vld [vmem:[#allocation123_spill] sm:$0xff] }
 0x2cf   : > { %v10190_v38 = vpop.f32.mrf.mxu1  ;;  %v2706_v60 = vadd.f32 %v14606_v13, %v12719_v15  ;;  %v3672_v54 = vadd.f32 %v14607_v40, %v3334_v57  ;;  %v10796_v15 = vld [vmem:[%s14151_s5 + $0xa8] sm:$0xff]  }
 0x2d0   : > { %4748 = vst [vmem:[#allocation2 + $0x18] sm:$0xff] %v4716_v55  ;;  %v4719_v44 = vmax.f32 %v4687_v43, 0.0  ;;  %v4685_v62 = vadd.f32 %v12708_v39, %v4646_v8  ;;  %v4651_v53 = vadd.f32 %v10190_v38, %v4313_v20  ;;  %v4012_v20 = vadd.f32 %v14608_v28, %v3674_v30  ;;  %v14610_v43 = vld [vmem:[#allocation131_spill] sm:$0xff] }
 0x2d1   : > { %v4534_v5 = vpop.f32.mrf.mxu1  ;;  %v4315_v8 = vadd.f32 %v14610_v43, %v4009_v17  ;;  %v12811_v17 = vpop.f32.mrf.mxu0 }
 0x2d2   : > { %4751 = vst [vmem:[#allocation2 + $0x30] sm:$0xff] %v4719_v44  ;;  %v4717_v2 = vmax.f32 %v4685_v62, 0.0  ;;  %v4690_v12 = vadd.f32 %v12708_v39, %v4651_v53  ;;  %v4649_v0 = vadd.f32 %v4534_v5, %v4311_v23  ;;  %v4910_v58 = vpack.c.bf16 %v4719_v44, %v4718_v4  ;;  %v14611_v23 = vld [vmem:[#allocation73_spill] sm:$0xff]  ;;  %v14612_v62 = vld [vmem:[#allocation78_spill] sm:$0xff]  ;;  %v14615_v5 = vld [vmem:[#allocation124_spill] sm:$0xff] }
 0x2d3   : > { %v10191_v59 = vpop.f32.mrf.mxu1  ;;  %v12798_v44 = vadd.f32 %v14611_v23, %v2706_v60  ;;  %v14613_v53 = vld [vmem:[#allocation85_spill] sm:$0xff]  ;;  %v14623_v60 = vld [vmem:[#allocation126_spill] sm:$0xff]  ;;  %v14627_v23 = vld [vmem:[#allocation92_spill] sm:$0xff] }
 0x2d4   : > { %4749 = vst [vmem:[#allocation2 + $0x20] sm:$0xff] %v4717_v2  ;;  %v4722_v33 = vmax.f32 %v4690_v12, 0.0  ;;  %v4688_v56 = vadd.f32 %v12708_v39, %v4649_v0  ;;  %v4652_v47 = vadd.f32 %v10191_v59, %v4314_v36  ;;  %v4909_v9 = vpack.c.bf16 %v4717_v2, %v4716_v55  ;;  %v14614_v36 = vld [vmem:[#allocation134_spill] sm:$0xff] }
 0x2d5   : > { %v4537_v31 = vpop.f32.mrf.mxu1  ;;  %v3677_v11 = vadd.f32 %v14613_v53, %v14612_v62  ;;  %v4318_v24 = vadd.f32 %v14614_v36, %v4012_v20  ;;  %v4010_v2 = vadd.f32 %v14615_v5, %v3672_v54  ;;  %v10797_v20 = vld [vmem:[%s14151_s5 + $0xa0] sm:$0xff]   ;;  %v3342_v62 = vadd.f32 %v14627_v23, %v12758_v16  ;;  %v14629_v36 = vld [vmem:[#allocation15_spill] sm:$0xff] }
 0x2d6   : > { %4754 = vst [vmem:[#allocation2 + $0x48] sm:$0xff] %v4722_v33  ;;  %v4720_v34 = vmax.f32 %v4688_v56, 0.0  ;;  %v4691_v4 = vadd.f32 %v12708_v39, %v4652_v47  ;;  %v4650_v52 = vadd.f32 %v4537_v31, %v4312_v18  ;;  %10233 = vmatmul.mubr.bf16.vlgmr.msra.gmra.mxu0 %v4909_v9  ;;  %v14616_v18 = vld [vmem:[#allocation79_spill] sm:$0xff]  ;;  %v14618_v56 = vld [vmem:[#allocation84_spill] sm:$0xff]  ;;  %v14619_v9 = vld [vmem:[#allocation137_spill] sm:$0xff]  ;;  %vm14630_vm0 = vnez %v14629_v36 }
 0x2d7   : > { %v10194_v55 = vpop.f32.mrf.mxu1  ;;  %10236 = vmatprep.mubr.bf16.mxu0 %v4910_v58  ;;  %10313 = vmatpush3.bf16.msra.mxu0 %v14609_v46  ;;  %v3675_v59 = vadd.f32 %v14617_v61, %v14616_v18  ;;  %v3338_v47 = vadd.f32 %v14618_v56, %v12748_v22  ;;  %v4316_v21 = vadd.f32 %v14619_v9, %v4010_v2  ;;  %v4782_v25 = vld [vmem:[#allocation2 + $0x17] sm:$0xff]  ;;  %v12843_v2 = vpop.f32.mrf.mxu0  ;;  %v14632_v16 = vld [vmem:[#allocation86_spill] sm:$0xff] }
 0x2d8   : > { %4752 = vst [vmem:[#allocation2 + $0x38] sm:$0xff] %v4720_v34  ;;  %v4723_v32 = vmax.f32 %v4691_v4, 0.0  ;;  %v4689_v7 = vadd.f32 %v12708_v39, %v4650_v52  ;;  %v4655_v38 = vadd.f32 %v10194_v55, %v4317_v49  ;;  %10314 = vmatprep.subr.bf16.mxu0 %v10795_v19  ;;  %v4015_v27 = vadd.f32 %v14620_v14, %v3677_v11  ;;  %v14621_v4 = vld [vmem:[#allocation81_spill] sm:$0xff]  ;;  %v14636_v14 = vld [vmem:[#allocation112_spill] sm:$0xff] }
 0x2d9   : > { %v4550_v12 = vpop.f32.mrf.mxu1  ;;  %v4785_v22 = vld [vmem:[#allocation2 + $0x2f] sm:$0xff]  ;;  %v14622_v52 = vld [vmem:[#allocation89_spill] sm:$0xff]  ;;  %v4013_v40 = vadd.f32 %v14623_v60, %v3675_v59  ;;  %v14642_v60 = vld [vmem:[#allocation130_spill] sm:$0xff] }
 0x2da   : > { %4755 = vst [vmem:[#allocation2 + $0x50] sm:$0xff] %v4723_v32  ;;  %v4721_v0 = vmax.f32 %v4689_v7, 0.0  ;;  %v4694_v58 = vadd.f32 %v12708_v39, %v4655_v38  ;;  %v4653_v1 = vadd.f32 %v4550_v12, %v4315_v8  ;;  %v4912_v45 = vpack.c.bf16 %v4723_v32, %v4722_v33  ;;  %v14624_v32 = vld [vmem:[#allocation14_spill] sm:$0xff]  ;;  %v14626_v7 = vld [vmem:[#allocation91_spill] sm:$0xff]  ;;  %v14634_v61 = vld [vmem:[#allocation145_spill] sm:$0xff] }
 0x2db   : > { %v10195_v30 = vpop.f32.mrf.mxu1  ;;  %v4783_v57 = vld [vmem:[#allocation2 + $0x1f] sm:$0xff]  ;;  %v4784_v48 = vld [vmem:[#allocation2 + $0x27] sm:$0xff]  ;;  %10315 = vmatpush3.bf16.msra.mxu0 %v10795_v19  ;;  %v3678_v13 = vadd.f32 %v14622_v52, %v14621_v4  ;;  %v4321_v55 = vadd.f32 %v12668_v6, %v4015_v27  ;;  %vm14625_vm11 = vnez %v14624_v32  ;;  %v3676_v38 = vadd.f32 %v14626_v7, %v3338_v47  ;;  %v14641_v52 = vld [vmem:[#allocation148_spill] sm:$0xff] }
 0x2dc   : > { %4753 = vst [vmem:[#allocation2 + $0x40] sm:$0xff] %v4721_v0  ;;  %v4726_v31 = vmax.f32 %v4694_v58, 0.0  ;;  %v12814_v33 = vadd.f32 %v12708_v39, %v4653_v1  ;;  %v4656_v42 = vadd.f32 %v10195_v30, %v4318_v24  ;;  %v12816_v49 = vpack.c.bf16 %v4783_v57, %v4782_v25  ;;  %10316 = vmatprep.subr.bf16.mxu0 %v10796_v15  ;;  %v14628_v6 = vld [vmem:[#allocation127_spill] sm:$0xff]  ;;  %v14631_v24 = vld [vmem:[#allocation142_spill] sm:$0xff]  ;;  %v14633_v1 = vld [vmem:[#allocation93_spill] sm:$0xff] }
 0x2dd   : > { %v4553_v54 = vpop.f32.mrf.mxu1  ;;  %v12821_v28 = vpack.c.bf16 %v4785_v22, %v4784_v48  ;;  %v4911_v19 = vpack.c.bf16 %v4721_v0, %v4720_v34  ;;  %v10800_v34 = vld [vmem:[%s14151_s5 + $0xf0] sm:$0xff]   ;;  %v4016_v53 = vadd.f32 %v14628_v6, %v3678_v13  ;;  %v4319_v5 = vadd.f32 %v14631_v24, %v4013_v40  ;;  %v14635_v56 = vld [vmem:[#allocation129_spill] sm:$0xff]  ;;  %v10802_v25 = vld [vmem:[%s14151_s5 + $0xe8] sm:$0xff]  }
 0x2de   : > { %4758 = vst [vmem:[#allocation2 + $0x68] sm:$0xff] %v4726_v31  ;;  %v4724_v46 = vmax.f32 %v12814_v33, 0.0  ;;  %v4695_v43 = vadd.f32 %v12708_v39, %v4656_v42  ;;  %v4654_v8 = vadd.f32 %v4553_v54, %v4316_v21  ;;  %10281 = vmatmul.mubr.msk.bf16.vlgmr.msra.gmra.mxu1 %vm14625_vm11, %v12816_v49  ;;  %v3681_v18 = vadd.f32 %v14633_v1, %v14632_v16  ;;  %v10798_v21 = vld [vmem:[%s14151_s5 + $0x98] sm:$0xff]   ;;  %v14637_v57 = vld [vmem:[#allocation88_spill] sm:$0xff]  ;;  %v14638_v48 = vld [vmem:[#allocation95_spill] sm:$0xff] }
 0x2df   : > { %v10198_v11 = vpop.f32.mrf.mxu1  ;;  %10284 = vmatprep.mubr.msk.bf16.mxu1 %vm14630_vm0, %v12821_v28  ;;  %10237 = vmatmul.mubr.bf16.gmra.mxu0 %v4911_v19  ;;  %v4322_v59 = vadd.f32 %v14634_v61, %v4016_v53  ;;  %v4014_v47 = vadd.f32 %v14635_v56, %v3676_v38  ;;  %v3679_v33 = vadd.f32 %v14638_v48, %v14637_v57  ;;  %v14639_v42 = vld [vmem:[#allocation90_spill] sm:$0xff]  ;;  %v14640_v22 = vld [vmem:[#allocation97_spill] sm:$0xff]  ;;  %v14643_v53 = vld [vmem:[#allocation132_spill] sm:$0xff] }
 0x2e0   : > { %4756 = vst [vmem:[#allocation2 + $0x58] sm:$0xff] %v4724_v46  ;;  %v4727_v12 = vmax.f32 %v4695_v43, 0.0  ;;  %v4693_v0 = vadd.f32 %v12708_v39, %v4654_v8  ;;  %v4659_v58 = vadd.f32 %v10198_v11, %v4321_v55  ;;  %10240 = vmatprep.mubr.bf16.mxu0 %v4912_v45  ;;  %10317 = vmatpush3.bf16.msra.mxu0 %v10796_v15  ;;  %v4786_v19 = vld [vmem:[#allocation2 + $0x37] sm:$0xff] }
 0x2e1   : > { %v4566_v9 = vpop.f32.mrf.mxu1  ;;  %10318 = vmatprep.subr.bf16.mxu0 %v10797_v20  ;;  %10361 = vmatpush3.bf16.msra.mxu1 %v14636_v14  ;;  %v3682_v4 = vadd.f32 %v14640_v22, %v14639_v42  ;;  %v4320_v13 = vadd.f32 %v14641_v52, %v4014_v47  ;;  %v4019_v40 = vadd.f32 %v14642_v60, %v3681_v18  ;;  %v4789_v6 = vld [vmem:[#allocation2 + $0x4f] sm:$0xff]  ;;  %v14648_v56 = vld [vmem:[#allocation133_spill] sm:$0xff] }
 0x2e2   : > { %4759 = vst [vmem:[#allocation2 + $0x70] sm:$0xff] %v4727_v12  ;;  %v4725_v27 = vmax.f32 %v4693_v0, 0.0  ;;  %v4698_v45 = vadd.f32 %v12708_v39, %v4659_v58  ;;  %v4657_v15 = vadd.f32 %v4566_v9, %v4319_v5  ;;  %v4914_v30 = vpack.c.bf16 %v4727_v12, %v4726_v31  ;;  %10362 = vmatprep.subr.bf16.mxu1 %v10800_v34  ;;  %v12864_v31 = vpop.f32.mrf.mxu0  ;;  %v10801_v0 = vld [vmem:[%s14151_s5 + $0x90] sm:$0xff]   ;;  %v14649_v14 = vld [vmem:[#allocation21_spill] sm:$0xff]  ;;  %v14653_v22 = vld [vmem:[#allocation135_spill] sm:$0xff] }
 0x2e3   : > { %v10199_v54 = vpop.f32.mrf.mxu1  ;;  %v4787_v55 = vld [vmem:[#allocation2 + $0x3f] sm:$0xff]  ;;  %v4788_v43 = vld [vmem:[#allocation2 + $0x47] sm:$0xff]  ;;  %v4017_v11 = vadd.f32 %v14643_v53, %v3679_v33  ;;  %v4325_v58 = vadd.f32 %v12698_v35, %v4019_v40  ;;  %v14644_v18 = vld [vmem:[#allocation20_spill] sm:$0xff]  ;;  %v4020_v47 = vadd.f32 %v14648_v56, %v3682_v4  ;;  %vm14650_vm8 = vnez %v14649_v14 }
 0x2e4   : > { %4757 = vst [vmem:[#allocation2 + $0x60] sm:$0xff] %v4725_v27  ;;  %v4730_v8 = vmax.f32 %v4698_v45, 0.0  ;;  %v12867_v7 = vadd.f32 %v12708_v39, %v4657_v15  ;;  %v4660_v38 = vadd.f32 %v10199_v54, %v4322_v59  ;;  %v12869_v23 = vpack.c.bf16 %v4787_v55, %v4786_v19  ;;  %10319 = vmatpush3.bf16.msra.mxu0 %v10797_v20  ;;  %v14647_v59 = vld [vmem:[#allocation100_spill] sm:$0xff]  ;;  %v12894_v45 = vpop.f32.mrf.mxu0  ;;  %v14652_v48 = vld [vmem:[#allocation101_spill] sm:$0xff]  ;;  %v14655_v54 = vld [vmem:[#allocation103_spill] sm:$0xff] }
 0x2e5   : > { %v4569_v24 = vpop.f32.mrf.mxu1  ;;  %v12872_v5 = vpack.c.bf16 %v4789_v6, %v4788_v43  ;;  %v4913_v12 = vpack.c.bf16 %v4725_v27, %v4724_v46  ;;  %10320 = vmatprep.subr.bf16.mxu0 %v10798_v21  ;;  %10363 = vmatpush3.bf16.msra.mxu1 %v10800_v34  ;;  %vm14645_vm7 = vnez %v14644_v18  ;;  %v10803_v46 = vld [vmem:[%s14151_s5 + $0xe0] sm:$0xff]   ;;  %v14646_v34 = vld [vmem:[#allocation99_spill] sm:$0xff]  ;;  %v3346_v35 = vadd.f32 %v14647_v59, %v12777_v26  ;;  %v14654_v40 = vld [vmem:[#allocation96_spill] sm:$0xff] }
 0x2e6   : > { %4762 = vst [vmem:[#allocation2 + $0x88] sm:$0xff] %v4730_v8  ;;  %v4728_v16 = vmax.f32 %v12867_v7, 0.0  ;;  %v4699_v1 = vadd.f32 %v12708_v39, %v4660_v38  ;;  %v4658_v20 = vadd.f32 %v4569_v24, %v4320_v13  ;;  %10285 = vmatmul.mubr.msk.bf16.gmra.mxu1 %vm14645_vm7, %v12869_v23  ;;  %10364 = vmatprep.subr.bf16.mxu1 %v10802_v25  ;;  %v14651_v26 = vld [vmem:[#allocation94_spill] sm:$0xff]  ;;  %v14658_v38 = vld [vmem:[#allocation136_spill] sm:$0xff] }
 0x2e7   : > { %v3680_v61 = vadd.f32 %v14646_v34, %v3342_v62  ;;  %v10202_v9 = vpop.f32.mrf.mxu1  ;;  %10288 = vmatprep.mubr.msk.bf16.mxu1 %vm14650_vm8, %v12872_v5  ;;  %10241 = vmatmul.mubr.bf16.gmra.mxu0 %v4913_v12  ;;  %v4323_v27 = vadd.f32 %v12711_v37, %v4017_v11  ;;  %v3685_v33 = vadd.f32 %v14652_v48, %v14651_v26  ;;  %v10804_v37 = vld [vmem:[%s14151_s5 + $0x88] sm:$0xff]   ;;  %v14656_v55 = vld [vmem:[#allocation98_spill] sm:$0xff]  ;;  %v4790_v11 = vld [vmem:[#allocation2 + $0x57] sm:$0xff] }
 0x2e8   : > { %4760 = vst [vmem:[#allocation2 + $0x78] sm:$0xff] %v4728_v16  ;;  %v4731_v15 = vmax.f32 %v4699_v1, 0.0  ;;  %v4697_v57 = vadd.f32 %v12708_v39, %v4658_v20  ;;  %v4663_v62 = vadd.f32 %v10202_v9, %v4325_v58  ;;  %10244 = vmatprep.mubr.bf16.mxu0 %v4914_v30  ;;  %10321 = vmatpush3.bf16.msra.mxu0 %v10798_v21  ;;  %v14659_v59 = vld [vmem:[#allocation138_spill] sm:$0xff] }
 0x2e9   : > { %v4326_v42 = vadd.f32 %v12735_v10, %v4020_v47  ;;  %v4018_v4 = vadd.f32 %v14653_v22, %v3680_v61  ;;  %v4582_v52 = vpop.f32.mrf.mxu1  ;;  %10322 = vmatprep.subr.bf16.mxu0 %v10801_v0  ;;  %10365 = vmatpush3.bf16.msra.mxu1 %v10802_v25  ;;  %v10805_v10 = vld [vmem:[%s14151_s5 + $0xd8] sm:$0xff]   ;;  %v3683_v19 = vadd.f32 %v14655_v54, %v14654_v40  ;;  %v4793_v61 = vld [vmem:[#allocation2 + $0x6f] sm:$0xff]  ;;  %v14660_v26 = vld [vmem:[#allocation26_spill] sm:$0xff] }
 0x2ea   : > { %4763 = vst [vmem:[#allocation2 + $0x90] sm:$0xff] %v4731_v15  ;;  %v4729_v13 = vmax.f32 %v4697_v57, 0.0  ;;  %v4702_v60 = vadd.f32 %v12708_v39, %v4663_v62  ;;  %v4661_v30 = vadd.f32 %v4582_v52, %v4323_v27  ;;  %v4916_v21 = vpack.c.bf16 %v4731_v15, %v4730_v8  ;;  %10366 = vmatprep.subr.bf16.mxu1 %v10803_v46  ;;  %v14657_v25 = vld [vmem:[#allocation105_spill] sm:$0xff]  ;;  %v12914_v8 = vpop.f32.mrf.mxu0  ;;  %v10807_v27 = vld [vmem:[%s14151_s5 + $0x80] sm:$0xff]   ;;  %v14665_v52 = vld [vmem:[#allocation27_spill] sm:$0xff] }
 0x2eb   : > { %v3686_v43 = vadd.f32 %v14657_v25, %v14656_v55  ;;  %v4324_v7 = vadd.f32 %v12754_v50, %v4018_v4  ;;  %v4023_v6 = vadd.f32 %v14658_v38, %v3685_v33  ;;  %v10203_v53 = vpop.f32.mrf.mxu1  ;;  %v4791_v24 = vld [vmem:[#allocation2 + $0x5f] sm:$0xff]  ;;  %v4792_v12 = vld [vmem:[#allocation2 + $0x67] sm:$0xff]  ;;  %v4021_v50 = vadd.f32 %v14659_v59, %v3683_v19  ;;  %v14663_v33 = vld [vmem:[#allocation108_spill] sm:$0xff] }
 0x2ec   : > { %4761 = vst [vmem:[#allocation2 + $0x80] sm:$0xff] %v4729_v13  ;;  %v4734_v58 = vmax.f32 %v4702_v60, 0.0  ;;  %v12917_v1 = vadd.f32 %v12708_v39, %v4661_v30  ;;  %v4664_v20 = vadd.f32 %v10203_v53, %v4326_v42  ;;  %v12919_v34 = vpack.c.bf16 %v4791_v24, %v4790_v11  ;;  %10323 = vmatpush3.bf16.msra.mxu0 %v10801_v0  ;;  %v14664_v42 = vld [vmem:[#allocation139_spill] sm:$0xff]  ;;  %v12944_v60 = vpop.f32.mrf.mxu0  ;;  %v14668_v54 = vld [vmem:[#allocation109_spill] sm:$0xff]  ;;  %v14669_v25 = vld [vmem:[#allocation140_spill] sm:$0xff] }
 0x2ed   : > { %v4585_v56 = vpop.f32.mrf.mxu1  ;;  %v12922_v47 = vpack.c.bf16 %v4793_v61, %v4792_v12  ;;  %v4915_v9 = vpack.c.bf16 %v4729_v13, %v4728_v16  ;;  %10367 = vmatpush3.bf16.msra.mxu1 %v10803_v46  ;;  %10324 = vmatprep.subr.bf16.mxu0 %v10804_v37  ;;  %v4329_v15 = vadd.f32 %v12770_v41, %v4023_v6  ;;  %v10806_v16 = vld [vmem:[%s14151_s5 + $0xd0] sm:$0xff]   ;;  %v14662_v46 = vld [vmem:[#allocation107_spill] sm:$0xff]  ;;  %v14672_v24 = vld [vmem:[#allocation106_spill] sm:$0xff] }
 0x2ee   : > { %4766 = vst [vmem:[#allocation2 + $0xa8] sm:$0xff] %v4734_v58  ;;  %v4732_v57 = vmax.f32 %v12917_v1, 0.0  ;;  %v4703_v62 = vadd.f32 %v12708_v39, %v4664_v20  ;;  %v4662_v0 = vadd.f32 %v4585_v56, %v4324_v7  ;;  %vm14661_vm2 = vnez %v14660_v26  ;;  %10368 = vmatprep.subr.bf16.mxu1 %v10805_v10  ;;  %v14670_v53 = vld [vmem:[#allocation104_spill] sm:$0xff]  ;;  %v14673_v12 = vld [vmem:[#allocation114_spill] sm:$0xff]  ;;  %v14674_v61 = vld [vmem:[#allocation141_spill] sm:$0xff] }
 0x2ef   : > { %10289 = vmatmul.mubr.msk.bf16.gmra.mxu1 %vm14661_vm2, %v12919_v34  ;;  %v3684_v48 = vadd.f32 %v14662_v46, %v3346_v35  ;;  %v3350_v41 = vadd.f32 %v14663_v33, %v12798_v44  ;;  %v4024_v22 = vadd.f32 %v14664_v42, %v3686_v43  ;;  %v10206_v4 = vpop.f32.mrf.mxu1  ;;  %vm14666_vm8 = vnez %v14665_v52  ;;  %v14667_v44 = vld [vmem:[#allocation102_spill] sm:$0xff]  ;;  %v4794_v56 = vld [vmem:[#allocation2 + $0x77] sm:$0xff] }
 0x2f0   : > { %10292 = vmatprep.mubr.msk.bf16.mxu1 %vm14666_vm8, %v12922_v47  ;;  %10245 = vmatmul.mubr.bf16.gmra.mxu0 %v4915_v9  ;;  %v4327_v13 = vadd.f32 %v12791_v29, %v4021_v50  ;;  %4764 = vst [vmem:[#allocation2 + $0x98] sm:$0xff] %v4732_v57  ;;  %v4735_v30 = vmax.f32 %v4703_v62, 0.0  ;;  %v4701_v40 = vadd.f32 %v12708_v39, %v4662_v0  ;;  %v12954_v29 = vld [vmem:[%s14151_s5 + $0x138] sm:$0xff]  }
 0x2f1   : > { %v4667_v35 = vadd.f32 %v10206_v4, %v4329_v15  ;;  %10248 = vmatprep.mubr.bf16.mxu0 %v4916_v21  ;;  %10325 = vmatpush3.bf16.msra.mxu0 %v10804_v37  ;;  %v3689_v19 = vadd.f32 %v14668_v54, %v14667_v44  ;;  %v4330_v55 = vadd.f32 %v12811_v17, %v4024_v22  ;;  %v4598_v7 = vpop.f32.mrf.mxu1  ;;  %v10808_v17 = vld [vmem:[%s14151_s5 + $0xc8] sm:$0xff]  }
 0x2f2   : > { %v4022_v43 = vadd.f32 %v14669_v25, %v3684_v48  ;;  %10369 = vmatpush3.bf16.msra.mxu1 %v10805_v10  ;;  %10326 = vmatprep.subr.bf16.mxu0 %v10807_v27  ;;  %4767 = vst [vmem:[#allocation2 + $0xb0] sm:$0xff] %v4735_v30  ;;  %v12956_v38 = vmax.f32 %v4701_v40, 0.0  ;;  %v4665_v21 = vadd.f32 %v4598_v7, %v4327_v13  ;;  %v14671_v10 = vld [vmem:[#allocation111_spill] sm:$0xff]  ;;  %v14681_v7 = vld [vmem:[#allocation33_spill] sm:$0xff] }
 0x2f3   : > { %v4706_v37 = vadd.f32 %v12708_v39, %v4667_v35  ;;  %v4918_v6 = vpack.c.bf16 %v4735_v30, %v4734_v58  ;;  %10370 = vmatprep.subr.bf16.mxu1 %v10806_v16  ;;  %v3687_v11 = vadd.f32 %v14671_v10, %v14670_v53  ;;  %v3690_v1 = vadd.f32 %v14673_v12, %v14672_v24  ;;  %v10207_v50 = vpop.f32.mrf.mxu1  ;;  %v4795_v9 = vld [vmem:[#allocation2 + $0x7f] sm:$0xff]  ;;  %v4796_v15 = vld [vmem:[#allocation2 + $0x87] sm:$0xff]  ;;  %v12968_v58 = vpop.f32.mrf.mxu0  ;;  %v4797_v33 = vld [vmem:[#allocation2 + $0x8f] sm:$0xff] }
 0x2f4   : > { %v4328_v20 = vadd.f32 %v12843_v2, %v4022_v43  ;;  %v4027_v59 = vadd.f32 %v14674_v61, %v3689_v19  ;;  %4765 = vst [vmem:[#allocation2 + $0xa0] sm:$0xff] %v12956_v38  ;;  %v12972_v0 = vadd.f32 %v12708_v39, %v4665_v21  ;;  %v4668_v46 = vadd.f32 %v10207_v50, %v4330_v55  ;;  %v14675_v2 = vld [vmem:[#allocation143_spill] sm:$0xff]  ;;  %v14679_v19 = vld [vmem:[#allocation116_spill] sm:$0xff]  ;;  %v14685_v12 = vld [vmem:[#allocation118_spill] sm:$0xff] }
 0x2f5   : > { %v4738_v62 = vmax.f32 %v4706_v37, 0.0  ;;  %v12974_v48 = vpack.c.bf16 %v4795_v9, %v4794_v56  ;;  %10327 = vmatpush3.bf16.msra.mxu0 %v10807_v27  ;;  %v4025_v42 = vadd.f32 %v14675_v2, %v3687_v11  ;;  %v4601_v22 = vpop.f32.mrf.mxu1  ;;  %v12977_v4 = vpack.c.bf16 %v4797_v33, %v4796_v15  ;;  %v14676_v27 = vld [vmem:[#allocation32_spill] sm:$0xff]  ;;  %v4292_v21 = vpop.f32.mrf.mxu0  ;;  %v14686_v61 = vld [vmem:[#allocation146_spill] sm:$0xff] }
 0x2f6   : > { %v4917_v13 = vpack.c.bf16 %v12956_v38, %v4732_v57  ;;  %10371 = vmatpush3.bf16.msra.mxu1 %v10806_v16  ;;  %10408 = vmatprep.subr.bf16.mxu0 %v12954_v29  ;;  %v4333_v30 = vadd.f32 %v12864_v31, %v4027_v59  ;;  %v4736_v40 = vmax.f32 %v12972_v0, 0.0  ;;  %v4707_v35 = vadd.f32 %v12708_v39, %v4668_v46  ;;  %v10809_v57 = vld [vmem:[%s14151_s5 + $0xc0] sm:$0xff]   ;;  %v14680_v55 = vld [vmem:[#allocation144_spill] sm:$0xff]  ;;  %v14687_v0 = vld [vmem:[#allocation113_spill] sm:$0xff] }
 0x2f7   : > { %4770 = vst [vmem:[#allocation2 + $0xc8] sm:$0xff] %v4738_v62  ;;  %v4666_v44 = vadd.f32 %v4601_v22, %v4328_v20  ;;  %vm14677_vm8 = vnez %v14676_v27  ;;  %10372 = vmatprep.subr.bf16.mxu1 %v10808_v17  ;;  %v14678_v16 = vld [vmem:[#allocation74_spill] sm:$0xff]  ;;  %v3688_v31 = vadd.f32 %v14679_v19, %v3350_v41  ;;  %v4028_v25 = vadd.f32 %v14680_v55, %v3690_v1  ;;  %v10210_v43 = vpop.f32.mrf.mxu1  ;;  %v14688_v46 = vld [vmem:[#allocation119_spill] sm:$0xff] }
 0x2f8   : > { %10293 = vmatmul.mubr.msk.bf16.gmra.mxu1 %vm14677_vm8, %v12974_v48  ;;  %v2710_v54 = vadd.f32 %v14678_v16, %v12727_v3  ;;  %vm14682_vm2 = vnez %v14681_v7  ;;  %10249 = vmatmul.mubr.bf16.gmra.mxu0 %v4917_v13  ;;  %v4331_v37 = vadd.f32 %v12894_v45, %v4025_v42  ;;  %4768 = vst [vmem:[#allocation2 + $0xb8] sm:$0xff] %v4736_v40  ;;  %v4739_v53 = vmax.f32 %v4707_v35, 0.0  ;;  %v14683_v3 = vld [vmem:[#allocation75_spill] sm:$0xff]  ;;  %v14684_v41 = vld [vmem:[#allocation110_spill] sm:$0xff] }
 0x2f9   : > { %10296 = vmatprep.mubr.msk.bf16.mxu1 %vm14682_vm2, %v12977_v4  ;;  %v4705_v10 = vadd.f32 %v12708_v39, %v4666_v44  ;;  %v4671_v11 = vadd.f32 %v10210_v43, %v4333_v30  ;;  %10252 = vmatprep.mubr.bf16.mxu0 %v4918_v6  ;;  %v3693_v1 = vadd.f32 %v14685_v12, %v14684_v41  ;;  %v4614_v50 = vpop.f32.mrf.mxu1  ;;  %v13008_v6 = vld [vmem:[%s14151_s5 + $0x178] sm:$0xff]   ;;  %v4801_v55 = vld [vmem:[#allocation2 + $0xaf] sm:$0xff] }
 0x2fa   : > { %v3048_v24 = vadd.f32 %v14683_v3, %v2710_v54  ;;  %v4334_v20 = vadd.f32 %v12914_v8, %v4028_v25  ;;  %v4026_v59 = vadd.f32 %v14686_v61, %v3688_v31  ;;  %10373 = vmatpush3.bf16.msra.mxu1 %v10808_v17  ;;  %4771 = vst [vmem:[#allocation2 + $0xd0] sm:$0xff] %v4739_v53  ;;  %v14689_v8 = vld [vmem:[#allocation117_spill] sm:$0xff]  ;;  %v14690_v17 = vld [vmem:[#allocation147_spill] sm:$0xff]  ;;  %v14692_v43 = vld [vmem:[#allocation120_spill] sm:$0xff] }
 0x2fb   : > { %v4737_v45 = vmax.f32 %v4705_v10, 0.0  ;;  %v4710_v56 = vadd.f32 %v12708_v39, %v4671_v11  ;;  %v4669_v9 = vadd.f32 %v4614_v50, %v4331_v37  ;;  %v4920_v15 = vpack.c.bf16 %v4739_v53, %v4738_v62  ;;  %10374 = vmatprep.subr.bf16.mxu1 %v10809_v57  ;;  %v10211_v13 = vpop.f32.mrf.mxu1  ;;  %v4798_v30 = vld [vmem:[#allocation2 + $0x97] sm:$0xff]  ;;  %v4799_v35 = vld [vmem:[#allocation2 + $0x9f] sm:$0xff]  ;;  %v4800_v44 = vld [vmem:[#allocation2 + $0xa7] sm:$0xff]  ;;  %v10167_v62 = vpop.f32.mrf.mxu0 }
 0x2fc   : > { %v3691_v33 = vadd.f32 %v14688_v46, %v14687_v0  ;;  %v3354_v2 = vadd.f32 %v14689_v8, %v3048_v24  ;;  %v4332_v42 = vadd.f32 %v12944_v60, %v4026_v59  ;;  %v4031_v22 = vadd.f32 %v14690_v17, %v3693_v1  ;;  %v14691_v25 = vld [vmem:[#allocation115_spill] sm:$0xff]  ;;  %v14693_v53 = vld [vmem:[#allocation149_spill] sm:$0xff] }
 0x2fd   : > { %4769 = vst [vmem:[#allocation2 + $0xc0] sm:$0xff] %v4737_v45  ;;  %v4742_v16 = vmax.f32 %v4710_v56, 0.0  ;;  %v4708_v54 = vadd.f32 %v12708_v39, %v4669_v9  ;;  %v4672_v19 = vadd.f32 %v10211_v13, %v4334_v20  ;;  %v13016_v31 = vpack.c.bf16 %v4799_v35, %v4798_v30  ;;  %v4617_v10 = vpop.f32.mrf.mxu1  ;;  %v14694_v20 = vld [vmem:[#allocation38_spill] sm:$0xff]  ;;  %v14695_v61 = vld [vmem:[#allocation121_spill] sm:$0xff] }
 0x2fe   : > { %v3694_v37 = vadd.f32 %v14692_v43, %v14691_v25  ;;  %v4029_v60 = vadd.f32 %v14693_v53, %v3691_v33  ;;  %v13021_v11 = vpack.c.bf16 %v4801_v55, %v4800_v44  ;;  %v13023_v3 = vpack.c.bf16 %v4737_v45, %v4736_v40  ;;  %10375 = vmatpush3.bf16.msra.mxu1 %v10809_v57  ;;  %v14696_v57 = vld [vmem:[#allocation39_spill] sm:$0xff]  ;;  %v4295_v45 = vpop.f32.mrf.mxu0 }
 0x2ff   : > { %v4337_v24 = vadd.f32 %v12968_v58, %v4031_v22  ;;  %4774 = vst [vmem:[#allocation2 + $0xe8] sm:$0xff] %v4742_v16  ;;  %v4740_v41 = vmax.f32 %v4708_v54, 0.0  ;;  %v4711_v12 = vadd.f32 %v12708_v39, %v4672_v19  ;;  %v4670_v1 = vadd.f32 %v4617_v10, %v4332_v42  ;;  %10456 = vmatprep.subr.bf16.mxu1 %v13008_v6  ;;  %v10214_v40 = vpop.f32.mrf.mxu1  ;;  %v4802_v13 = vld [vmem:[#allocation2 + $0xb7] sm:$0xff]  ;;  %v6037_v53 = vld [vmem:[#allocation2 + $0x28] sm:$0xff] }
 0x300   : > { %10297 = vmatmul.mubr.msk.bf16.gmra.mxu1 %vm14504_vm12, %v13016_v31  ;;  %v3692_v59 = vadd.f32 %v14695_v61, %v3354_v2  ;;  %v4032_v50 = vadd.f32 %v12692_v51, %v3694_v37  ;;  %vm14697_vm2 = vnez %v14696_v57  ;;  %10253 = vmatmul.mubr.bf16.gmra.mxu0 %v13023_v3  ;;  %v4335_v58 = vadd.f32 %v4292_v21, %v4029_v60  ;;  %v5360_v61 = vld [vmem:[#allocation2 + $0x11] sm:$0xff] }
 0x301   : > { %10300 = vmatprep.mubr.msk.bf16.mxu1 %vm14697_vm2, %v13021_v11  ;;  %4772 = vst [vmem:[#allocation2 + $0xd8] sm:$0xff] %v4740_v41  ;;  %v13037_v56 = vmax.f32 %v4711_v12, 0.0  ;;  %v4709_v9 = vadd.f32 %v12708_v39, %v4670_v1  ;;  %v4675_v0 = vadd.f32 %v10214_v40, %v4337_v24  ;;  %10256 = vmatprep.mubr.bf16.mxu0 %v4920_v15  ;;  %v4630_v51 = vpop.f32.mrf.mxu1  ;;  %v4805_v54 = vld [vmem:[#allocation2 + $0xcf] sm:$0xff] }
 0x302   : > { %v4030_v46 = vadd.f32 %v12700_v63, %v3692_v59  ;;  %v4338_v33 = vadd.f32 %v10167_v62, %v4032_v50  ;;  %v4673_v42 = vadd.f32 %v4630_v51, %v4335_v58  ;;  %v5359_v1 = vld [vmem:[#allocation2 + $0x9] sm:$0xff] }
 0x303   : > { %4775 = vst [vmem:[#allocation2 + $0xf0] sm:$0xff] %v13037_v56  ;;  %v4741_v8 = vmax.f32 %v4709_v9, 0.0  ;;  %v4714_v2 = vadd.f32 %v12708_v39, %v4675_v0  ;;  %v4922_v21 = vpack.c.bf16 %v13037_v56, %v4742_v16  ;;  %v10215_v22 = vpop.f32.mrf.mxu1 }
 0x304   : > { %v4336_v17 = vadd.f32 %v4295_v45, %v4030_v46  ;;  %v4803_v30 = vld [vmem:[#allocation2 + $0xbf] sm:$0xff]  ;;  %v4804_v35 = vld [vmem:[#allocation2 + $0xc7] sm:$0xff]  ;;  %v4712_v15 = vadd.f32 %v12708_v39, %v4673_v42  ;;  %v4676_v63 = vadd.f32 %v10215_v22, %v4338_v33  ;;  %v8692_v46 = vpack.c.bf16 %v5360_v61, %v5359_v1  ;;  %v14708_v61 = vld [vmem:[#allocation56_spill] sm:$0xff] }
 0x305   : > { %4773 = vst [vmem:[#allocation2 + $0xe0] sm:$0xff] %v4741_v8  ;;  %v4746_v44 = vmax.f32 %v4714_v2, 0.0  ;;  %v13045_v62 = vpack.c.bf16 %v4803_v30, %v4802_v13  ;;  %v4633_v19 = vpop.f32.mrf.mxu1  ;;  %v13047_v55 = vpack.c.bf16 %v4805_v54, %v4804_v35  ;;  %v13049_v25 = vpack.c.bf16 %v4741_v8, %v4740_v41  ;;  %v5361_v8 = vld [vmem:[#allocation2 + $0x19] sm:$0xff]  ;;  %v5362_v2 = vld [vmem:[#allocation2 + $0x21] sm:$0xff]  ;;  %v5363_v30 = vld [vmem:[#allocation2 + $0x29] sm:$0xff] }
 0x306   : > { %v4744_v16 = vmax.f32 %v4712_v15, 0.0  ;;  %v4715_v43 = vadd.f32 %v12708_v39, %v4676_v63  ;;  %v4674_v37 = vadd.f32 %v4633_v19, %v4336_v17  ;;  %v5364_v17 = vld [vmem:[#allocation2 + $0x31] sm:$0xff]  ;;  %v13079_v13 = vpack.c.bf16 %v5362_v2, %v5361_v8  ;;  %v14706_v19 = vld [vmem:[#allocation54_spill] sm:$0xff]  ;;  %v14707_v1 = vld [vmem:[#allocation55_spill] sm:$0xff] }
 0x307   : > { %4778 = vst [vmem:[#allocation2 + $0x108] sm:$0xff] %v4746_v44  ;;  %v10811_v35 = vld [vmem:[%s14151_s5 + $0x130] sm:$0xff]   ;;  %v13087_v15 = vpack.c.bf16 %v5364_v17, %v5363_v30  ;;  %v14713_v17 = vld [vmem:[#allocation58_spill] sm:$0xff] }
 0x308   : > { %10301 = vmatmul.mubr.msk.bf16.gmra.mxu1 %vm14483_vm5, %v13045_v62  ;;  %10257 = vmatmul.mubr.bf16.gmra.mxu0 %v13049_v25  ;;  %4776 = vst [vmem:[#allocation2 + $0xf8] sm:$0xff] %v4744_v16  ;;  %v4747_v10 = vmax.f32 %v4715_v43, 0.0  ;;  %v4713_v24 = vadd.f32 %v12708_v39, %v4674_v37  ;;  %v4806_v12 = vld [vmem:[#allocation2 + $0xd7] sm:$0xff]  ;;  %v5366_v37 = vld [vmem:[#allocation2 + $0x41] sm:$0xff]  ;;  %v5371_v8 = vld [vmem:[#allocation2 + $0x69] sm:$0xff] }
 0x309   : > { %10304 = vmatprep.mubr.msk.bf16.mxu1 %vm14506_vm10, %v13047_v55  ;;  %10260 = vmatprep.mubr.bf16.mxu0 %v4922_v21  ;;  %v14704_v63 = vld [vmem:[#allocation4_spill] sm:$0xff]  ;;  %v5365_v43 = vld [vmem:[#allocation2 + $0x39] sm:$0xff] }
 0x30a   : > { %4779 = vst [vmem:[#allocation2 + $0x110] sm:$0xff] %v4747_v10  ;;  %v4745_v41 = vmax.f32 %v4713_v24, 0.0  ;;  %v13060_v59 = vpack.c.bf16 %v4747_v10, %v4746_v44  ;;  %v4809_v58 = vld [vmem:[#allocation2 + $0xef] sm:$0xff]  ;;  %v5373_v30 = vld [vmem:[#allocation2 + $0x79] sm:$0xff] }
 0x30b   : > { %v5368_v10 = vld [vmem:[#allocation2 + $0x51] sm:$0xff]  ;;  %v5367_v24 = vld [vmem:[#allocation2 + $0x49] sm:$0xff] }
 0x30c   : > { %v4807_v50 = vld [vmem:[#allocation2 + $0xdf] sm:$0xff]  ;;  %v4808_v40 = vld [vmem:[#allocation2 + $0xe7] sm:$0xff]  ;;  %4777 = vst [vmem:[#allocation2 + $0x100] sm:$0xff] %v4745_v41  ;;  %v13066_v0 = vpack.c.bf16 %v4745_v41, %v4744_v16  ;;  %v10817_v2 = vld [vmem:[%s14151_s5 + $0x110] sm:$0xff]  }
 0x30d   : > { %v13062_v45 = vpack.c.bf16 %v4807_v50, %v4806_v12  ;;  %v13064_v9 = vpack.c.bf16 %v4809_v58, %v4808_v40  ;;  %v10812_v16 = vld [vmem:[%s14151_s5 + $0x128] sm:$0xff]   ;;  %v10813_v41 = vld [vmem:[%s14151_s5 + $0x120] sm:$0xff]   ;;  %v10816_v12 = vld [vmem:[%s14151_s5 + $0x170] sm:$0xff]  }
 0x30e   : > { %v5369_v50 = vld [vmem:[#allocation2 + $0x59] sm:$0xff]  ;;  %v5370_v40 = vld [vmem:[#allocation2 + $0x61] sm:$0xff]  ;;  %v5372_v58 = vld [vmem:[#allocation2 + $0x71] sm:$0xff] }
 0x30f   : > { %v4810_v42 = vld [vmem:[#allocation2 + $0xf7] sm:$0xff] }
 0x310   : > { %10305 = vmatmul.mubr.msk.bf16.gmra.mxu1 %vm14488_vm3, %v13062_v45  ;;  %10261 = vmatmul.mubr.bf16.gmra.mxu0 %v13066_v0 }
 0x311   : > { %10308 = vmatprep.mubr.msk.bf16.mxu1 %vm11664_vm14, %v13064_v9  ;;  %10328 = vmatprep.mubr.msk.bf16.mxu0 %vm14489_vm9, %v8692_v46  ;;  %v13131_v46 = vpack.c.bf16 %v5370_v40, %v5369_v50  ;;  %v5377_v50 = vld [vmem:[#allocation2 + $0x99] sm:$0xff]  ;;  %v5378_v40 = vld [vmem:[#allocation2 + $0xa1] sm:$0xff]  ;;  %v5728_v60 = vld [vmem:[#allocation2 + $0x10f] sm:$0xff] }
 0x313   : > { %v4811_v21 = vld [vmem:[#allocation2 + $0xff] sm:$0xff] }
 0x314   : > { %v13077_v22 = vpack.c.bf16 %v4811_v21, %v4810_v42  ;;  %v10819_v42 = vld [vmem:[%s14151_s5 + $0x160] sm:$0xff]   ;;  %v14711_v21 = vld [vmem:[#allocation57_spill] sm:$0xff] }
 0x318   : > { %10309 = vmatmul.mubr.msk.bf16.gmra.mxu1 %vm11687_vm13, %v13077_v22  ;;  %10329 = vmatmul.mubr.msk.bf16.vlgmr.msra.gmra.mxu0 %vm11695_vm1, %v13079_v13 }
 0x319   : > { %10376 = vmatprep.mubr.msk.bf16.mxu1 %vm14526_vm6, %v12816_v49  ;;  %10332 = vmatprep.mubr.msk.bf16.mxu0 %vm14490_vm15, %v13087_v15  ;;  %v13102_v49 = vpack.c.bf16 %v5366_v37, %v5365_v43  ;;  %vm14709_vm6 = vnez %v14708_v61  ;;  %v5375_v37 = vld [vmem:[#allocation2 + $0x89] sm:$0xff] }
 0x31a   : > { %10409 = vmatpush3.bf16.msra.mxu0 %v12954_v29  ;;  %v13110_v29 = vpack.c.bf16 %v5368_v10, %v5367_v24  ;;  %v10823_v10 = vld [vmem:[%s14151_s5 + $0x100] sm:$0xff]  }
 0x31b   : > { %10410 = vmatprep.subr.bf16.mxu0 %v10811_v35 }
 0x31e   : > { %10411 = vmatpush3.bf16.msra.mxu0 %v10811_v35  ;;  %v5374_v35 = vld [vmem:[#allocation2 + $0x81] sm:$0xff] }
 0x31f   : > { %10412 = vmatprep.subr.bf16.mxu0 %v10812_v16  ;;  %v13159_v43 = vpack.c.bf16 %v5374_v35, %v5373_v30  ;;  %v14724_v30 = vld [vmem:[#allocation62_spill] sm:$0xff] }
 0x320   : > { %10377 = vmatmul.mubr.msk.bf16.vlgmr.msra.gmra.mxu1 %vm14625_vm11, %v12821_v28  ;;  %10333 = vmatmul.mubr.msk.bf16.gmra.mxu0 %vm11730_vm4, %v13102_v49  ;;  %v10814_v28 = vld [vmem:[%s14151_s5 + $0x118] sm:$0xff]   ;;  %vm14712_vm11 = vnez %v14711_v21  ;;  %v5382_v35 = vld [vmem:[#allocation2 + $0xc1] sm:$0xff] }
 0x321   : > { %10380 = vmatprep.mubr.msk.bf16.mxu1 %vm14630_vm0, %v12869_v23  ;;  %10336 = vmatprep.mubr.msk.bf16.mxu0 %vm14709_vm6, %v13110_v29  ;;  %v10818_v23 = vld [vmem:[%s14151_s5 + $0x168] sm:$0xff]   ;;  %vm14710_vm0 = vnez %v14649_v14  ;;  %vm14714_vm6 = vnez %v14713_v17 }
 0x322   : > { %10413 = vmatpush3.bf16.msra.mxu0 %v10812_v16  ;;  %10457 = vmatpush3.bf16.msra.mxu1 %v13008_v6  ;;  %v13139_v6 = vpack.c.bf16 %v5372_v58, %v5371_v8  ;;  %v5376_v16 = vld [vmem:[#allocation2 + $0x91] sm:$0xff]  ;;  %v13189_v58 = vpack.c.bf16 %v5378_v40, %v5377_v50  ;;  %v5379_v8 = vld [vmem:[#allocation2 + $0xa9] sm:$0xff]  ;;  %v5385_v40 = vld [vmem:[#allocation2 + $0xd9] sm:$0xff] }
 0x323   : > { %10414 = vmatprep.subr.bf16.mxu0 %v10813_v41  ;;  %10458 = vmatprep.subr.bf16.mxu1 %v10816_v12  ;;  %v13167_v24 = vpack.c.bf16 %v5376_v16, %v5375_v37  ;;  %v5384_v16 = vld [vmem:[#allocation2 + $0xd1] sm:$0xff] }
 0x324   : > { %v14728_v50 = vld [vmem:[#allocation64_spill] sm:$0xff] }
 0x326   : > { %10415 = vmatpush3.bf16.msra.mxu0 %v10813_v41  ;;  %10459 = vmatpush3.bf16.msra.mxu1 %v10816_v12  ;;  %v10822_v41 = vld [vmem:[%s14151_s5 + $0x150] sm:$0xff]   ;;  %v14717_v12 = vld [vmem:[#allocation59_spill] sm:$0xff] }
 0x327   : > { %10416 = vmatprep.subr.bf16.mxu0 %v10814_v28  ;;  %10460 = vmatprep.subr.bf16.mxu1 %v10818_v23 }
 0x328   : > { %10381 = vmatmul.mubr.msk.bf16.gmra.mxu1 %vm14645_vm7, %v12872_v5  ;;  %10337 = vmatmul.mubr.msk.bf16.gmra.mxu0 %vm14712_vm11, %v13131_v46  ;;  %v10820_v5 = vld [vmem:[%s14151_s5 + $0x108] sm:$0xff]   ;;  %vm14716_vm7 = vnez %v14665_v52 }
 0x329   : > { %10384 = vmatprep.mubr.msk.bf16.mxu1 %vm14710_vm0, %v12919_v34  ;;  %10340 = vmatprep.mubr.msk.bf16.mxu0 %vm14714_vm6, %v13139_v6  ;;  %v10821_v34 = vld [vmem:[%s14151_s5 + $0x158] sm:$0xff]   ;;  %vm14715_vm0 = vnez %v14660_v26  ;;  %vm14718_vm6 = vnez %v14717_v12 }
 0x32a   : > { %10417 = vmatpush3.bf16.msra.mxu0 %v10814_v28  ;;  %10461 = vmatpush3.bf16.msra.mxu1 %v10818_v23  ;;  %v14719_v28 = vld [vmem:[#allocation60_spill] sm:$0xff] }
 0x32b   : > { %10418 = vmatprep.subr.bf16.mxu0 %v10817_v2  ;;  %10462 = vmatprep.subr.bf16.mxu1 %v10819_v42  ;;  %vm14720_vm11 = vnez %v14719_v28  ;;  %v5380_v23 = vld [vmem:[#allocation2 + $0xb1] sm:$0xff] }
 0x32e   : > { %10419 = vmatpush3.bf16.msra.mxu0 %v10817_v2  ;;  %10463 = vmatpush3.bf16.msra.mxu1 %v10819_v42  ;;  %v13195_v2 = vpack.c.bf16 %v5380_v23, %v5379_v8  ;;  %v10825_v42 = vld [vmem:[%s14151_s5 + $0x140] sm:$0xff]   ;;  %v5388_v23 = vld [vmem:[#allocation2 + $0xf1] sm:$0xff]  ;;  %v5387_v8 = vld [vmem:[#allocation2 + $0xe9] sm:$0xff] }
 0x32f   : > { %10420 = vmatprep.subr.bf16.mxu0 %v10820_v5  ;;  %10464 = vmatprep.subr.bf16.mxu1 %v10821_v34 }
 0x330   : > { %10385 = vmatmul.mubr.msk.bf16.gmra.mxu1 %vm14715_vm0, %v12922_v47  ;;  %10341 = vmatmul.mubr.msk.bf16.gmra.mxu0 %vm14718_vm6, %v13159_v43  ;;  %v13184_v47 = vld [vmem:[%s14151_s5 + $0x1b8] sm:$0xff]  }
 0x331   : > { %10388 = vmatprep.mubr.msk.bf16.mxu1 %vm14716_vm7, %v12974_v48  ;;  %10344 = vmatprep.mubr.msk.bf16.mxu0 %vm14720_vm11, %v13167_v24  ;;  %v10824_v48 = vld [vmem:[%s14151_s5 + $0x148] sm:$0xff]   ;;  %vm14721_vm7 = vnez %v14681_v7  ;;  %vm14725_vm11 = vnez %v14724_v30 }
 0x332   : > { %10421 = vmatpush3.bf16.msra.mxu0 %v10820_v5  ;;  %10465 = vmatpush3.bf16.msra.mxu1 %v10821_v34  ;;  %v14722_v5 = vld [vmem:[#allocation61_spill] sm:$0xff] }
 0x333   : > { %10422 = vmatprep.subr.bf16.mxu0 %v10823_v10  ;;  %10466 = vmatprep.subr.bf16.mxu1 %v10822_v41  ;;  %vm14723_vm0 = vnez %v14722_v5  ;;  %v13212_v34 = vld [vmem:[%s14151_s5 + $0x1f8] sm:$0xff]  }
 0x336   : > { %10423 = vmatpush3.bf16.msra.mxu0 %v10823_v10  ;;  %10467 = vmatpush3.bf16.msra.mxu1 %v10822_v41  ;;  %v14726_v41 = vld [vmem:[#allocation63_spill] sm:$0xff] }
 0x337   : > { %10504 = vmatprep.subr.bf16.mxu0 %v13184_v47  ;;  %10468 = vmatprep.subr.bf16.mxu1 %v10824_v48 }
 0x338   : > { %10389 = vmatmul.mubr.msk.bf16.gmra.mxu1 %vm14677_vm8, %v12977_v4  ;;  %10345 = vmatmul.mubr.msk.bf16.gmra.mxu0 %vm14723_vm0, %v13189_v58  ;;  %v5381_v4 = vld [vmem:[#allocation2 + $0xb9] sm:$0xff]  ;;  %vm14729_vm8 = vnez %v14728_v50 }
 0x339   : > { %10392 = vmatprep.mubr.msk.bf16.mxu1 %vm14721_vm7, %v13016_v31  ;;  %10348 = vmatprep.mubr.msk.bf16.mxu0 %vm14725_vm11, %v13195_v2  ;;  %v13214_v37 = vpack.c.bf16 %v5382_v35, %v5381_v4  ;;  %v5383_v31 = vld [vmem:[#allocation2 + $0xc9] sm:$0xff]  ;;  %vm14727_vm7 = vnez %v14726_v41  ;;  %v14732_v4 = vld [vmem:[#allocation66_spill] sm:$0xff] }
 0x33a   : > { %10469 = vmatpush3.bf16.msra.mxu1 %v10824_v48  ;;  %v13219_v10 = vpack.c.bf16 %v5384_v16, %v5383_v31  ;;  %v5386_v48 = vld [vmem:[#allocation2 + $0xe1] sm:$0xff]  ;;  %v5389_v35 = vld [vmem:[#allocation2 + $0xf9] sm:$0xff] }
 0x33b   : > { %10470 = vmatprep.subr.bf16.mxu1 %v10825_v42  ;;  %v5390_v16 = vld [vmem:[#allocation2 + $0x101] sm:$0xff] }
 0x33c   : > { %v6036_v31 = vld [vmem:[#allocation2 + $0x20] sm:$0xff] }
 0x33e   : > { %10471 = vmatpush3.bf16.msra.mxu1 %v10825_v42  ;;  %v13236_v42 = vpack.c.bf16 %v5388_v23, %v5387_v8  ;;  %v5727_v23 = vld [vmem:[#allocation2 + $0x107] sm:$0xff]  ;;  %v6038_v8 = vld [vmem:[#allocation2 + $0x30] sm:$0xff] }
 0x33f   : > { %10552 = vmatprep.subr.bf16.mxu1 %v13212_v34  ;;  %v13260_v57 = vpack.c.bf16 %v6038_v8, %v6037_v53  ;;  %v10828_v53 = vld [vmem:[%s14151_s5 + $0x1a8] sm:$0xff]   ;;  %v6043_v8 = vld [vmem:[#allocation2 + $0x58] sm:$0xff] }
 0x340   : > { %10393 = vmatmul.mubr.msk.bf16.gmra.mxu1 %vm14504_vm12, %v13021_v11  ;;  %10349 = vmatmul.mubr.msk.bf16.gmra.mxu0 %vm14727_vm7, %v13214_v37  ;;  %v13231_v11 = vpack.c.bf16 %v5386_v48, %v5385_v40  ;;  %vm14733_vm12 = vnez %v14732_v4  ;;  %v13247_v40 = vpack.c.bf16 %v5390_v16, %v5389_v35  ;;  %v6040_v35 = vld [vmem:[#allocation2 + $0x40] sm:$0xff]  ;;  %v13258_v16 = vpack.c.bf16 %v5728_v60, %v5727_v23  ;;  %v6042_v60 = vld [vmem:[#allocation2 + $0x50] sm:$0xff] }
 0x341   : > { %10396 = vmatprep.mubr.msk.bf16.mxu1 %vm14697_vm2, %v13045_v62  ;;  %10352 = vmatprep.mubr.msk.bf16.mxu0 %vm14729_vm8, %v13219_v10  ;;  %v14730_v62 = vld [vmem:[#allocation65_spill] sm:$0xff] }
 0x342   : > { %vm14731_vm2 = vnez %v14730_v62 }
 0x348   : > { %10397 = vmatmul.mubr.msk.bf16.gmra.mxu1 %vm14483_vm5, %v13047_v55  ;;  %10353 = vmatmul.mubr.msk.bf16.gmra.mxu0 %vm14731_vm2, %v13231_v11  ;;  %v6035_v55 = vld [vmem:[#allocation2 + $0x18] sm:$0xff] }
 0x349   : > { %10400 = vmatprep.mubr.msk.bf16.mxu1 %vm14506_vm10, %v13062_v45  ;;  %10356 = vmatprep.mubr.msk.bf16.mxu0 %vm14733_vm12, %v13236_v42  ;;  %v6067_v48 = vpack.c.bf16 %v6036_v31, %v6035_v55  ;;  %v14734_v45 = vld [vmem:[#allocation67_spill] sm:$0xff]  ;;  %v10827_v31 = vld [vmem:[%s14151_s5 + $0x1b0] sm:$0xff]   ;;  %v6044_v55 = vld [vmem:[#allocation2 + $0x60] sm:$0xff] }
 0x34a   : > { %vm14735_vm10 = vnez %v14734_v45 }
 0x350   : > { %10401 = vmatmul.mubr.msk.bf16.gmra.mxu1 %vm14488_vm3, %v13064_v9  ;;  %10357 = vmatmul.mubr.msk.bf16.gmra.mxu0 %vm14735_vm10, %v13247_v40  ;;  %v6039_v9 = vld [vmem:[#allocation2 + $0x38] sm:$0xff] }
 0x351   : > { %10404 = vmatprep.mubr.msk.bf16.mxu1 %vm11664_vm14, %v13077_v22  ;;  %10424 = vmatprep.mubr.bf16.mxu0 %v6067_v48  ;;  %v13268_v22 = vpack.c.bf16 %v6040_v35, %v6039_v9  ;;  %v6041_v48 = vld [vmem:[#allocation2 + $0x48] sm:$0xff]  ;;  %v10832_v35 = vld [vmem:[%s14151_s5 + $0x1f0] sm:$0xff]  }
 0x352   : > { %v13279_v23 = vpack.c.bf16 %v6042_v60, %v6041_v48  ;;  %v6046_v9 = vld [vmem:[#allocation2 + $0x70] sm:$0xff]  ;;  %v6048_v60 = vld [vmem:[#allocation2 + $0x80] sm:$0xff]  ;;  %v6047_v48 = vld [vmem:[#allocation2 + $0x78] sm:$0xff] }
 0x358   : > { %10405 = vmatmul.mubr.msk.bf16.gmra.mxu1 %vm11687_vm13, %v13258_v16  ;;  %10425 = vmatmul.mubr.bf16.vlgmr.msra.gmra.mxu0 %v13260_v57 }
 0x359   : > { %10472 = vmatprep.mubr.msk.bf16.mxu1 %vm14489_vm9, %v13079_v13  ;;  %10428 = vmatprep.mubr.bf16.mxu0 %v13268_v22  ;;  %v10829_v13 = vld [vmem:[%s14151_s5 + $0x1a0] sm:$0xff]  }
 0x35a   : > { %10505 = vmatpush3.bf16.msra.mxu0 %v13184_v47  ;;  %v13287_v47 = vpack.c.bf16 %v6044_v55, %v6043_v8  ;;  %v10835_v8 = vld [vmem:[%s14151_s5 + $0x1e0] sm:$0xff]  }
 0x35b   : > { %10506 = vmatprep.subr.bf16.mxu0 %v10827_v31 }
 0x35e   : > { %10507 = vmatpush3.bf16.msra.mxu0 %v10827_v31  ;;  %v10834_v31 = vld [vmem:[%s14151_s5 + $0x1e8] sm:$0xff]  }
 0x35f   : > { %10508 = vmatprep.subr.bf16.mxu0 %v10828_v53 }
 0x360   : > { %10473 = vmatmul.mubr.msk.bf16.vlgmr.msra.gmra.mxu1 %vm11695_vm1, %v13087_v15  ;;  %10429 = vmatmul.mubr.bf16.gmra.mxu0 %v13279_v23  ;;  %v10830_v15 = vld [vmem:[%s14151_s5 + $0x198] sm:$0xff]  }
 0x361   : > { %10476 = vmatprep.mubr.msk.bf16.mxu1 %vm14490_vm15, %v13102_v49  ;;  %10432 = vmatprep.mubr.bf16.mxu0 %v13287_v47  ;;  %v6045_v49 = vld [vmem:[#allocation2 + $0x68] sm:$0xff]  ;;  %vm14736_vm15 = vnez %v14708_v61 }
 0x362   : > { %10509 = vmatpush3.bf16.msra.mxu0 %v10828_v53  ;;  %10553 = vmatpush3.bf16.msra.mxu1 %v13212_v34  ;;  %v13304_v55 = vpack.c.bf16 %v6046_v9, %v6045_v49  ;;  %v10833_v53 = vld [vmem:[%s14151_s5 + $0x190] sm:$0xff]   ;;  %v13312_v34 = vpack.c.bf16 %v6048_v60, %v6047_v48  ;;  %v13328_v9 = vld [vmem:[#allocation2 + $0x98] sm:$0xff]  ;;  %v10840_v48 = vld [vmem:[%s14151_s5 + $0x1c8] sm:$0xff]  }
 0x363   : > { %10510 = vmatprep.subr.bf16.mxu0 %v10829_v13  ;;  %10554 = vmatprep.subr.bf16.mxu1 %v10832_v35  ;;  %v10838_v49 = vld [vmem:[%s14151_s5 + $0x1d0] sm:$0xff]  }
 0x366   : > { %10511 = vmatpush3.bf16.msra.mxu0 %v10829_v13  ;;  %10555 = vmatpush3.bf16.msra.mxu1 %v10832_v35  ;;  %v6050_v13 = vld [vmem:[#allocation2 + $0x90] sm:$0xff]  ;;  %v10837_v35 = vld [vmem:[%s14151_s5 + $0x1d8] sm:$0xff]  }
 0x367   : > { %10512 = vmatprep.subr.bf16.mxu0 %v10830_v15  ;;  %10556 = vmatprep.subr.bf16.mxu1 %v10834_v31 }
 0x368   : > { %10477 = vmatmul.mubr.msk.bf16.gmra.mxu1 %vm11730_vm4, %v13110_v29  ;;  %10433 = vmatmul.mubr.bf16.gmra.mxu0 %v13304_v55  ;;  %v10836_v29 = vld [vmem:[%s14151_s5 + $0x188] sm:$0xff]   ;;  %vm14738_vm4 = vnez %v14713_v17 }
 0x369   : > { %10480 = vmatprep.mubr.msk.bf16.mxu1 %vm14736_vm15, %v13131_v46  ;;  %10436 = vmatprep.mubr.bf16.mxu0 %v13312_v34  ;;  %v6049_v46 = vld [vmem:[#allocation2 + $0x88] sm:$0xff]  ;;  %vm14737_vm15 = vnez %v14711_v21 }
 0x36a   : > { %10513 = vmatpush3.bf16.msra.mxu0 %v10830_v15  ;;  %10557 = vmatpush3.bf16.msra.mxu1 %v10834_v31  ;;  %v13330_v60 = vpack.c.bf16 %v6050_v13, %v6049_v46  ;;  %v10839_v15 = vld [vmem:[%s14151_s5 + $0x180] sm:$0xff]   ;;  %v6075_v31 = vpack.c.bf16 %v12956_v38, %v13328_v9  ;;  %v6054_v38 = vld [vmem:[#allocation2 + $0xb0] sm:$0xff]  ;;  %v6057_v13 = vld [vmem:[#allocation2 + $0xc8] sm:$0xff] }
 0x36b   : > { %10514 = vmatprep.subr.bf16.mxu0 %v10833_v53  ;;  %10558 = vmatprep.subr.bf16.mxu1 %v10835_v8  ;;  %v6681_v46 = vld [vmem:[#allocation2 + $0x37] sm:$0xff] }
 0x36e   : > { %10515 = vmatpush3.bf16.msra.mxu0 %v10833_v53  ;;  %10559 = vmatpush3.bf16.msra.mxu1 %v10835_v8  ;;  %v6053_v53 = vld [vmem:[#allocation2 + $0xa8] sm:$0xff] }
 0x36f   : > { %10516 = vmatprep.subr.bf16.mxu0 %v10836_v29  ;;  %10560 = vmatprep.subr.bf16.mxu1 %v10837_v35  ;;  %v13353_v8 = vpack.c.bf16 %v6054_v38, %v6053_v53  ;;  %v6687_v53 = vld [vmem:[#allocation2 + $0x67] sm:$0xff] }
 0x370   : > { %10481 = vmatmul.mubr.msk.bf16.gmra.mxu1 %vm14737_vm15, %v13139_v6  ;;  %10437 = vmatmul.mubr.bf16.gmra.mxu0 %v13330_v60  ;;  %v10842_v6 = vld [vmem:[%s14151_s5 + $0x238] sm:$0xff]  }
 0x371   : > { %10484 = vmatprep.mubr.msk.bf16.mxu1 %vm14738_vm4, %v13159_v43  ;;  %10440 = vmatprep.mubr.bf16.mxu0 %v6075_v31  ;;  %v10841_v43 = vld [vmem:[%s14151_s5 + $0x1c0] sm:$0xff]   ;;  %vm14739_vm4 = vnez %v14719_v28  ;;  %v6684_v31 = vld [vmem:[#allocation2 + $0x4f] sm:$0xff] }
 0x372   : > { %10517 = vmatpush3.bf16.msra.mxu0 %v10836_v29  ;;  %10561 = vmatpush3.bf16.msra.mxu1 %v10837_v35  ;;  %v6058_v29 = vld [vmem:[#allocation2 + $0xd0] sm:$0xff] }
 0x373   : > { %10518 = vmatprep.subr.bf16.mxu0 %v10839_v15  ;;  %10562 = vmatprep.subr.bf16.mxu1 %v10838_v49  ;;  %v13366_v35 = vpack.c.bf16 %v6058_v29, %v6057_v13  ;;  %v6685_v29 = vld [vmem:[#allocation2 + $0x57] sm:$0xff]  ;;  %v6688_v13 = vld [vmem:[#allocation2 + $0x6f] sm:$0xff] }
 0x376   : > { %10519 = vmatpush3.bf16.msra.mxu0 %v10839_v15  ;;  %10563 = vmatpush3.bf16.msra.mxu1 %v10838_v49  ;;  %v10844_v49 = vld [vmem:[%s14151_s5 + $0x228] sm:$0xff]  }
 0x377   : > { %10600 = vmatprep.subr.bf16.mxu0 %v10842_v6  ;;  %10564 = vmatprep.subr.bf16.mxu1 %v10840_v48 }
 0x378   : > { %10485 = vmatmul.mubr.msk.bf16.gmra.mxu1 %vm14718_vm6, %v13167_v24  ;;  %10441 = vmatmul.mubr.bf16.gmra.mxu0 %v13353_v8 }
 0x379   : > { %10488 = vmatprep.mubr.msk.bf16.mxu1 %vm14739_vm4, %v13189_v58  ;;  %10444 = vmatprep.mubr.bf16.mxu0 %v13023_v3  ;;  %v13376_v3 = vld [vmem:[#allocation2 + $0xe8] sm:$0xff] }
 0x37a   : > { %10565 = vmatpush3.bf16.msra.mxu1 %v10840_v48  ;;  %v6080_v24 = vpack.c.bf16 %v13037_v56, %v13376_v3  ;;  %v6679_v58 = vld [vmem:[#allocation2 + $0x27] sm:$0xff]  ;;  %v6686_v48 = vld [vmem:[#allocation2 + $0x5f] sm:$0xff] }
 0x37b   : > { %10566 = vmatprep.subr.bf16.mxu1 %v10841_v43  ;;  %v6371_v56 = vld [vmem:[#allocation2 + $0x109] sm:$0xff] }
 0x37e   : > { %10567 = vmatpush3.bf16.msra.mxu1 %v10841_v43 }
 0x380   : > { %10489 = vmatmul.mubr.msk.bf16.gmra.mxu1 %vm14723_vm0, %v13195_v2  ;;  %10445 = vmatmul.mubr.bf16.gmra.mxu0 %v13366_v35  ;;  %v6680_v2 = vld [vmem:[#allocation2 + $0x2f] sm:$0xff] }
 0x381   : > { %10492 = vmatprep.mubr.msk.bf16.mxu1 %vm14725_vm11, %v13214_v37  ;;  %10448 = vmatprep.mubr.bf16.mxu0 %v13049_v25  ;;  %v8980_v25 = vpack.c.bf16 %v6680_v2, %v6679_v58  ;;  %v6372_v37 = vld [vmem:[#allocation2 + $0x111] sm:$0xff] }
 0x388   : > { %10493 = vmatmul.mubr.msk.bf16.gmra.mxu1 %vm14727_vm7, %v13219_v10  ;;  %10449 = vmatmul.mubr.bf16.gmra.mxu0 %v6080_v24  ;;  %vm14740_vm7 = vnez %v14704_v63  ;;  %v6682_v10 = vld [vmem:[#allocation2 + $0x3f] sm:$0xff] }
 0x389   : > { %10496 = vmatprep.mubr.msk.bf16.mxu1 %vm14729_vm8, %v13231_v11  ;;  %10452 = vmatprep.mubr.bf16.mxu0 %v13066_v0  ;;  %v6683_v0 = vld [vmem:[#allocation2 + $0x47] sm:$0xff]  ;;  %v13396_v11 = vpack.c.bf16 %v6372_v37, %v6371_v56  ;;  %v8984_v15 = vpack.c.bf16 %v6682_v10, %v6681_v46  ;;  %v6690_v10 = vld [vmem:[#allocation2 + $0x7f] sm:$0xff] }
 0x38a   : > { %v8988_v63 = vpack.c.bf16 %v6684_v31, %v6683_v0 }
 0x390   : > { %10497 = vmatmul.mubr.msk.bf16.gmra.mxu1 %vm14731_vm2, %v13236_v42  ;;  %10453 = vmatmul.mubr.bf16.gmra.mxu0 %v13060_v59  ;;  %v10843_v42 = vld [vmem:[%s14151_s5 + $0x230] sm:$0xff]  }
 0x391   : > { %10500 = vmatprep.mubr.msk.bf16.mxu1 %vm14733_vm12, %v13247_v40  ;;  %10520 = vmatprep.mubr.msk.bf16.mxu0 %vm14740_vm7, %v8980_v25  ;;  %vm14741_vm7 = vnez %v14624_v32  ;;  %vm14742_vm12 = vnez %v14629_v36  ;;  %v10845_v32 = vld [vmem:[%s14151_s5 + $0x220] sm:$0xff]  }
 0x396   : > { %v10234_v59 = vpop.f32.mrf.mxu0 }
 0x398   : > { %10501 = vmatmul.mubr.msk.bf16.gmra.mxu1 %vm14735_vm10, %v13396_v11  ;;  %10521 = vmatmul.mubr.msk.bf16.vlgmr.msra.gmra.mxu0 %vm14741_vm7, %v8984_v15  ;;  %v5023_v40 = vpop.f32.mrf.mxu0  ;;  %vm14744_vm7 = vnez %v14649_v14  ;;  %v6689_v15 = vld [vmem:[#allocation2 + $0x77] sm:$0xff] }
 0x399   : > { %10568 = vmatprep.mubr.bf16.mxu1 %v13260_v57  ;;  %10524 = vmatprep.mubr.msk.bf16.mxu0 %vm14742_vm12, %v8988_v63  ;;  %v8992_v57 = vpack.c.bf16 %v6686_v48, %v6685_v29  ;;  %vm14743_vm12 = vnez %v14644_v18  ;;  %v6691_v18 = vld [vmem:[#allocation2 + $0x87] sm:$0xff]  ;;  %v10847_v63 = vld [vmem:[%s14151_s5 + $0x210] sm:$0xff]  }
 0x39a   : > { %10601 = vmatpush3.bf16.msra.mxu0 %v10842_v6  ;;  %v10235_v38 = vpop.f32.mrf.mxu0  ;;  %v8996_v6 = vpack.c.bf16 %v6688_v13, %v6687_v53  ;;  %v6694_v13 = vld [vmem:[#allocation2 + $0x9f] sm:$0xff] }
 0x39b   : > { %10602 = vmatprep.subr.bf16.mxu0 %v10843_v42 }
 0x39c   : > { %v5026_v43 = vpop.f32.mrf.mxu0 }
 0x39e   : > { %10603 = vmatpush3.bf16.msra.mxu0 %v10843_v42  ;;  %v10282_v36 = vpop.f32.mrf.mxu1  ;;  %v9000_v42 = vpack.c.bf16 %v6690_v10, %v6689_v15 }
 0x39f   : > { %10604 = vmatprep.subr.bf16.mxu0 %v10844_v49  ;;  %v13416_v24 = vadd.f32 %v10282_v36, %v10234_v59  ;;  %v10238_v58 = vpop.f32.mrf.mxu0  ;;  %v6692_v59 = vld [vmem:[#allocation2 + $0x8f] sm:$0xff] }
 0x3a0   : > { %10569 = vmatmul.mubr.bf16.vlgmr.msra.gmra.mxu1 %v13268_v22  ;;  %10525 = vmatmul.mubr.msk.bf16.gmra.mxu0 %vm14743_vm12, %v8992_v57  ;;  %v5232_v2 = vpop.f32.mrf.mxu1  ;;  %v10846_v22 = vld [vmem:[%s14151_s5 + $0x218] sm:$0xff]   ;;  %vm14745_vm12 = vnez %v14660_v26  ;;  %v6695_v26 = vld [vmem:[#allocation2 + $0xa7] sm:$0xff] }
 0x3a1   : > { %10572 = vmatprep.mubr.bf16.mxu1 %v13279_v23  ;;  %10528 = vmatprep.mubr.msk.bf16.mxu0 %vm14744_vm7, %v8996_v6  ;;  %v13423_v25 = vadd.f32 %v5232_v2, %v5023_v40  ;;  %v5039_v56 = vpop.f32.mrf.mxu0  ;;  %vm14746_vm7 = vnez %v14665_v52  ;;  %v6693_v6 = vld [vmem:[#allocation2 + $0x97] sm:$0xff] }
 0x3a2   : > { %10605 = vmatpush3.bf16.msra.mxu0 %v10844_v49  ;;  %v10283_v37 = vpop.f32.mrf.mxu1  ;;  %v9004_v49 = vpack.c.bf16 %v6692_v59, %v6691_v18  ;;  %v9008_v2 = vpack.c.bf16 %v6694_v13, %v6693_v6  ;;  %v6698_v59 = vld [vmem:[#allocation2 + $0xbf] sm:$0xff] }
 0x3a3   : > { %10606 = vmatprep.subr.bf16.mxu0 %v10845_v32  ;;  %v13428_v23 = vadd.f32 %v10283_v37, %v10235_v38  ;;  %v10239_v0 = vpop.f32.mrf.mxu0 }
 0x3a4   : > { %v5235_v46 = vpop.f32.mrf.mxu1 }
 0x3a5   : > { %v13430_v14 = vadd.f32 %v5235_v46, %v5026_v43  ;;  %v5042_v31 = vpop.f32.mrf.mxu0 }
 0x3a6   : > { %10607 = vmatpush3.bf16.msra.mxu0 %v10845_v32  ;;  %v10286_v40 = vpop.f32.mrf.mxu1 }
 0x3a7   : > { %10608 = vmatprep.subr.bf16.mxu0 %v10846_v22  ;;  %v13436_v38 = vadd.f32 %v10286_v40, %v10238_v58  ;;  %v10242_v48 = vpop.f32.mrf.mxu0 }
 0x3a8   : > { %10573 = vmatmul.mubr.bf16.gmra.mxu1 %v13287_v47  ;;  %10529 = vmatmul.mubr.msk.bf16.gmra.mxu0 %vm14745_vm12, %v9000_v42  ;;  %v5248_v53 = vpop.f32.mrf.mxu1  ;;  %v10848_v47 = vld [vmem:[%s14151_s5 + $0x208] sm:$0xff]   ;;  %vm14747_vm12 = vnez %v14676_v27 }
 0x3a9   : > { %10576 = vmatprep.mubr.bf16.mxu1 %v13304_v55  ;;  %10532 = vmatprep.mubr.msk.bf16.mxu0 %vm14746_vm7, %v9004_v49  ;;  %v13443_v43 = vadd.f32 %v5248_v53, %v5039_v56  ;;  %v5055_v29 = vpop.f32.mrf.mxu0  ;;  %v6696_v56 = vld [vmem:[#allocation2 + $0xaf] sm:$0xff]  ;;  %vm14748_vm7 = vnez %v14681_v7 }
 0x3aa   : > { %10609 = vmatpush3.bf16.msra.mxu0 %v10846_v22  ;;  %v10287_v57 = vpop.f32.mrf.mxu1  ;;  %v10849_v22 = vld [vmem:[%s14151_s5 + $0x200] sm:$0xff]   ;;  %v9012_v10 = vpack.c.bf16 %v6696_v56, %v6695_v26 }
 0x3ab   : > { %10610 = vmatprep.subr.bf16.mxu0 %v10847_v63  ;;  %v13448_v55 = vadd.f32 %v10287_v57, %v10239_v0  ;;  %v10243_v32 = vpop.f32.mrf.mxu0 }
 0x3ac   : > { %v5251_v36 = vpop.f32.mrf.mxu1 }
 0x3ad   : > { %v13450_v52 = vadd.f32 %v5251_v36, %v5042_v31  ;;  %v5058_v58 = vpop.f32.mrf.mxu0  ;;  %v7032_v31 = vld [vmem:[#allocation2 + $0xa0] sm:$0xff] }
 0x3ae   : > { %10611 = vmatpush3.bf16.msra.mxu0 %v10847_v63  ;;  %v7056_v27 = vpack.c.bf16 %v7032_v31, %v13328_v9  ;;  %v14750_v9 = vld [vmem:[#allocation39_spill] sm:$0xff] }
 0x3af   : > { %10612 = vmatprep.subr.bf16.mxu0 %v10848_v47  ;;  %v10290_v37 = vpop.f32.mrf.mxu1 }
 0x3b0   : > { %10577 = vmatmul.mubr.bf16.gmra.mxu1 %v13312_v34  ;;  %v13456_v0 = vadd.f32 %v10290_v37, %v10242_v48  ;;  %v10246_v18 = vpop.f32.mrf.mxu0  ;;  %10533 = vmatmul.mubr.msk.bf16.gmra.mxu0 %vm14747_vm12, %v9008_v2  ;;  %v6697_v48 = vld [vmem:[#allocation2 + $0xb7] sm:$0xff]  ;;  %vm14749_vm12 = vnez %v14694_v20 }
 0x3b1   : > { %10580 = vmatprep.mubr.bf16.mxu1 %v13330_v60  ;;  %v5264_v46 = vpop.f32.mrf.mxu1  ;;  %10536 = vmatprep.mubr.msk.bf16.mxu0 %vm14748_vm7, %v9012_v10  ;;  %v6699_v60 = vld [vmem:[#allocation2 + $0xc7] sm:$0xff]  ;;  %vm14751_vm7 = vnez %v14750_v9  ;;  %v7035_v10 = vld [vmem:[#allocation2 + $0xb8] sm:$0xff] }
 0x3b2   : > { %10613 = vmatpush3.bf16.msra.mxu0 %v10848_v47  ;;  %v13463_v15 = vadd.f32 %v5264_v46, %v5055_v29  ;;  %v5071_v42 = vpop.f32.mrf.mxu0  ;;  %v9016_v47 = vpack.c.bf16 %v6698_v59, %v6697_v48  ;;  %v6700_v29 = vld [vmem:[#allocation2 + $0xcf] sm:$0xff]  ;;  %v6703_v46 = vld [vmem:[#allocation2 + $0xe7] sm:$0xff] }
 0x3b3   : > { %10614 = vmatprep.subr.bf16.mxu0 %v10849_v22  ;;  %v10291_v34 = vpop.f32.mrf.mxu1  ;;  %v9020_v13 = vpack.c.bf16 %v6700_v29, %v6699_v60 }
 0x3b4   : > { %v13465_v63 = vadd.f32 %v10291_v34, %v10243_v32  ;;  %v10247_v40 = vpop.f32.mrf.mxu0  ;;  %v6701_v34 = vld [vmem:[#allocation2 + $0xd7] sm:$0xff] }
 0x3b5   : > { %v5267_v49 = vpop.f32.mrf.mxu1 }
 0x3b6   : > { %10615 = vmatpush3.bf16.msra.mxu0 %v10849_v22  ;;  %v13468_v53 = vadd.f32 %v5267_v49, %v5058_v58  ;;  %v5074_v7 = vpop.f32.mrf.mxu0  ;;  %v7036_v58 = vld [vmem:[#allocation2 + $0xc0] sm:$0xff]  ;;  %v6704_v49 = vld [vmem:[#allocation2 + $0xef] sm:$0xff] }
 0x3b7   : > { %v6702_v22 = vld [vmem:[#allocation2 + $0xdf] sm:$0xff]  ;;  %v7058_v31 = vpack.c.bf16 %v7036_v58, %v7035_v10  ;;  %v7042_v58 = vld [vmem:[#allocation2 + $0xf0] sm:$0xff] }
 0x3b8   : > { %v10294_v57 = vpop.f32.mrf.mxu1  ;;  %10581 = vmatmul.mubr.bf16.gmra.mxu1 %v7056_v27  ;;  %v10250_v32 = vpop.f32.mrf.mxu0  ;;  %10537 = vmatmul.mubr.msk.bf16.gmra.mxu0 %vm14749_vm12, %v9016_v47  ;;  %v9024_v60 = vpack.c.bf16 %v6702_v22, %v6701_v34  ;;  %v7061_v34 = vpack.c.bf16 %v7042_v58, %v13376_v3  ;;  %v7044_v47 = vld [vmem:[#allocation2 + $0x100] sm:$0xff]  ;;  %v7043_v58 = vld [vmem:[#allocation2 + $0xf8] sm:$0xff] }
 0x3b9   : > { %v13470_v26 = vadd.f32 %v10294_v57, %v10246_v18  ;;  %10584 = vmatprep.mubr.bf16.mxu1 %v13353_v8  ;;  %10540 = vmatprep.mubr.msk.bf16.mxu0 %vm14751_vm7, %v9020_v13  ;;  %v14753_v57 = vld [vmem:[#allocation45_spill] sm:$0xff]  ;;  %v7040_v13 = vld [vmem:[#allocation2 + $0xe0] sm:$0xff] }
 0x3ba   : > { %v5280_v36 = vpop.f32.mrf.mxu1  ;;  %v5087_v2 = vpop.f32.mrf.mxu0  ;;  %vm14754_vm12 = vnez %v14753_v57  ;;  %v7046_v57 = vld [vmem:[#allocation2 + $0x110] sm:$0xff] }
 0x3bb   : > { %v13477_v6 = vadd.f32 %v5280_v36, %v5071_v42  ;;  %v9028_v42 = vpack.c.bf16 %v6704_v49, %v6703_v46 }
 0x3bc   : > { %v10295_v56 = vpop.f32.mrf.mxu1  ;;  %v10251_v18 = vpop.f32.mrf.mxu0 }
 0x3bd   : > { %v13479_v37 = vadd.f32 %v10295_v56, %v10247_v40  ;;  %v6706_v56 = vld [vmem:[#allocation2 + $0xff] sm:$0xff] }
 0x3be   : > { %v5283_v8 = vpop.f32.mrf.mxu1  ;;  %v5090_v59 = vpop.f32.mrf.mxu0 }
 0x3bf   : > { %v13481_v20 = vadd.f32 %v5283_v8, %v5074_v7  ;;  %v6705_v8 = vld [vmem:[#allocation2 + $0xf7] sm:$0xff] }
 0x3c0   : > { %v10298_v27 = vpop.f32.mrf.mxu1  ;;  %10585 = vmatmul.mubr.bf16.gmra.mxu1 %v7058_v31  ;;  %v10254_v40 = vpop.f32.mrf.mxu0  ;;  %10541 = vmatmul.mubr.msk.bf16.gmra.mxu0 %vm14483_vm5, %v9024_v60  ;;  %v9032_v49 = vpack.c.bf16 %v6706_v56, %v6705_v8  ;;  %vm14755_vm5 = vnez %v14706_v19 }
 0x3c1   : > { %v13483_v48 = vadd.f32 %v10298_v27, %v10250_v32  ;;  %10588 = vmatprep.mubr.bf16.mxu1 %v13366_v35  ;;  %10544 = vmatprep.mubr.msk.bf16.mxu0 %vm14754_vm12, %v9028_v42  ;;  %v7039_v32 = vld [vmem:[#allocation2 + $0xd8] sm:$0xff] }
 0x3c2   : > { %v5296_v29 = vpop.f32.mrf.mxu1  ;;  %v5103_v36 = vpop.f32.mrf.mxu0  ;;  %v7060_v46 = vpack.c.bf16 %v7040_v13, %v7039_v32  ;;  %v6709_v13 = vld [vmem:[#allocation2 + $0x117] sm:$0xff] }
 0x3c3   : > { %v13490_v7 = vadd.f32 %v5296_v29, %v5087_v2  ;;  %v7324_v32 = vld [vmem:[#allocation2 + $0x31] sm:$0xff] }
 0x3c4   : > { %v10299_v9 = vpop.f32.mrf.mxu1  ;;  %v10255_v10 = vpop.f32.mrf.mxu0 }
 0x3c5   : > { %v13492_v22 = vadd.f32 %v10299_v9, %v10251_v18  ;;  %v6710_v9 = vld [vmem:[#allocation2 + $0x11f] sm:$0xff] }
 0x3c6   : > { %v5299_v35 = vpop.f32.mrf.mxu1  ;;  %v5106_v60 = vpop.f32.mrf.mxu0 }
 0x3c7   : > { %v13494_v31 = vadd.f32 %v5299_v35, %v5090_v59  ;;  %v7062_v35 = vpack.c.bf16 %v7044_v47, %v7043_v58  ;;  %v7325_v58 = vld [vmem:[#allocation2 + $0x39] sm:$0xff] }
 0x3c8   : > { %v10302_v2 = vpop.f32.mrf.mxu1  ;;  %10589 = vmatmul.mubr.bf16.gmra.mxu1 %v7060_v46  ;;  %v10258_v42 = vpop.f32.mrf.mxu0  ;;  %10545 = vmatmul.mubr.msk.bf16.gmra.mxu0 %vm14488_vm3, %v9032_v49  ;;  %v7045_v46 = vld [vmem:[#allocation2 + $0x108] sm:$0xff] }
 0x3c9   : > { %v13497_v27 = vadd.f32 %v10302_v2, %v10254_v40  ;;  %10592 = vmatprep.mubr.bf16.mxu1 %v7061_v34  ;;  %10548 = vmatprep.mubr.msk.bf16.mxu0 %vm11664_vm14, %v13258_v16  ;;  %v7063_v33 = vpack.c.bf16 %v7046_v57, %v7045_v46  ;;  %v7323_v34 = vld [vmem:[#allocation2 + $0x29] sm:$0xff]  ;;  %vm14757_vm14 = vnez %v14708_v61 }
 0x3ca   : > { %v5312_v18 = vpop.f32.mrf.mxu1  ;;  %v5119_v3 = vpop.f32.mrf.mxu0  ;;  %v9092_v2 = vpack.c.bf16 %v7324_v32, %v7323_v34  ;;  %v7327_v34 = vld [vmem:[#allocation2 + $0x49] sm:$0xff] }
 0x3cb   : > { %v13504_v59 = vadd.f32 %v5312_v18, %v5103_v36  ;;  %v9040_v36 = vpack.c.bf16 %v6710_v9, %v6709_v13  ;;  %v10851_v13 = vld [vmem:[#allocation2 + $0x8] sm:$0xff] }
 0x3cc   : > { %v10303_v29 = vpop.f32.mrf.mxu1  ;;  %v10259_v56 = vpop.f32.mrf.mxu0  ;;  %v7064_v9 = vpack.c.bf16 %v10851_v13, %v10851_v13 }
 0x3cd   : > { %v13506_v40 = vadd.f32 %v10303_v29, %v10255_v10 }
 0x3ce   : > { %v5315_v39 = vpop.f32.mrf.mxu1  ;;  %v5122_v16 = vpop.f32.mrf.mxu0 }
 0x3cf   : > { %v13508_v8 = vadd.f32 %v5315_v39, %v5106_v60  ;;  %v7326_v39 = vld [vmem:[#allocation2 + $0x41] sm:$0xff] }
 0x3d0   : > { %v10306_v49 = vpop.f32.mrf.mxu1  ;;  %10593 = vmatmul.mubr.bf16.gmra.mxu1 %v7062_v35  ;;  %v10262_v10 = vpop.f32.mrf.mxu0  ;;  %10549 = vmatmul.mubr.msk.bf16.gmra.mxu0 %vm11687_vm13, %v9040_v36  ;;  %v7328_v35 = vld [vmem:[#allocation2 + $0x51] sm:$0xff]  ;;  %v9096_v36 = vpack.c.bf16 %v7326_v39, %v7325_v58  ;;  %v7330_v39 = vld [vmem:[#allocation2 + $0x61] sm:$0xff]  ;;  %vm14756_vm13 = vnez %v14707_v1 }
 0x3d1   : > { %v13510_v18 = vadd.f32 %v10306_v49, %v10258_v42  ;;  %10596 = vmatprep.mubr.bf16.mxu1 %v7063_v33  ;;  %10616 = vmatprep.mubr.msk.bf16.mxu0 %vm14489_vm9, %v9092_v2 }
 0x3d2   : > { %v5328_v29 = vpop.f32.mrf.mxu1  ;;  %v5135_v47 = vpop.f32.mrf.mxu0 }
 0x3d3   : > { %v13516_v60 = vadd.f32 %v5328_v29, %v5119_v3  ;;  %v9100_v3 = vpack.c.bf16 %v7328_v35, %v7327_v34 }
 0x3d4   : > { %v10307_v57 = vpop.f32.mrf.mxu1  ;;  %v10263_v42 = vpop.f32.mrf.mxu0 }
 0x3d5   : > { %v13518_v32 = vadd.f32 %v10307_v57, %v10259_v56 }
 0x3d6   : > { %v5331_v46 = vpop.f32.mrf.mxu1  ;;  %v5138_v44 = vpop.f32.mrf.mxu0 }
 0x3d7   : > { %v13520_v33 = vadd.f32 %v5331_v46, %v5122_v16  ;;  %v7332_v46 = vld [vmem:[#allocation2 + $0x71] sm:$0xff] }
 0x3d8   : > { %v10310_v51 = vpop.f32.mrf.mxu1  ;;  %10597 = vmatmul.mubr.bf16.gmra.mxu1 %v7064_v9  ;;  %v10330_v2 = vpop.f32.mrf.mxu0  ;;  %10617 = vmatmul.mubr.msk.bf16.vlgmr.msra.gmra.mxu0 %vm11695_vm1, %v9096_v36  ;;  %v7329_v9 = vld [vmem:[#allocation2 + $0x59] sm:$0xff]  ;;  %vm14758_vm1 = vnez %v14713_v17 }
 0x3d9   : > { %v13522_v49 = vadd.f32 %v10310_v51, %v10262_v10  ;;  %v5667_v56 = vadd.f32 %v10330_v2, %v13416_v24  ;;  %10620 = vmatprep.mubr.msk.bf16.mxu0 %vm14755_vm5, %v9100_v3  ;;  %v9104_v19 = vpack.c.bf16 %v7330_v39, %v7329_v9  ;;  %v7331_v51 = vld [vmem:[#allocation2 + $0x69] sm:$0xff]  ;;  %v7334_v39 = vld [vmem:[#allocation2 + $0x81] sm:$0xff] }
 0x3da   : > { %v5344_v29 = vpop.f32.mrf.mxu1  ;;  %v5538_v57 = vpop.f32.mrf.mxu0  ;;  %v9108_v2 = vpack.c.bf16 %v7332_v46, %v7331_v51  ;;  %v7336_v46 = vld [vmem:[#allocation2 + $0x91] sm:$0xff] }
 0x3db   : > { %v13529_v16 = vadd.f32 %v5344_v29, %v5135_v47  ;;  %v5665_v58 = vadd.f32 %v5538_v57, %v13423_v25 }
 0x3dc   : > { %v10311_v13 = vpop.f32.mrf.mxu1  ;;  %v10331_v35 = vpop.f32.mrf.mxu0 }
 0x3dd   : > { %v13532_v10 = vadd.f32 %v10311_v13, %v10263_v42  ;;  %v5668_v36 = vadd.f32 %v10331_v35, %v13428_v23 }
 0x3de   : > { %v5347_v54 = vpop.f32.mrf.mxu1  ;;  %v5541_v24 = vpop.f32.mrf.mxu0 }
 0x3df   : > { %v13535_v34 = vadd.f32 %v5347_v54, %v5138_v44  ;;  %v5666_v3 = vadd.f32 %v5541_v24, %v13430_v14  ;;  %v7333_v14 = vld [vmem:[#allocation2 + $0x79] sm:$0xff] }
 0x3e0   : > { %v10378_v47 = vpop.f32.mrf.mxu1  ;;  %v10334_v25 = vpop.f32.mrf.mxu0  ;;  %10621 = vmatmul.mubr.msk.bf16.gmra.mxu0 %vm14756_vm13, %v9104_v19  ;;  %v9112_v61 = vpack.c.bf16 %v7334_v39, %v7333_v14  ;;  %v7335_v19 = vld [vmem:[#allocation2 + $0x89] sm:$0xff]  ;;  %v7340_v39 = vld [vmem:[#allocation2 + $0xb1] sm:$0xff] }
 0x3e1   : > { %v13538_v29 = vadd.f32 %v10378_v47, %v5667_v56  ;;  %v5671_v57 = vadd.f32 %v10334_v25, %v13436_v38  ;;  %10624 = vmatprep.mubr.msk.bf16.mxu0 %vm14757_vm14, %v9108_v2  ;;  %v9116_v47 = vpack.c.bf16 %v7336_v46, %v7335_v19 }
 0x3e2   : > { %v5876_v42 = vpop.f32.mrf.mxu1  ;;  %v5554_v44 = vpop.f32.mrf.mxu0 }
 0x3e3   : > { %v13545_v23 = vadd.f32 %v5876_v42, %v5665_v58  ;;  %v5669_v9 = vadd.f32 %v5554_v44, %v13443_v43 }
 0x3e4   : > { %v10379_v13 = vpop.f32.mrf.mxu1  ;;  %v10335_v35 = vpop.f32.mrf.mxu0 }
 0x3e5   : > { %v13548_v56 = vadd.f32 %v10379_v13, %v5668_v36  ;;  %v5672_v54 = vadd.f32 %v10335_v35, %v13448_v55  ;;  %v7338_v13 = vld [vmem:[#allocation2 + $0xa1] sm:$0xff] }
 0x3e6   : > { %v5879_v1 = vpop.f32.mrf.mxu1  ;;  %v5557_v38 = vpop.f32.mrf.mxu0 }
 0x3e7   : > { %v13551_v24 = vadd.f32 %v5879_v1, %v5666_v3  ;;  %v5670_v51 = vadd.f32 %v5557_v38, %v13450_v52  ;;  %v7337_v52 = vld [vmem:[#allocation2 + $0x99] sm:$0xff]  ;;  %v7339_v1 = vld [vmem:[#allocation2 + $0xa9] sm:$0xff] }
 0x3e8   : > { %v10382_v58 = vpop.f32.mrf.mxu1  ;;  %v10338_v43 = vpop.f32.mrf.mxu0  ;;  %10625 = vmatmul.mubr.msk.bf16.gmra.mxu0 %vm14737_vm15, %v9112_v61  ;;  %v9120_v17 = vpack.c.bf16 %v7338_v13, %v7337_v52  ;;  %v9124_v61 = vpack.c.bf16 %v7340_v39, %v7339_v1 }
 0x3e9   : > { %v13554_v2 = vadd.f32 %v10382_v58, %v5671_v57  ;;  %v5675_v25 = vadd.f32 %v10338_v43, %v13456_v0  ;;  %10628 = vmatprep.mubr.msk.bf16.mxu0 %vm14758_vm1, %v9116_v47 }
 0x3ea   : > { %v5892_v36 = vpop.f32.mrf.mxu1  ;;  %v5570_v3 = vpop.f32.mrf.mxu0 }
 0x3eb   : > { %v13561_v55 = vadd.f32 %v5892_v36, %v5669_v9  ;;  %v5673_v44 = vadd.f32 %v5570_v3, %v13463_v15  ;;  %v7342_v36 = vld [vmem:[#allocation2 + $0xc1] sm:$0xff] }
 0x3ec   : > { %v10383_v42 = vpop.f32.mrf.mxu1  ;;  %v10339_v14 = vpop.f32.mrf.mxu0 }
 0x3ed   : > { %v13564_v57 = vadd.f32 %v10383_v42, %v5672_v54  ;;  %v5676_v35 = vadd.f32 %v10339_v14, %v13465_v63  ;;  %v7344_v42 = vld [vmem:[#allocation2 + $0xd1] sm:$0xff]  ;;  %v7343_v14 = vld [vmem:[#allocation2 + $0xc9] sm:$0xff] }
 0x3ee   : > { %v5895_v21 = vpop.f32.mrf.mxu1  ;;  %v5573_v0 = vpop.f32.mrf.mxu0 }
 0x3ef   : > { %v13567_v46 = vadd.f32 %v5895_v21, %v5670_v51  ;;  %v5674_v38 = vadd.f32 %v5573_v0, %v13468_v53  ;;  %v7341_v53 = vld [vmem:[#allocation2 + $0xb9] sm:$0xff]  ;;  %v9132_v21 = vpack.c.bf16 %v7344_v42, %v7343_v14 }
 0x3f0   : > { %v10386_v9 = vpop.f32.mrf.mxu1  ;;  %v10342_v15 = vpop.f32.mrf.mxu0  ;;  %10629 = vmatmul.mubr.msk.bf16.gmra.mxu0 %vm14718_vm6, %v9120_v17  ;;  %v9128_v28 = vpack.c.bf16 %v7342_v36, %v7341_v53  ;;  %v7347_v53 = vld [vmem:[#allocation2 + $0xe9] sm:$0xff] }
 0x3f1   : > { %v13570_v19 = vadd.f32 %v10386_v9, %v5675_v25  ;;  %v5679_v58 = vadd.f32 %v10342_v15, %v13470_v26  ;;  %10632 = vmatprep.mubr.msk.bf16.mxu0 %vm14739_vm4, %v9124_v61  ;;  %v7346_v61 = vld [vmem:[#allocation2 + $0xe1] sm:$0xff]  ;;  %vm14759_vm4 = vnez %v14726_v41 }
 0x3f2   : > { %v5908_v54 = vpop.f32.mrf.mxu1  ;;  %v5586_v51 = vpop.f32.mrf.mxu0 }
 0x3f3   : > { %v13577_v63 = vadd.f32 %v5908_v54, %v5673_v44  ;;  %v5677_v43 = vadd.f32 %v5586_v51, %v13477_v6 }
 0x3f4   : > { %v10387_v47 = vpop.f32.mrf.mxu1  ;;  %v10343_v3 = vpop.f32.mrf.mxu0 }
 0x3f5   : > { %v13580_v25 = vadd.f32 %v10387_v47, %v5676_v35  ;;  %v5680_v52 = vadd.f32 %v10343_v3, %v13479_v37 }
 0x3f6   : > { %v5911_v12 = vpop.f32.mrf.mxu1  ;;  %v5589_v26 = vpop.f32.mrf.mxu0 }
 0x3f7   : > { %v13583_v13 = vadd.f32 %v5911_v12, %v5674_v38  ;;  %v5678_v39 = vadd.f32 %v5589_v26, %v13481_v20  ;;  %v7345_v20 = vld [vmem:[#allocation2 + $0xd9] sm:$0xff] }
 0x3f8   : > { %v10390_v44 = vpop.f32.mrf.mxu1  ;;  %v10346_v6 = vpop.f32.mrf.mxu0  ;;  %10633 = vmatmul.mubr.msk.bf16.gmra.mxu0 %vm14723_vm0, %v9128_v28  ;;  %v9136_v30 = vpack.c.bf16 %v7346_v61, %v7345_v20  ;;  %v7354_v61 = vld [vmem:[#allocation2 + $0x121] sm:$0xff] }
 0x3f9   : > { %v13586_v0 = vadd.f32 %v10390_v44, %v5679_v58  ;;  %v5683_v17 = vadd.f32 %v10346_v6, %v13483_v48  ;;  %10636 = vmatprep.mubr.msk.bf16.mxu0 %vm14725_vm11, %v9132_v21  ;;  %v7348_v58 = vld [vmem:[#allocation2 + $0xf1] sm:$0xff]  ;;  %v7350_v44 = vld [vmem:[#allocation2 + $0x101] sm:$0xff] }
 0x3fa   : > { %v5924_v35 = vpop.f32.mrf.mxu1  ;;  %v5602_v1 = vpop.f32.mrf.mxu0  ;;  %v9140_v3 = vpack.c.bf16 %v7348_v58, %v7347_v53 }
 0x3fb   : > { %v13593_v37 = vadd.f32 %v5924_v35, %v5677_v43  ;;  %v5681_v38 = vadd.f32 %v5602_v1, %v13490_v7 }
 0x3fc   : > { %v10391_v9 = vpop.f32.mrf.mxu1  ;;  %v10347_v54 = vpop.f32.mrf.mxu0 }
 0x3fd   : > { %v13596_v15 = vadd.f32 %v10391_v9, %v5680_v52  ;;  %v5684_v51 = vadd.f32 %v10347_v54, %v13492_v22 }
 0x3fe   : > { %v5927_v5 = vpop.f32.mrf.mxu1  ;;  %v5605_v48 = vpop.f32.mrf.mxu0 }
 0x3ff   : > { %v13599_v47 = vadd.f32 %v5927_v5, %v5678_v39  ;;  %v5682_v36 = vadd.f32 %v5605_v48, %v13494_v31  ;;  %v7349_v31 = vld [vmem:[#allocation2 + $0xf9] sm:$0xff] }
 0x400   : > { %v10394_v43 = vpop.f32.mrf.mxu1  ;;  %v10350_v7 = vpop.f32.mrf.mxu0  ;;  %10637 = vmatmul.mubr.msk.bf16.gmra.mxu0 %vm14759_vm4, %v9136_v30 }
 0x401   : > { %v13602_v42 = vadd.f32 %v10394_v43, %v5683_v17  ;;  %v5687_v52 = vadd.f32 %v10350_v7, %v13497_v27  ;;  %10640 = vmatprep.mubr.msk.bf16.mxu0 %vm14729_vm8, %v9140_v3  ;;  %v9144_v17 = vpack.c.bf16 %v7350_v44, %v7349_v31  ;;  %vm14760_vm8 = vnez %v14732_v4 }
 0x402   : > { %v5940_v12 = vpop.f32.mrf.mxu1  ;;  %v5618_v26 = vpop.f32.mrf.mxu0 }
 0x403   : > { %v13609_v22 = vadd.f32 %v5940_v12, %v5681_v38  ;;  %v5685_v14 = vadd.f32 %v5618_v26, %v13504_v59 }
 0x404   : > { %v10395_v28 = vpop.f32.mrf.mxu1  ;;  %v10351_v21 = vpop.f32.mrf.mxu0 }
 0x405   : > { %v13612_v39 = vadd.f32 %v10395_v28, %v5684_v51  ;;  %v5688_v41 = vadd.f32 %v10351_v21, %v13506_v40  ;;  %v7353_v40 = vld [vmem:[#allocation2 + $0x119] sm:$0xff] }
 0x406   : > { %v5943_v6 = vpop.f32.mrf.mxu1  ;;  %v5621_v27 = vpop.f32.mrf.mxu0  ;;  %v9152_v62 = vpack.c.bf16 %v7354_v61, %v7353_v40 }
 0x407   : > { %v13615_v35 = vadd.f32 %v5943_v6, %v5682_v36  ;;  %v5686_v1 = vadd.f32 %v5621_v27, %v13508_v8 }
 0x408   : > { %v10398_v50 = vpop.f32.mrf.mxu1  ;;  %v10354_v38 = vpop.f32.mrf.mxu0  ;;  %10641 = vmatmul.mubr.msk.bf16.gmra.mxu0 %vm14731_vm2, %v9144_v17 }
 0x409   : > { %v13618_v9 = vadd.f32 %v10398_v50, %v5687_v52  ;;  %v5691_v20 = vadd.f32 %v10354_v38, %v13510_v18  ;;  %10644 = vmatprep.mubr.msk.bf16.mxu0 %vm14760_vm8, %v13396_v11 }
 0x40a   : > { %v5956_v59 = vpop.f32.mrf.mxu1  ;;  %v5634_v58 = vpop.f32.mrf.mxu0 }
 0x40b   : > { %v13626_v54 = vadd.f32 %v5956_v59, %v5685_v14  ;;  %v5689_v8 = vadd.f32 %v5634_v58, %v13516_v60 }
 0x40c   : > { %v10399_v5 = vpop.f32.mrf.mxu1  ;;  %v10355_v48 = vpop.f32.mrf.mxu0 }
 0x40d   : > { %v13629_v51 = vadd.f32 %v10399_v5, %v5688_v41  ;;  %v5692_v53 = vadd.f32 %v10355_v48, %v13518_v32 }
 0x40e   : > { %v5959_v30 = vpop.f32.mrf.mxu1  ;;  %v5637_v43 = vpop.f32.mrf.mxu0 }
 0x40f   : > { %v13632_v18 = vadd.f32 %v5959_v30, %v5686_v1  ;;  %v5690_v11 = vadd.f32 %v5637_v43, %v13520_v33 }
 0x410   : > { %v10402_v4 = vpop.f32.mrf.mxu1  ;;  %v10358_v3 = vpop.f32.mrf.mxu0  ;;  %10645 = vmatmul.mubr.msk.bf16.gmra.mxu0 %vm14735_vm10, %v9152_v62 }
 0x411   : > { %v13635_v36 = vadd.f32 %v10402_v4, %v5691_v20  ;;  %v5695_v7 = vadd.f32 %v10358_v3, %v13522_v49 }
 0x412   : > { %v5972_v60 = vpop.f32.mrf.mxu1  ;;  %v5650_v52 = vpop.f32.mrf.mxu0 }
 0x413   : > { %v13640_v12 = vadd.f32 %v5972_v60, %v5689_v8  ;;  %v5693_v32 = vadd.f32 %v5650_v52, %v13529_v16 }
 0x414   : > { %v10403_v26 = vpop.f32.mrf.mxu1  ;;  %v10359_v14 = vpop.f32.mrf.mxu0 }
 0x415   : > { %v13643_v28 = vadd.f32 %v10403_v26, %v5692_v53  ;;  %v5696_v33 = vadd.f32 %v10359_v14, %v13532_v10 }
 0x416   : > { %v5975_v31 = vpop.f32.mrf.mxu1  ;;  %v5653_v21 = vpop.f32.mrf.mxu0 }
 0x417   : > { %v13646_v44 = vadd.f32 %v5975_v31, %v5690_v11  ;;  %v5694_v6 = vadd.f32 %v5653_v21, %v13535_v34 }
 0x418   : > { %v10406_v45 = vpop.f32.mrf.mxu1  ;;  %v10426_v49 = vpop.f32.mrf.mxu0 }
 0x419   : > { %v13649_v41 = vadd.f32 %v10406_v45, %v5695_v7  ;;  %v13652_v17 = vadd.f32 %v10426_v49, %v13538_v29 }
 0x41a   : > { %v5988_v27 = vpop.f32.mrf.mxu1  ;;  %v6182_v50 = vpop.f32.mrf.mxu0 }
 0x41b   : > { %v13654_v16 = vadd.f32 %v5988_v27, %v5693_v32  ;;  %v13657_v38 = vadd.f32 %v6182_v50, %v13545_v23 }
 0x41c   : > { %v10407_v1 = vpop.f32.mrf.mxu1  ;;  %v10427_v59 = vpop.f32.mrf.mxu0 }
 0x41d   : > { %v13659_v10 = vadd.f32 %v10407_v1, %v5696_v33  ;;  %v13662_v34 = vadd.f32 %v10427_v59, %v13548_v56 }
 0x41e   : > { %v5991_v20 = vpop.f32.mrf.mxu1  ;;  %v6185_v61 = vpop.f32.mrf.mxu0 }
 0x41f   : > { %v13664_v40 = vadd.f32 %v5991_v20, %v5694_v6  ;;  %v13669_v29 = vadd.f32 %v6185_v61, %v13551_v24 }
 0x420   : > { %v13666_v58 = vpop.f32.mrf.mxu1  ;;  %v10430_v5 = vpop.f32.mrf.mxu0 }
 0x421   : > { %v13674_v23 = vadd.f32 %v10430_v5, %v13554_v2 }
 0x422   : > { %v13671_v8 = vpop.f32.mrf.mxu1  ;;  %v6198_v48 = vpop.f32.mrf.mxu0 }
 0x423   : > { %v13679_v56 = vadd.f32 %v6198_v48, %v13561_v55 }
 0x424   : > { %v13676_v62 = vpop.f32.mrf.mxu1  ;;  %v10431_v30 = vpop.f32.mrf.mxu0 }
 0x425   : > { %v13684_v43 = vadd.f32 %v10431_v30, %v13564_v57 }
 0x426   : > { %v13681_v53 = vpop.f32.mrf.mxu1  ;;  %v6201_v24 = vpop.f32.mrf.mxu0 }
 0x427   : > { %v13689_v11 = vadd.f32 %v6201_v24, %v13567_v46 }
 0x428   : > { %v13686_v4 = vpop.f32.mrf.mxu1  ;;  %v10434_v2 = vpop.f32.mrf.mxu0 }
 0x429   : > { %v13694_v60 = vadd.f32 %v10434_v2, %v13570_v19 }
 0x42a   : > { %v13691_v3 = vpop.f32.mrf.mxu1  ;;  %v6214_v55 = vpop.f32.mrf.mxu0 }
 0x42b   : > { %v13699_v52 = vadd.f32 %v6214_v55, %v13577_v63 }
 0x42c   : > { %v13696_v7 = vpop.f32.mrf.mxu1  ;;  %v10435_v57 = vpop.f32.mrf.mxu0 }
 0x42d   : > { %v13704_v32 = vadd.f32 %v10435_v57, %v13580_v25 }
 0x42e   : > { %v13701_v26 = vpop.f32.mrf.mxu1  ;;  %v6217_v46 = vpop.f32.mrf.mxu0 }
 0x42f   : > { %v13709_v31 = vadd.f32 %v6217_v46, %v13583_v13 }
 0x430   : > { %v13706_v14 = vpop.f32.mrf.mxu1  ;;  %v10438_v19 = vpop.f32.mrf.mxu0 }
 0x431   : > { %v13714_v21 = vadd.f32 %v10438_v19, %v13586_v0 }
 0x432   : > { %v13711_v33 = vpop.f32.mrf.mxu1  ;;  %v6230_v63 = vpop.f32.mrf.mxu0 }
 0x433   : > { %v13719_v6 = vadd.f32 %v6230_v63, %v13593_v37 }
 0x434   : > { %v13716_v45 = vpop.f32.mrf.mxu1  ;;  %v10439_v25 = vpop.f32.mrf.mxu0 }
 0x435   : > { %v13724_v27 = vadd.f32 %v10439_v25, %v13596_v15 }
 0x436   : > { %v13721_v49 = vpop.f32.mrf.mxu1  ;;  %v6233_v13 = vpop.f32.mrf.mxu0 }
 0x437   : > { %14761 = vst [vmem:[#allocation68_spill] sm:$0xff] %v13724_v27  ;;  %v13729_v1 = vadd.f32 %v6233_v13, %v13599_v47 }
 0x438   : > { %v13726_v50 = vpop.f32.mrf.mxu1  ;;  %v10442_v0 = vpop.f32.mrf.mxu0 }
 0x439   : > { %14762 = vst [vmem:[#allocation69_spill] sm:$0xff] %v13729_v1  ;;  %v13734_v20 = vadd.f32 %v10442_v0, %v13602_v42 }
 0x43a   : > { %v13731_v59 = vpop.f32.mrf.mxu1  ;;  %v6246_v37 = vpop.f32.mrf.mxu0 }
 0x43b   : > { %14763 = vst [vmem:[#allocation70_spill] sm:$0xff] %v13734_v20  ;;  %v13739_v5 = vadd.f32 %v6246_v37, %v13609_v22 }
 0x43c   : > { %v13736_v61 = vpop.f32.mrf.mxu1  ;;  %v10443_v15 = vpop.f32.mrf.mxu0 }
 0x43d   : > { %14764 = vst [vmem:[#allocation71_spill] sm:$0xff] %v13736_v61  ;;  %14765 = vst [vmem:[#allocation76_spill] sm:$0xff] %v13739_v5  ;;  %v13744_v30 = vadd.f32 %v10443_v15, %v13612_v39 }
 0x43e   : > { %v13741_v48 = vpop.f32.mrf.mxu1  ;;  %v6249_v47 = vpop.f32.mrf.mxu0 }
 0x43f   : > { %14766 = vst [vmem:[#allocation80_spill] sm:$0xff] %v13741_v48  ;;  %14767 = vst [vmem:[#allocation77_spill] sm:$0xff] %v13744_v30  ;;  %v13749_v2 = vadd.f32 %v6249_v47, %v13615_v35 }
 0x440   : > { %v13746_v24 = vpop.f32.mrf.mxu1  ;;  %v10446_v42 = vpop.f32.mrf.mxu0 }
 0x441   : > { %14768 = vst [vmem:[#allocation122_spill] sm:$0xff] %v13746_v24  ;;  %14769 = vst [vmem:[#allocation128_spill] sm:$0xff] %v13749_v2  ;;  %v13754_v57 = vadd.f32 %v10446_v42, %v13618_v9 }
 0x442   : > { %v13751_v55 = vpop.f32.mrf.mxu1  ;;  %v6262_v22 = vpop.f32.mrf.mxu0 }
 0x443   : > { %14770 = vst [vmem:[#allocation72_spill] sm:$0xff] %v13751_v55  ;;  %14771 = vst [vmem:[#allocation83_spill] sm:$0xff] %v13754_v57  ;;  %v13759_v19 = vadd.f32 %v6262_v22, %v13626_v54 }
 0x444   : > { %v13756_v46 = vpop.f32.mrf.mxu1  ;;  %v10447_v39 = vpop.f32.mrf.mxu0 }
 0x445   : > { %14772 = vst [vmem:[#allocation123_spill] sm:$0xff] %v13756_v46  ;;  %14773 = vst [vmem:[#allocation82_spill] sm:$0xff] %v13759_v19  ;;  %v13764_v25 = vadd.f32 %v10447_v39, %v13629_v51 }
 0x446   : > { %v13761_v63 = vpop.f32.mrf.mxu1  ;;  %v6265_v35 = vpop.f32.mrf.mxu0 }
 0x447   : > { %14774 = vst [vmem:[#allocation131_spill] sm:$0xff] %v13761_v63  ;;  %14775 = vst [vmem:[#allocation73_spill] sm:$0xff] %v13764_v25  ;;  %v13769_v0 = vadd.f32 %v6265_v35, %v13632_v18 }
 0x448   : > { %v13766_v13 = vpop.f32.mrf.mxu1  ;;  %v10450_v9 = vpop.f32.mrf.mxu0 }
 0x449   : > { %14776 = vst [vmem:[#allocation78_spill] sm:$0xff] %v13766_v13  ;;  %14777 = vst [vmem:[#allocation85_spill] sm:$0xff] %v13769_v0  ;;  %v13774_v15 = vadd.f32 %v10450_v9, %v13635_v36 }
 0x44a   : > { %v13771_v37 = vpop.f32.mrf.mxu1  ;;  %v6278_v54 = vpop.f32.mrf.mxu0 }
 0x44b   : > { %14778 = vst [vmem:[#allocation134_spill] sm:$0xff] %v13771_v37  ;;  %14779 = vst [vmem:[#allocation124_spill] sm:$0xff] %v13774_v15  ;;  %v13779_v42 = vadd.f32 %v6278_v54, %v13640_v12 }
 0x44c   : > { %v13776_v47 = vpop.f32.mrf.mxu1  ;;  %v10451_v51 = vpop.f32.mrf.mxu0 }
 0x44d   : > { %14780 = vst [vmem:[#allocation79_spill] sm:$0xff] %v13776_v47  ;;  %14781 = vst [vmem:[#allocation87_spill] sm:$0xff] %v13779_v42  ;;  %v13784_v39 = vadd.f32 %v10451_v51, %v13643_v28 }
 0x44e   : > { %v13781_v22 = vpop.f32.mrf.mxu1  ;;  %v6281_v18 = vpop.f32.mrf.mxu0 }
 0x44f   : > { %14782 = vst [vmem:[#allocation84_spill] sm:$0xff] %v13781_v22  ;;  %14783 = vst [vmem:[#allocation137_spill] sm:$0xff] %v13784_v39  ;;  %v13789_v0 = vadd.f32 %v6281_v18, %v13646_v44 }
 0x450   : > { %v13786_v35 = vpop.f32.mrf.mxu1  ;;  %v10454_v36 = vpop.f32.mrf.mxu0 }
 0x451   : > { %14784 = vst [vmem:[#allocation125_spill] sm:$0xff] %v13786_v35  ;;  %14785 = vst [vmem:[#allocation81_spill] sm:$0xff] %v13789_v0  ;;  %v13794_v15 = vadd.f32 %v10454_v36, %v13649_v41 }
 0x452   : > { %v13791_v9 = vpop.f32.mrf.mxu1  ;;  %v6294_v12 = vpop.f32.mrf.mxu0 }
 0x453   : > { %14786 = vst [vmem:[#allocation89_spill] sm:$0xff] %v13791_v9  ;;  %14787 = vst [vmem:[#allocation126_spill] sm:$0xff] %v13794_v15  ;;  %v13799_v42 = vadd.f32 %v6294_v12, %v13654_v16 }
 0x454   : > { %v13796_v54 = vpop.f32.mrf.mxu1  ;;  %v10455_v28 = vpop.f32.mrf.mxu0 }
 0x455   : > { %14788 = vst [vmem:[#allocation14_spill] sm:$0xff] %v13796_v54  ;;  %14789 = vst [vmem:[#allocation91_spill] sm:$0xff] %v13799_v42  ;;  %v13804_v39 = vadd.f32 %v10455_v28, %v13659_v10 }
 0x456   : > { %v13801_v51 = vpop.f32.mrf.mxu1  ;;  %v6297_v44 = vpop.f32.mrf.mxu0 }
 0x457   : > { %14790 = vst [vmem:[#allocation92_spill] sm:$0xff] %v13801_v51  ;;  %14791 = vst [vmem:[#allocation127_spill] sm:$0xff] %v13804_v39  ;;  %v13809_v0 = vadd.f32 %v6297_v44, %v13664_v40 }
 0x458   : > { %v13806_v18 = vpop.f32.mrf.mxu1  ;;  %v10522_v41 = vpop.f32.mrf.mxu0 }
 0x459   : > { %14792 = vst [vmem:[#allocation15_spill] sm:$0xff] %v13806_v18  ;;  %14793 = vst [vmem:[#allocation142_spill] sm:$0xff] %v13809_v0 }
 0x45a   : > { %v13811_v36 = vpop.f32.mrf.mxu1  ;;  %v6858_v15 = vpop.f32.mrf.mxu0 }
 0x45b   : > { %14794 = vst [vmem:[#allocation86_spill] sm:$0xff] %v13811_v36 }
 0x45c   : > { %v13813_v54 = vpop.f32.mrf.mxu1  ;;  %v10523_v16 = vpop.f32.mrf.mxu0 }
 0x45d   : > { %14795 = vst [vmem:[#allocation93_spill] sm:$0xff] %v13813_v54 }
 0x45e   : > { %v13815_v12 = vpop.f32.mrf.mxu1  ;;  %v6861_v42 = vpop.f32.mrf.mxu0 }
 0x45f   : > { %14796 = vst [vmem:[#allocation145_spill] sm:$0xff] %v13815_v12 }
 0x460   : > { %v10570_v51 = vpop.f32.mrf.mxu1  ;;  %v13817_v9 = vpop.f32.mrf.mxu0 }
 0x462   : > { %v7164_v10 = vpop.f32.mrf.mxu1  ;;  %v13819_v28 = vpop.f32.mrf.mxu0 }
 0x464   : > { %v10571_v39 = vpop.f32.mrf.mxu1  ;;  %v13821_v18 = vpop.f32.mrf.mxu0 }
 0x466   : > { %v7167_v40 = vpop.f32.mrf.mxu1  ;;  %v13823_v44 = vpop.f32.mrf.mxu0 }
 0x468   : > { %v13825_v0 = vpop.f32.mrf.mxu1  ;;  %v13827_v36 = vpop.f32.mrf.mxu0 }
 0x46a   : > { %v13829_v54 = vpop.f32.mrf.mxu1  ;;  %v13831_v12 = vpop.f32.mrf.mxu0 }
 0x46c   : > { %v13833_v35 = vpop.f32.mrf.mxu0  ;;  %v13835_v22 = vpop.f32.mrf.mxu1 }
 0x46e   : > { %v13837_v47 = vpop.f32.mrf.mxu0  ;;  %v13841_v37 = vpop.f32.mrf.mxu1 }
 0x470   : > { %v13839_v25 = vpop.f32.mrf.mxu0  ;;  %v13847_v57 = vpop.f32.mrf.mxu1 }
 0x472   : > { %v13843_v19 = vpop.f32.mrf.mxu0  ;;  %v13853_v46 = vpop.f32.mrf.mxu1 }
 0x473   : > { %14797 = vst [vmem:[#allocation129_spill] sm:$0xff] %v13843_v19 }
 0x474   : > { %v13845_v13 = vpop.f32.mrf.mxu0  ;;  %v13859_v5 = vpop.f32.mrf.mxu1 }
 0x475   : > { %14798 = vst [vmem:[#allocation112_spill] sm:$0xff] %v13845_v13 }
 0x476   : > { %v13849_v63 = vpop.f32.mrf.mxu0  ;;  %v13865_v48 = vpop.f32.mrf.mxu1 }
 0x477   : > { %14799 = vst [vmem:[#allocation88_spill] sm:$0xff] %v13849_v63 }
 0x478   : > { %v13851_v2 = vpop.f32.mrf.mxu0  ;;  %v13871_v63 = vpop.f32.mrf.mxu1 }
 0x479   : > { %14800 = vst [vmem:[#allocation95_spill] sm:$0xff] %v13851_v2 }
 0x47a   : > { %v13855_v30 = vpop.f32.mrf.mxu0 }
 0x47b   : > { %14801 = vst [vmem:[#allocation90_spill] sm:$0xff] %v13855_v30  ;;  %v13877_v30 = vpop.f32.mrf.mxu1 }
 0x47c   : > { %v13857_v55 = vpop.f32.mrf.mxu0  ;;  %14809 = vst [vmem:[#allocation133_spill] sm:$0xff] %v13877_v30 }
 0x47d   : > { %14802 = vst [vmem:[#allocation97_spill] sm:$0xff] %v13857_v55 }
 0x47e   : > { %v13861_v24 = vpop.f32.mrf.mxu0 }
 0x47f   : > { %14803 = vst [vmem:[#allocation148_spill] sm:$0xff] %v13861_v24  ;;  %v13883_v24 = vpop.f32.mrf.mxu1 }
 0x480   : > { %v13863_v20 = vpop.f32.mrf.mxu0  ;;  %14812 = vst [vmem:[#allocation101_spill] sm:$0xff] %v13883_v24 }
 0x481   : > { %14804 = vst [vmem:[#allocation130_spill] sm:$0xff] %v13863_v20 }
 0x482   : > { %v13867_v13 = vpop.f32.mrf.mxu0 }
 0x483   : > { %14805 = vst [vmem:[#allocation132_spill] sm:$0xff] %v13867_v13  ;;  %v13889_v13 = vpop.f32.mrf.mxu1 }
 0x484   : > { %v13869_v1 = vpop.f32.mrf.mxu0  ;;  %14815 = vst [vmem:[#allocation103_spill] sm:$0xff] %v13889_v13 }
 0x485   : > { %14806 = vst [vmem:[#allocation20_spill] sm:$0xff] %v13869_v1 }
 0x486   : > { %v13873_v2 = vpop.f32.mrf.mxu0 }
 0x487   : > { %14807 = vst [vmem:[#allocation99_spill] sm:$0xff] %v13873_v2  ;;  %v6649_v2 = vadd.f32 %v13666_v58, %v13652_v17  ;;  %v13908_v17 = vld [vmem:[%s14152_s6] ss:$0 sm:$0xff] }
 0x488   : > { %v13875_v19 = vpop.f32.mrf.mxu0 }
 0x489   : > { %14808 = vst [vmem:[#allocation100_spill] sm:$0xff] %v13875_v19  ;;  %v6987_v30 = vadd.f32 %v10522_v41, %v6649_v2 }
 0x48a   : > { %v13879_v55 = vpop.f32.mrf.mxu0 }
 0x48b   : > { %14810 = vst [vmem:[#allocation21_spill] sm:$0xff] %v13879_v55  ;;  %v6647_v55 = vadd.f32 %v13671_v8, %v13657_v38  ;;  %v6648_v38 = vadd.f32 %v13681_v53, %v13669_v29 }
 0x48c   : > { %v13881_v61 = vpop.f32.mrf.mxu0 }
 0x48d   : > { %14811 = vst [vmem:[#allocation94_spill] sm:$0xff] %v13881_v61  ;;  %v13899_v61 = vpop.f32.mrf.mxu1  ;;  %v6985_v13 = vadd.f32 %v6858_v15, %v6647_v55 }
 0x48e   : > { %v13885_v20 = vpop.f32.mrf.mxu0 }
 0x48f   : > { %14813 = vst [vmem:[#allocation135_spill] sm:$0xff] %v13885_v20  ;;  %v7293_v20 = vadd.f32 %v10570_v51, %v6987_v30  ;;  %v7291_v58 = vadd.f32 %v7164_v10, %v6985_v13  ;;  %v13912_v2 = vpop.f32.mrf.mxu1  ;;  %v6986_v30 = vadd.f32 %v6861_v42, %v6648_v38  ;;  %v6651_v51 = vadd.f32 %v13691_v3, %v13679_v56 }
 0x490   : > { %v13887_v27 = vpop.f32.mrf.mxu0  ;;  %v6654_v42 = vadd.f32 %v13696_v7, %v13684_v43  ;;  %v6652_v43 = vadd.f32 %v13701_v26, %v13689_v11 }
 0x491   : > { %14814 = vst [vmem:[#allocation96_spill] sm:$0xff] %v13887_v27  ;;  %v6650_v27 = vadd.f32 %v13676_v62, %v13662_v34  ;;  %v13921_v13 = vpop.f32.mrf.mxu1 }
 0x492   : > { %v13891_v1 = vpop.f32.mrf.mxu0  ;;  %v6990_v26 = vadd.f32 %v13823_v44, %v6652_v43 }
 0x493   : > { %14816 = vst [vmem:[#allocation98_spill] sm:$0xff] %v13891_v1  ;;  %v6988_v8 = vadd.f32 %v10523_v16, %v6650_v27  ;;  %v7292_v27 = vadd.f32 %v7167_v40, %v6986_v30  ;;  %v6989_v16 = vadd.f32 %v13819_v28, %v6651_v51  ;;  %v13940_v38 = vpop.f32.mrf.mxu1  ;;  %v6657_v30 = vadd.f32 %v13706_v14, %v13694_v60 }
 0x494   : > { %v13895_v19 = vpop.f32.mrf.mxu0 }
 0x495   : > { %v7294_v62 = vadd.f32 %v10571_v39, %v6988_v8  ;;  %v7295_v7 = vadd.f32 %v13829_v54, %v6989_v16  ;;  %v14820_v8 = vld [vmem:[#allocation7_spill] sm:$0xff]  ;;  %v6995_v60 = vadd.f32 %v13827_v36, %v6657_v30  ;;  %v14826_v30 = vld [vmem:[#allocation13_spill] sm:$0xff] }
 0x496   : > { %v13901_v24 = vpop.f32.mrf.mxu0 }
 0x497   : > { %14817 = vst [vmem:[#allocation105_spill] sm:$0xff] %v13901_v24  ;;  %v6653_v24 = vadd.f32 %v13686_v4, %v13674_v23 }
 0x498   : > { %v10618_v1 = vpop.f32.mrf.mxu0 }
 0x499   : > { %v7631_v41 = vadd.f32 %v10618_v1, %v7293_v20  ;;  %v6991_v29 = vadd.f32 %v13817_v9, %v6653_v24  ;;  %v14818_v1 = vld [vmem:[#allocation5_spill] sm:$0xff]  ;;  %v14819_v24 = vld [vmem:[#allocation6_spill] sm:$0xff] }
 0x49a   : > { %v7502_v34 = vpop.f32.mrf.mxu0 }
 0x49b   : > { %v7670_v55 = vadd.f32 %v13908_v17, %v7631_v41  ;;  %v7629_v15 = vadd.f32 %v7502_v34, %v7291_v58  ;;  %v7297_v39 = vadd.f32 %v13825_v0, %v6991_v29  ;;  %v6992_v0 = vadd.f32 %v13821_v18, %v6654_v42 }
 0x49c   : > { %v10619_v53 = vpop.f32.mrf.mxu0  ;;  %v6658_v42 = vadd.f32 %v13716_v45, %v13704_v32 }
 0x49d   : > { %v7734_v20 = vadd.f32 %v7670_v55, %v14818_v1  ;;  %v7668_v23 = vadd.f32 %v13908_v17, %v7629_v15  ;;  %v7632_v4 = vadd.f32 %v10619_v53, %v7294_v62  ;;  %v7298_v11 = vadd.f32 %v13835_v22, %v6992_v0  ;;  %v14821_v55 = vld [vmem:[#allocation8_spill] sm:$0xff]  ;;  %v13956_v22 = vpop.f32.mrf.mxu1  ;;  %v14822_v1 = vld [vmem:[#allocation9_spill] sm:$0xff] }
 0x49e   : > { %v7505_v56 = vpop.f32.mrf.mxu0  ;;  %v6655_v53 = vadd.f32 %v13711_v33, %v13699_v52  ;;  %v7301_v52 = vadd.f32 %v13847_v57, %v6995_v60  ;;  %v6996_v32 = vadd.f32 %v13833_v35, %v6658_v42  ;;  %v6661_v0 = vadd.f32 %v13726_v50, %v13714_v21 }
 0x49f   : > { %v7766_v3 = vmax.f32 %v7734_v20, 0.0  ;;  %v7732_v9 = vadd.f32 %v7668_v23, %v14819_v24  ;;  %v7671_v10 = vadd.f32 %v13908_v17, %v7632_v4  ;;  %v7630_v40 = vadd.f32 %v7505_v56, %v7292_v27  ;;  %v13972_v57 = vpop.f32.mrf.mxu1 }
 0x4a0   : > { %v10622_v28 = vpop.f32.mrf.mxu0  ;;  %v7296_v27 = vadd.f32 %v13841_v37, %v6990_v26  ;;  %v6993_v33 = vadd.f32 %v13831_v12, %v6655_v53  ;;  %v6656_v24 = vadd.f32 %v13721_v49, %v13709_v31  ;;  %v7302_v31 = vadd.f32 %v13859_v5, %v6996_v32 }
 0x4a1   : > { %7798 = vst [vmem:[%s13932_s21 + $0x10] sm:$0xff] %v7766_v3  ;;  %v7764_v58 = vmax.f32 %v7732_v9, 0.0  ;;  %v7735_v41 = vadd.f32 %v7671_v10, %v14820_v8  ;;  %v7669_v34 = vadd.f32 %v13908_v17, %v7630_v40  ;;  %v7635_v62 = vadd.f32 %v10622_v28, %v7297_v39  ;;  %v14823_v39 = vld [vmem:[#allocation10_spill] sm:$0xff]  ;;  %v14824_v10 = vld [vmem:[#allocation11_spill] sm:$0xff]  ;;  %v14825_v28 = vld [vmem:[#allocation12_spill] sm:$0xff]  ;;  %v13988_v5 = vpop.f32.mrf.mxu1 }
 0x4a2   : > { %v7518_v54 = vpop.f32.mrf.mxu0  ;;  %v7299_v9 = vadd.f32 %v13853_v46, %v6993_v33  ;;  %v6994_v49 = vadd.f32 %v13837_v47, %v6656_v24  ;;  %v6999_v21 = vadd.f32 %v13839_v25, %v6661_v0 }
 0x4a3   : > { %7796 = vst [vmem:[%s13932_s21] sm:$0xff] %v7764_v58  ;;  %v7767_v18 = vmax.f32 %v7735_v41, 0.0  ;;  %v7733_v15 = vadd.f32 %v7669_v34, %v14821_v55  ;;  %v7674_v51 = vadd.f32 %v13908_v17, %v7635_v62  ;;  %v7633_v29 = vadd.f32 %v7518_v54, %v7295_v7  ;;  %v14828_v55 = vld [vmem:[#allocation71_spill] sm:$0xff] }
 0x4a4   : > { %v10623_v14 = vpop.f32.mrf.mxu0  ;;  %v6659_v34 = vadd.f32 %v13731_v59, %v13719_v6  ;;  %v7300_v62 = vadd.f32 %v13865_v48, %v6994_v49  ;;  %v7305_v6 = vadd.f32 %v13871_v63, %v6999_v21  ;;  %v14829_v59 = vld [vmem:[#allocation129_spill] sm:$0xff]  ;;  %v14004_v63 = vpop.f32.mrf.mxu1  ;;  %v14841_v49 = vld [vmem:[#allocation76_spill] sm:$0xff] }
 0x4a5   : > { %7799 = vst [vmem:[%s13932_s21 + $0x18] sm:$0xff] %v7767_v18  ;;  %v7765_v44 = vmax.f32 %v7733_v15, 0.0  ;;  %v7738_v20 = vadd.f32 %v7674_v51, %v14822_v1  ;;  %v7672_v23 = vadd.f32 %v13908_v17, %v7633_v29  ;;  %v7636_v4 = vadd.f32 %v10623_v14, %v7298_v11  ;;  %v14827_v18 = vld [vmem:[#allocation68_spill] sm:$0xff]  ;;  %v14831_v14 = vld [vmem:[#allocation69_spill] sm:$0xff] }
 0x4a6   : > { %v7521_v37 = vpop.f32.mrf.mxu0  ;;  %v6662_v15 = vadd.f32 %v14828_v55, %v14827_v18  ;;  %v6997_v48 = vadd.f32 %v14829_v59, %v6659_v34  ;;  %v14830_v29 = vld [vmem:[#allocation16_spill] sm:$0xff] }
 0x4a7   : > { %7797 = vst [vmem:[%s13932_s21 + $0x8] sm:$0xff] %v7765_v44  ;;  %v7770_v36 = vmax.f32 %v7738_v20, 0.0  ;;  %v7736_v16 = vadd.f32 %v7672_v23, %v14823_v39  ;;  %v7675_v56 = vadd.f32 %v13908_v17, %v7636_v4  ;;  %v7634_v3 = vadd.f32 %v7521_v37, %v7296_v27  ;;  %v14832_v44 = vld [vmem:[#allocation80_spill] sm:$0xff]  ;;  %v14833_v20 = vld [vmem:[#allocation133_spill] sm:$0xff] }
 0x4a8   : > { %v10626_v45 = vpop.f32.mrf.mxu0  ;;  %v6660_v1 = vadd.f32 %v14832_v44, %v14831_v14  ;;  %v7303_v23 = vadd.f32 %v14833_v20, %v6997_v48  ;;  %v14834_v4 = vld [vmem:[#allocation112_spill] sm:$0xff]  ;;  %v14835_v37 = vld [vmem:[#allocation17_spill] sm:$0xff] }
 0x4a9   : > { %7802 = vst [vmem:[%s13932_s21 + $0x30] sm:$0xff] %v7770_v36  ;;  %v7768_v12 = vmax.f32 %v7736_v16, 0.0  ;;  %v7739_v40 = vadd.f32 %v7675_v56, %v14824_v10  ;;  %v7673_v43 = vadd.f32 %v13908_v17, %v7634_v3  ;;  %v7639_v7 = vadd.f32 %v10626_v45, %v7301_v52  ;;  %v14836_v56 = vld [vmem:[#allocation70_spill] sm:$0xff]  ;;  %v14839_v45 = vld [vmem:[#allocation88_spill] sm:$0xff] }
 0x4aa   : > { %v7534_v46 = vpop.f32.mrf.mxu0  ;;  %v7000_v42 = vadd.f32 %v14834_v4, %v6662_v15  ;;  %v14837_v3 = vld [vmem:[#allocation122_spill] sm:$0xff] }
 0x4ab   : > { %7800 = vst [vmem:[%s13932_s21 + $0x20] sm:$0xff] %v7768_v12  ;;  %v7771_v35 = vmax.f32 %v7739_v40, 0.0  ;;  %v7737_v58 = vadd.f32 %v7673_v43, %v14825_v28  ;;  %v7678_v8 = vadd.f32 %v13908_v17, %v7639_v7  ;;  %v7637_v41 = vadd.f32 %v7534_v46, %v7299_v9  ;;  %v14838_v9 = vld [vmem:[#allocation101_spill] sm:$0xff]  ;;  %v14840_v43 = vld [vmem:[#allocation18_spill] sm:$0xff]  ;;  %v14842_v46 = vld [vmem:[#allocation72_spill] sm:$0xff] }
 0x4ac   : > { %v10627_v50 = vpop.f32.mrf.mxu0  ;;  %v6665_v24 = vadd.f32 %v14837_v3, %v14836_v56  ;;  %v7306_v32 = vadd.f32 %v14838_v9, %v7000_v42  ;;  %v6998_v12 = vadd.f32 %v14839_v45, %v6660_v1  ;;  %v14843_v28 = vld [vmem:[#allocation103_spill] sm:$0xff]  ;;  %v14848_v15 = vld [vmem:[#allocation90_spill] sm:$0xff]  ;;  %v14852_v1 = vld [vmem:[#allocation97_spill] sm:$0xff] }
 0x4ad   : > { %7803 = vst [vmem:[%s13932_s21 + $0x38] sm:$0xff] %v7771_v35  ;;  %v7769_v47 = vmax.f32 %v7737_v58, 0.0  ;;  %v7742_v11 = vadd.f32 %v7678_v8, %v14826_v30  ;;  %v7676_v26 = vadd.f32 %v13908_v17, %v7637_v41  ;;  %v7640_v54 = vadd.f32 %v10627_v50, %v7302_v31  ;;  %v14844_v8 = vld [vmem:[#allocation95_spill] sm:$0xff]  ;;  %v14856_v3 = vld [vmem:[#allocation148_spill] sm:$0xff] }
 0x4ae   : > { %v7537_v51 = vpop.f32.mrf.mxu0  ;;  %v6663_v35 = vadd.f32 %v14842_v46, %v14841_v49  ;;  %v7304_v58 = vadd.f32 %v14843_v28, %v6998_v12  ;;  %v7003_v41 = vadd.f32 %v14844_v8, %v6665_v24  ;;  %v14845_v50 = vld [vmem:[#allocation19_spill] sm:$0xff]  ;;  %v14861_v28 = vld [vmem:[#allocation25_spill] sm:$0xff] }
 0x4af   : > { %7801 = vst [vmem:[%s13932_s21 + $0x28] sm:$0xff] %v7769_v47  ;;  %v7774_v25 = vmax.f32 %v7742_v11, 0.0  ;;  %v7740_v53 = vadd.f32 %v7676_v26, %v14830_v29  ;;  %v7679_v27 = vadd.f32 %v13908_v17, %v7640_v54  ;;  %v7638_v60 = vadd.f32 %v7537_v51, %v7300_v62  ;;  %v14020_v62 = vpop.f32.mrf.mxu1  ;;  %v14846_v26 = vld [vmem:[#allocation77_spill] sm:$0xff]  ;;  %v14847_v54 = vld [vmem:[#allocation123_spill] sm:$0xff]  ;;  %v14849_v51 = vld [vmem:[#allocation22_spill] sm:$0xff] }
 0x4b0   : > { %v10630_v52 = vpop.f32.mrf.mxu0  ;;  %v6666_v18 = vadd.f32 %v14847_v54, %v14846_v26  ;;  %v7309_v55 = vadd.f32 %v13899_v61, %v7003_v41  ;;  %v14853_v42 = vld [vmem:[#allocation23_spill] sm:$0xff]  ;;  %v14865_v54 = vld [vmem:[#allocation28_spill] sm:$0xff] }
 0x4b1   : > { %7806 = vst [vmem:[%s13932_s21 + $0x50] sm:$0xff] %v7774_v25  ;;  %v7772_v33 = vmax.f32 %v7740_v53, 0.0  ;;  %v7743_v36 = vadd.f32 %v7679_v27, %v14835_v37  ;;  %v7677_v39 = vadd.f32 %v13908_v17, %v7638_v60  ;;  %v7643_v16 = vadd.f32 %v10630_v52, %v7305_v6  ;;  %v14850_v27 = vld [vmem:[#allocation128_spill] sm:$0xff]  ;;  %v14851_v60 = vld [vmem:[#allocation131_spill] sm:$0xff]  ;;  %v14036_v61 = vpop.f32.mrf.mxu1 }
 0x4b2   : > { %v7550_v10 = vpop.f32.mrf.mxu0  ;;  %v7001_v6 = vadd.f32 %v14848_v15, %v6663_v35  ;;  %v6664_v14 = vadd.f32 %v14851_v60, %v14850_v27  ;;  %v7004_v20 = vadd.f32 %v14852_v1, %v6666_v18  ;;  %v14869_v60 = vld [vmem:[#allocation29_spill] sm:$0xff] }
 0x4b3   : > { %7804 = vst [vmem:[%s13932_s21 + $0x40] sm:$0xff] %v7772_v33  ;;  %v7775_v40 = vmax.f32 %v7743_v36, 0.0  ;;  %v7741_v7 = vadd.f32 %v7677_v39, %v14840_v43  ;;  %v7682_v0 = vadd.f32 %v13908_v17, %v7643_v16  ;;  %v7641_v31 = vadd.f32 %v7550_v10, %v7303_v23  ;;  %v14854_v36 = vld [vmem:[#allocation83_spill] sm:$0xff]  ;;  %v14855_v39 = vld [vmem:[#allocation78_spill] sm:$0xff] }
 0x4b4   : > { %v10631_v34 = vpop.f32.mrf.mxu0  ;;  %v7307_v44 = vadd.f32 %v13912_v2, %v7001_v6  ;;  %v6669_v16 = vadd.f32 %v14855_v39, %v14854_v36  ;;  %v7310_v56 = vadd.f32 %v13921_v13, %v7004_v20  ;;  %v7002_v2 = vadd.f32 %v14856_v3, %v6664_v14  ;;  %v14859_v43 = vld [vmem:[#allocation134_spill] sm:$0xff]  ;;  %v14052_v13 = vpop.f32.mrf.mxu1  ;;  %v14866_v6 = vld [vmem:[#allocation85_spill] sm:$0xff]  ;;  %v14870_v20 = vld [vmem:[#allocation124_spill] sm:$0xff] }
 0x4b5   : > { %7807 = vst [vmem:[%s13932_s21 + $0x58] sm:$0xff] %v7775_v40  ;;  %v7773_v21 = vmax.f32 %v7741_v7, 0.0  ;;  %v7746_v47 = vadd.f32 %v7682_v0, %v14845_v50  ;;  %v7680_v30 = vadd.f32 %v13908_v17, %v7641_v31  ;;  %v7644_v11 = vadd.f32 %v10631_v34, %v7306_v32  ;;  %v14857_v32 = vld [vmem:[#allocation24_spill] sm:$0xff]  ;;  %v14858_v40 = vld [vmem:[#allocation82_spill] sm:$0xff]  ;;  %v14862_v34 = vld [vmem:[#allocation73_spill] sm:$0xff] }
 0x4b6   : > { %v7553_v59 = vpop.f32.mrf.mxu0  ;;  %v6667_v7 = vadd.f32 %v14859_v43, %v14858_v40  ;;  %v7308_v0 = vadd.f32 %v13940_v38, %v7002_v2  ;;  %v14860_v31 = vld [vmem:[#allocation130_spill] sm:$0xff]  ;;  %v14874_v3 = vld [vmem:[#allocation87_spill] sm:$0xff]  ;;  %v14875_v2 = vld [vmem:[#allocation89_spill] sm:$0xff] }
 0x4b7   : > { %7805 = vst [vmem:[%s13932_s21 + $0x48] sm:$0xff] %v7773_v21  ;;  %v7778_v48 = vmax.f32 %v7746_v47, 0.0  ;;  %v7744_v25 = vadd.f32 %v7680_v30, %v14849_v51  ;;  %v7683_v29 = vadd.f32 %v13908_v17, %v7644_v11  ;;  %v7642_v53 = vadd.f32 %v7553_v59, %v7304_v58  ;;  %v14863_v21 = vld [vmem:[#allocation79_spill] sm:$0xff]  ;;  %v14864_v30 = vld [vmem:[#allocation132_spill] sm:$0xff]  ;;  %v14873_v36 = vld [vmem:[#allocation30_spill] sm:$0xff] }
 0x4b8   : > { %v10634_v23 = vpop.f32.mrf.mxu0  ;;  %v7007_v49 = vadd.f32 %v14860_v31, %v6669_v16  ;;  %v6670_v50 = vadd.f32 %v14863_v21, %v14862_v34  ;;  %v7005_v38 = vadd.f32 %v14864_v30, %v6667_v7  ;;  %v14867_v59 = vld [vmem:[#allocation84_spill] sm:$0xff]  ;;  %v14877_v40 = vld [vmem:[#allocation31_spill] sm:$0xff]  ;;  %v14878_v31 = vld [vmem:[#allocation137_spill] sm:$0xff] }
 0x4b9   : > { %7810 = vst [vmem:[%s13932_s21 + $0x70] sm:$0xff] %v7778_v48  ;;  %v7776_v4 = vmax.f32 %v7744_v25, 0.0  ;;  %v7747_v52 = vadd.f32 %v7683_v29, %v14853_v42  ;;  %v7681_v33 = vadd.f32 %v13908_v17, %v7642_v53  ;;  %v7647_v37 = vadd.f32 %v10634_v23, %v7309_v55  ;;  %v14868_v25 = vld [vmem:[#allocation20_spill] sm:$0xff]  ;;  %v14871_v23 = vld [vmem:[#allocation125_spill] sm:$0xff] }
 0x4ba   : > { %v7566_v24 = vpop.f32.mrf.mxu0  ;;  %v7313_v47 = vadd.f32 %v13956_v22, %v7007_v49  ;;  %v6668_v48 = vadd.f32 %v14867_v59, %v14866_v6  ;;  %v7311_v51 = vadd.f32 %v13972_v57, %v7005_v38  ;;  %v7008_v29 = vadd.f32 %v14868_v25, %v6670_v50  ;;  %v7263_v22 = vpop.f32.mrf.mxu1  ;;  %v14879_v49 = vld [vmem:[#allocation14_spill] sm:$0xff]  ;;  %v14883_v30 = vld [vmem:[#allocation92_spill] sm:$0xff]  ;;  %v14887_v25 = vld [vmem:[#allocation15_spill] sm:$0xff] }
 0x4bb   : > { %7808 = vst [vmem:[%s13932_s21 + $0x60] sm:$0xff] %v7776_v4  ;;  %v7779_v9 = vmax.f32 %v7747_v52, 0.0  ;;  %v7745_v45 = vadd.f32 %v7681_v33, %v14857_v32  ;;  %v7686_v12 = vadd.f32 %v13908_v17, %v7647_v37  ;;  %v7645_v10 = vadd.f32 %v7566_v24, %v7307_v44  ;;  %v14872_v52 = vld [vmem:[#allocation99_spill] sm:$0xff]  ;;  %v14876_v32 = vld [vmem:[#allocation100_spill] sm:$0xff] }
 0x4bc   : > { %v10635_v46 = vpop.f32.mrf.mxu0  ;;  %v6673_v4 = vadd.f32 %v14871_v23, %v14870_v20  ;;  %v7314_v42 = vadd.f32 %v13988_v5, %v7008_v29  ;;  %v7006_v33 = vadd.f32 %v14872_v52, %v6668_v48  ;;  %v6671_v24 = vadd.f32 %v14875_v2, %v14874_v3  ;;  %v10598_v5 = vpop.f32.mrf.mxu1 }
 0x4bd   : > { %7811 = vst [vmem:[%s13932_s21 + $0x78] sm:$0xff] %v7779_v9  ;;  %v7777_v35 = vmax.f32 %v7745_v45, 0.0  ;;  %v7750_v58 = vadd.f32 %v7686_v12, %v14861_v28  ;;  %v7684_v8 = vadd.f32 %v13908_v17, %v7645_v10  ;;  %v7648_v41 = vadd.f32 %v10635_v46, %v7310_v56  ;;  %v14880_v28 = vld [vmem:[#allocation21_spill] sm:$0xff] }
 0x4be   : > { %v7569_v11 = vpop.f32.mrf.mxu0  ;;  %v7312_v9 = vadd.f32 %v14004_v63, %v7006_v33  ;;  %v7011_v45 = vadd.f32 %v14876_v32, %v6673_v4  ;;  %v6674_v46 = vadd.f32 %v14879_v49, %v14878_v31  ;;  %v14890_v4 = vld [vmem:[#allocation91_spill] sm:$0xff]  ;;  %v14898_v49 = vld [vmem:[#allocation142_spill] sm:$0xff] }
 0x4bf   : > { %7809 = vst [vmem:[%s13932_s21 + $0x68] sm:$0xff] %v7777_v35  ;;  %v7782_v26 = vmax.f32 %v7750_v58, 0.0  ;;  %v7748_v18 = vadd.f32 %v7684_v8, %v14865_v54  ;;  %v7687_v55 = vadd.f32 %v13908_v17, %v7648_v41  ;;  %v7646_v15 = vadd.f32 %v7569_v11, %v7308_v0  ;;  %v14881_v41 = vld [vmem:[#allocation34_spill] sm:$0xff] }
 0x4c0   : > { %v10638_v53 = vpop.f32.mrf.mxu0  ;;  %v7317_v35 = vadd.f32 %v14020_v62, %v7011_v45  ;;  %v7009_v58 = vadd.f32 %v14880_v28, %v6671_v24  ;;  %v7276_v62 = vpop.f32.mrf.mxu1  ;;  %v14894_v24 = vld [vmem:[#allocation127_spill] sm:$0xff]  ;;  %v14896_v45 = vld [vmem:[#allocation98_spill] sm:$0xff] }
 0x4c1   : > { %7814 = vst [vmem:[%s13932_s21 + $0x90] sm:$0xff] %v7782_v26  ;;  %v7780_v27 = vmax.f32 %v7748_v18, 0.0  ;;  %v7751_v14 = vadd.f32 %v7687_v55, %v14869_v60  ;;  %v7685_v44 = vadd.f32 %v13908_v17, %v7646_v15  ;;  %v7651_v1 = vadd.f32 %v10638_v53, %v7313_v47  ;;  %v14882_v47 = vld [vmem:[#allocation81_spill] sm:$0xff]  ;;  %v14884_v26 = vld [vmem:[#allocation94_spill] sm:$0xff]  ;;  %v14885_v15 = vld [vmem:[#allocation35_spill] sm:$0xff] }
 0x4c2   : > { %v7582_v57 = vpop.f32.mrf.mxu0  ;;  %v6672_v38 = vadd.f32 %v14883_v30, %v14882_v47  ;;  %v7315_v11 = vadd.f32 %v14036_v61, %v7009_v58  ;;  %v7012_v54 = vadd.f32 %v14884_v26, %v6674_v46  ;;  %v14899_v46 = vld [vmem:[#allocation145_spill] sm:$0xff] }
 0x4c3   : > { %7812 = vst [vmem:[%s13932_s21 + $0x80] sm:$0xff] %v7780_v27  ;;  %v7783_v37 = vmax.f32 %v7751_v14, 0.0  ;;  %v7749_v39 = vadd.f32 %v7685_v44, %v14873_v36  ;;  %v7690_v16 = vadd.f32 %v13908_v17, %v7651_v1  ;;  %v7649_v56 = vadd.f32 %v7582_v57, %v7311_v51  ;;  %v14886_v51 = vld [vmem:[#allocation126_spill] sm:$0xff]  ;;  %v14888_v27 = vld [vmem:[#allocation135_spill] sm:$0xff]  ;;  %v14889_v44 = vld [vmem:[#allocation36_spill] sm:$0xff] }
 0x4c4   : > { %v10639_v12 = vpop.f32.mrf.mxu0  ;;  %v6677_v29 = vadd.f32 %v14887_v25, %v14886_v51  ;;  %v7318_v53 = vadd.f32 %v14052_v13, %v7012_v54  ;;  %v7010_v60 = vadd.f32 %v14888_v27, %v6672_v38  ;;  %v14892_v57 = vld [vmem:[#allocation96_spill] sm:$0xff]  ;;  %v14901_v47 = vld [vmem:[#allocation105_spill] sm:$0xff]  ;;  %v14902_v54 = vld [vmem:[#allocation42_spill] sm:$0xff] }
 0x4c5   : > { %7815 = vst [vmem:[%s13932_s21 + $0x98] sm:$0xff] %v7783_v37  ;;  %v7781_v10 = vmax.f32 %v7749_v39, 0.0  ;;  %v7754_v43 = vadd.f32 %v7690_v16, %v14877_v40  ;;  %v7688_v7 = vadd.f32 %v13908_v17, %v7649_v56  ;;  %v7652_v0 = vadd.f32 %v10639_v12, %v7314_v42  ;;  %v14891_v42 = vld [vmem:[#allocation86_spill] sm:$0xff]  ;;  %v10599_v39 = vpop.f32.mrf.mxu1  ;;  %v14893_v16 = vld [vmem:[#allocation37_spill] sm:$0xff] }
 0x4c6   : > { %v7585_v63 = vpop.f32.mrf.mxu0  ;;  %v6675_v52 = vadd.f32 %v14891_v42, %v14890_v4  ;;  %v7316_v33 = vadd.f32 %v7263_v22, %v7010_v60  ;;  %v7015_v37 = vadd.f32 %v14892_v57, %v6677_v29  ;;  %v14905_v60 = vld [vmem:[#allocation46_spill] sm:$0xff] }
 0x4c7   : > { %7813 = vst [vmem:[%s13932_s21 + $0x88] sm:$0xff] %v7781_v10  ;;  %v7786_v8 = vmax.f32 %v7754_v43, 0.0  ;;  %v7752_v34 = vadd.f32 %v7688_v7, %v14881_v41  ;;  %v7691_v21 = vadd.f32 %v13908_v17, %v7652_v0  ;;  %v7650_v50 = vadd.f32 %v7585_v63, %v7312_v9  ;;  %v14895_v9 = vld [vmem:[#allocation93_spill] sm:$0xff]  ;;  %v14897_v43 = vld [vmem:[#allocation40_spill] sm:$0xff] }
 0x4c8   : > { %v10642_v18 = vpop.f32.mrf.mxu0  ;;  %v6678_v32 = vadd.f32 %v14895_v9, %v14894_v24  ;;  %v7013_v12 = vadd.f32 %v14896_v45, %v6675_v52  ;;  %v7321_v10 = vadd.f32 %v10598_v5, %v7015_v37  ;;  %v14900_v41 = vld [vmem:[#allocation41_spill] sm:$0xff] }
 0x4c9   : > { %7818 = vst [vmem:[%s13932_s21 + $0xb0] sm:$0xff] %v7786_v8  ;;  %v7784_v55 = vmax.f32 %v7752_v34, 0.0  ;;  %v7755_v6 = vadd.f32 %v7691_v21, %v14885_v15  ;;  %v7689_v59 = vadd.f32 %v13908_v17, %v7650_v50  ;;  %v7655_v48 = vadd.f32 %v10642_v18, %v7317_v35  ;;  %v7279_v8 = vpop.f32.mrf.mxu1 }
 0x4ca   : > { %v7598_v61 = vpop.f32.mrf.mxu0  ;;  %v6676_v35 = vadd.f32 %v14899_v46, %v14898_v49  ;;  %v7016_v28 = vadd.f32 %v13895_v19, %v6678_v32  ;;  %v7319_v58 = vadd.f32 %v7276_v62, %v7013_v12 }
 0x4cb   : > { %7816 = vst [vmem:[%s13932_s21 + $0xa0] sm:$0xff] %v7784_v55  ;;  %v7787_v14 = vmax.f32 %v7755_v6, 0.0  ;;  %v7753_v1 = vadd.f32 %v7689_v59, %v14889_v44  ;;  %v7694_v20 = vadd.f32 %v13908_v17, %v7655_v48  ;;  %v7653_v23 = vadd.f32 %v7598_v61, %v7315_v11  ;;  %v14903_v59 = vld [vmem:[#allocation43_spill] sm:$0xff] }
 0x4cc   : > { %v10643_v36 = vpop.f32.mrf.mxu0  ;;  %v7014_v30 = vadd.f32 %v14901_v47, %v6676_v35  ;;  %v7322_v38 = vadd.f32 %v10599_v39, %v7016_v28  ;;  %v14904_v48 = vmax.f32 %v14903_v59, 0.0 }
 0x4cd   : > { %7819 = vst [vmem:[%s13932_s21 + $0xb8] sm:$0xff] %v7787_v14  ;;  %v7785_v13 = vmax.f32 %v7753_v1, 0.0  ;;  %v7758_v56 = vadd.f32 %v7694_v20, %v14893_v16  ;;  %v7692_v3 = vadd.f32 %v13908_v17, %v7653_v23  ;;  %v7656_v2 = vadd.f32 %v10643_v36, %v7318_v53  ;;  %v14906_v20 = vld [vmem:[#allocation47_spill] sm:$0xff] }
 0x4ce   : > { %v7601_v40 = vpop.f32.mrf.mxu0  ;;  %v7320_v55 = vadd.f32 %v7279_v8, %v7014_v30  ;;  %v14907_v23 = vmax.f32 %v14906_v20, 0.0 }
 0x4cf   : > { %7817 = vst [vmem:[%s13932_s21 + $0xa8] sm:$0xff] %v7785_v13  ;;  %v7790_v22 = vmax.f32 %v7758_v56, 0.0  ;;  %v7756_v7 = vadd.f32 %v7692_v3, %v14897_v43  ;;  %v7695_v0 = vadd.f32 %v13908_v17, %v7656_v2  ;;  %v7654_v31 = vadd.f32 %v7601_v40, %v7316_v33  ;;  %v14908_v33 = vld [vmem:[#allocation48_spill] sm:$0xff] }
 0x4d0   : > { %v10646_v63 = vpop.f32.mrf.mxu0 }
 0x4d1   : > { %7822 = vst [vmem:[%s13932_s21 + $0xd0] sm:$0xff] %v7790_v22  ;;  %v7788_v5 = vmax.f32 %v7756_v7, 0.0  ;;  %v7759_v34 = vadd.f32 %v7695_v0, %v14900_v41  ;;  %v7693_v21 = vadd.f32 %v13908_v17, %v7654_v31  ;;  %v7659_v50 = vadd.f32 %v10646_v63, %v7321_v10 }
 0x4d2   : > { %v7614_v11 = vpop.f32.mrf.mxu0 }
 0x4d3   : > { %7820 = vst [vmem:[%s13932_s21 + $0xc0] sm:$0xff] %v7788_v5  ;;  %v7791_v26 = vmax.f32 %v7759_v34, 0.0  ;;  %v7757_v19 = vadd.f32 %v7693_v21, %v14902_v54  ;;  %v7698_v18 = vadd.f32 %v13908_v17, %v7659_v50  ;;  %v7657_v62 = vadd.f32 %v7614_v11, %v7319_v58 }
 0x4d4   : > { %v10647_v15 = vpop.f32.mrf.mxu0 }
 0x4d5   : > { %7823 = vst [vmem:[%s13932_s21 + $0xd8] sm:$0xff] %v7791_v26  ;;  %v7789_v6 = vmax.f32 %v7757_v19, 0.0  ;;  %v7762_v51 = vadd.f32 %v7698_v18, %v14904_v48  ;;  %v7696_v25 = vadd.f32 %v13908_v17, %v7657_v62  ;;  %v7660_v29 = vadd.f32 %v10647_v15, %v7322_v38 }
 0x4d6   : > { %v7617_v53 = vpop.f32.mrf.mxu0 }
 0x4d7   : > { %7821 = vst [vmem:[%s13932_s21 + $0xc8] sm:$0xff] %v7789_v6  ;;  %v7794_v27 = vmax.f32 %v7762_v51, 0.0  ;;  %v7760_v61 = vadd.f32 %v7696_v25, %v14905_v60  ;;  %v7699_v14 = vadd.f32 %v13908_v17, %v7660_v29  ;;  %v7658_v44 = vadd.f32 %v7617_v53, %v7320_v55 }
 0x4d9   : > { %7826 = vst [vmem:[%s13932_s21 + $0xf0] sm:$0xff] %v7794_v27  ;;  %v7792_v1 = vmax.f32 %v7760_v61, 0.0  ;;  %v7763_v4 = vadd.f32 %v7699_v14, %v14907_v23  ;;  %v7697_v42 = vadd.f32 %v13908_v17, %v7658_v44 }
 0x4db   : > { %7824 = vst [vmem:[%s13932_s21 + $0xe0] sm:$0xff] %v7792_v1  ;;  %v7795_v52 = vmax.f32 %v7763_v4, 0.0  ;;  %v7761_v57 = vadd.f32 %v7697_v42, %v14908_v33 }
 0x4dd   : > { %7827 = vst [vmem:[%s13932_s21 + $0xf8] sm:$0xff] %v7795_v52  ;;  %v7793_v37 = vmax.f32 %v7761_v57, 0.0 }
 0x4df   : > { %7825 = vst [vmem:[%s13932_s21 + $0xe8] sm:$0xff] %v7793_v37 }
 0x4e0 PF: > { %s17_s24 = sadd.s32 1, %s10858_s24  }
 0x4e1   : > { %p14_p4 = scmp.ge.s32.totalorder %s17_s24, 4  }
 0x4e3   :  { %16 = sbr.rel (!%p14_p4) target bundleno = 1 (0x1), region = 96 }

</bundles_post_ra>
